<compile_context>
chip_gen: v7x
topology: tpu7x:2x2x1
jax: 0.10.0
libtpu: 0.0.40
codegen_flags: <defaults>
</compile_context>

<pallas_src>
import functools

import jax
import jax.numpy as jnp
from jax.experimental import pallas as pl
from jax.experimental.pallas import tpu as pltpu

BN_EPS = 1e-5
LEAKY_SLOPE = 0.2
LANES = 128
VMEM_LIMIT = 32 * 1024 * 1024  # safe on v5e/v6e (128 MiB) and v7x (64 MiB)


def _round_up(x, m):
    return ((x + m - 1) // m) * m


# ---------------------------------------------------------------------------
# Pass 1 kernel: conv as a single (tm, 9C) x (9C, C) MXU matmul + bias,
# plus per-channel sum / sum-of-squares accumulation for BatchNorm.
# ---------------------------------------------------------------------------
def _conv_stats_kernel(p_ref, w_ref, b_ref, y_ref, sum_ref, ssq_ref, *, m_valid):
    i = pl.program_id(0)

    @pl.when(i == 0)
    def _():
        sum_ref[...] = jnp.zeros_like(sum_ref)
        ssq_ref[...] = jnp.zeros_like(ssq_ref)

    # One MXU push with K = 9 * Cin (bf16 operands, f32 accumulate).
    y = jnp.dot(p_ref[...], w_ref[...], preferred_element_type=jnp.float32)
    y = y + b_ref[...]
    y_ref[...] = y

    # Mask padded M rows so BN statistics only cover real pixels.
    tm = y.shape[0]
    row = jax.lax.broadcasted_iota(jnp.int32, (tm, 1), 0) + i * tm
    yv = jnp.where(row < m_valid, y, 0.0)
    sum_ref[...] += jnp.sum(yv, axis=0, keepdims=True)
    ssq_ref[...] += jnp.sum(yv * yv, axis=0, keepdims=True)


def conv_bias_stats(patches, w_folded, bias, *, tm, m_valid):
    mp, k = patches.shape
    cout = w_folded.shape[1]
    grid = (mp // tm,)
    kern = functools.partial(_conv_stats_kernel, m_valid=m_valid)
    flops = 2 * mp * k * cout
    bytes_accessed = (patches.size * 2 + w_folded.size * 2 + bias.size * 4
                      + mp * cout * 4 + 2 * cout * 4)
    return pl.pallas_call(
        kern,
        out_shape=(jax.ShapeDtypeStruct((mp, cout), jnp.float32),
                   jax.ShapeDtypeStruct((1, cout), jnp.float32),
                   jax.ShapeDtypeStruct((1, cout), jnp.float32)),
        grid_spec=pltpu.PrefetchScalarGridSpec(
            num_scalar_prefetch=0,
            grid=grid,
            in_specs=[pl.BlockSpec((tm, k), lambda i: (i, 0)),
                      pl.BlockSpec((k, cout), lambda i: (0, 0)),
                      pl.BlockSpec((1, cout), lambda i: (0, 0))],
            out_specs=(pl.BlockSpec((tm, cout), lambda i: (i, 0)),
                       pl.BlockSpec((1, cout), lambda i: (0, 0)),
                       pl.BlockSpec((1, cout), lambda i: (0, 0)))),
        compiler_params=pltpu.CompilerParams(
            dimension_semantics=("arbitrary",),      # stats accumulator axis
            vmem_limit_bytes=VMEM_LIMIT),
        cost_estimate=pl.CostEstimate(flops=flops, transcendentals=0,
                                      bytes_accessed=bytes_accessed),
    )(patches, w_folded, bias)


# ---------------------------------------------------------------------------
# Pass 2 kernel: BatchNorm normalize (+ LeakyReLU) (+ residual add).
# ---------------------------------------------------------------------------
def _bn_act_core(y, s, ss, g, be, res, *, leaky, m_valid):
    inv_m = 1.0 / float(m_valid)
    mean = s * inv_m
    var = jnp.maximum(ss * inv_m - mean * mean, 0.0)   # biased variance
    scale = jax.lax.rsqrt(var + BN_EPS) * g
    y = (y - mean) * scale + be
    if leaky:
        y = jnp.where(y > 0, y, LEAKY_SLOPE * y)
    if res is not None:
        y = y + res
    return y


def _bn_act_kernel(y_ref, s_ref, ss_ref, g_ref, be_ref, o_ref, *, leaky, m_valid):
    o_ref[...] = _bn_act_core(y_ref[...], s_ref[...], ss_ref[...], g_ref[...],
                              be_ref[...], None, leaky=leaky, m_valid=m_valid)


def _bn_act_res_kernel(y_ref, s_ref, ss_ref, g_ref, be_ref, res_ref, o_ref, *,
                       leaky, m_valid):
    o_ref[...] = _bn_act_core(y_ref[...], s_ref[...], ss_ref[...], g_ref[...],
                              be_ref[...], res_ref[...], leaky=leaky,
                              m_valid=m_valid)


def bn_act(y, s, ss, gamma, beta, res, *, leaky, m_valid, tm):
    mp, cout = y.shape
    grid = (mp // tm,)
    tile = pl.BlockSpec((tm, cout), lambda i: (i, 0))
    vec = pl.BlockSpec((1, cout), lambda i: (0, 0))
    if res is None:
        kern = functools.partial(_bn_act_kernel, leaky=leaky, m_valid=m_valid)
        in_specs = [tile, vec, vec, vec, vec]
        args = (y, s, ss, gamma, beta)
    else:
        kern = functools.partial(_bn_act_res_kernel, leaky=leaky, m_valid=m_valid)
        in_specs = [tile, vec, vec, vec, vec, tile]
        args = (y, s, ss, gamma, beta, res)
    n_streams = 2 + (0 if res is None else 1)
    return pl.pallas_call(
        kern,
        out_shape=jax.ShapeDtypeStruct((mp, cout), jnp.float32),
        grid_spec=pltpu.PrefetchScalarGridSpec(
            num_scalar_prefetch=0, grid=grid,
            in_specs=in_specs, out_specs=tile),
        compiler_params=pltpu.CompilerParams(
            dimension_semantics=("parallel",),       # independent tiles
            vmem_limit_bytes=VMEM_LIMIT),
        cost_estimate=pl.CostEstimate(flops=8 * mp * cout,
                                      transcendentals=cout,
                                      bytes_accessed=n_streams * mp * cout * 4),
    )(*args)


# ---------------------------------------------------------------------------
# JAX glue: channel/row padding, reflect pad + tap folding (data movement).
# ---------------------------------------------------------------------------
def _pad_last(a, target):
    pad = target - a.shape[-1]
    if pad == 0:
        return a
    return jnp.pad(a, [(0, 0)] * (a.ndim - 1) + [(0, pad)])


def _pad_rows(a, target):
    pad = target - a.shape[0]
    if pad == 0:
        return a
    return jnp.pad(a, ((0, pad), (0, 0)))


def _extract_patches_kfold(x_nhwc):
    """(N,H,W,C) -> (N*H*W, 9*C): reflect-padded 3x3 taps folded into K."""
    n, h, w, c = x_nhwc.shape
    xp = jnp.pad(x_nhwc, ((0, 0), (1, 1), (1, 1), (0, 0)), mode="reflect")
    taps = [xp[:, kh:kh + h, kw:kw + w, :] for kh in range(3) for kw in range(3)]
    return jnp.concatenate(taps, axis=-1).reshape(n * h * w, 9 * c)
    # TODO(synk): a halo'd-tile BlockSpec would avoid materializing this
    # 9x-expanded patch tensor in HBM entirely.


def _fold_weight(w_hwio, cp):
    """(3,3,Cin,Cout) -> zero-pad channels -> (9*Cp, Cp) bf16, tap-major rows."""
    c_in, c_out = w_hwio.shape[2], w_hwio.shape[3]
    wp = jnp.pad(w_hwio, ((0, 0), (0, 0), (0, cp - c_in), (0, cp - c_out)))
    return wp.reshape(9 * cp, cp).astype(jnp.bfloat16)


def gross_residual_forward(x_nhwc, w1_hwio, b1, g1, be1, w2_hwio, b2, g2, be2,
                           *, tm=256):
    """Full GrossResidualLayer forward.  x_nhwc: (N, H, W, C) float32."""
    n, h, w, c = x_nhwc.shape
    cp = _round_up(c, LANES)                 # lane-dense channel padding
    m = n * h * w
    tm = min(tm, _round_up(m, 32))           # sublane/packing-friendly tile
    mp = _round_up(m, tm)

    x_p = _pad_last(x_nhwc, cp)              # (N,H,W,Cp)
    w1f, w2f = _fold_weight(w1_hwio, cp), _fold_weight(w2_hwio, cp)
    b1p, b2p = _pad_last(b1, cp), _pad_last(b2, cp)
    g1p, g2p = _pad_last(g1, cp), _pad_last(g2, cp)
    be1p, be2p = _pad_last(be1, cp), _pad_last(be2, cp)

    # ---- block 1: Conv1 + BN1 + LeakyReLU ---------------------------------
    p1 = _pad_rows(_extract_patches_kfold(x_p), mp).astype(jnp.bfloat16)
    y1, s1, ss1 = conv_bias_stats(p1, w1f, b1p, tm=tm, m_valid=m)
    a1 = bn_act(y1, s1, ss1, g1p, be1p, None, leaky=True, m_valid=m, tm=tm)

    # ---- block 2: Conv2 + BN2 + residual add ------------------------------
    a1_img = a1[:m].reshape(n, h, w, cp)
    p2 = _pad_rows(_extract_patches_kfold(a1_img), mp).astype(jnp.bfloat16)
    y2, s2, ss2 = conv_bias_stats(p2, w2f, b2p, tm=tm, m_valid=m)
    res = _pad_rows(x_p.reshape(m, cp), mp)
    out = bn_act(y2, s2, ss2, g2p, be2p, res, leaky=False, m_valid=m, tm=tm)

    return out[:m].reshape(n, h, w, cp)[..., :c]


# ---------------------------------------------------------------------------
# Pure-JAX reference (conv operands bf16-rounded to mirror the MXU path).
# ---------------------------------------------------------------------------
def _bf16_round(a):
    return a.astype(jnp.bfloat16).astype(jnp.float32)


def ref_forward(x, w1, b1, g1, be1, w2, b2, g2, be2):
    def conv(t, wh, b):
        tp = jnp.pad(t, ((0, 0), (1, 1), (1, 1), (0, 0)), mode="reflect")
        y = jax.lax.conv_general_dilated(
            _bf16_round(tp), _bf16_round(wh), (1, 1), "VALID",
            dimension_numbers=("NHWC", "HWIO", "NHWC"),
            preferred_element_type=jnp.float32)
        return y + b.reshape(1, 1, 1, -1)

    def bn(t, g, be):
        mean = jnp.mean(t, axis=(0, 1, 2), keepdims=True)
        var = jnp.mean((t - mean) ** 2, axis=(0, 1, 2), keepdims=True)
        return ((t - mean) / jnp.sqrt(var + BN_EPS)) * g.reshape(1, 1, 1, -1) \
            + be.reshape(1, 1, 1, -1)

    y = bn(conv(x, w1, b1), g1, be1)
    y = jnp.where(y > 0, y, LEAKY_SLOPE * y)
    y = bn(conv(y, w2, b2), g2, be2)
    return x + y


# ---------------------------------------------------------------------------
if __name__ == "__main__":
    key = jax.random.PRNGKey(0)
    N, C, H, W = 2, 4, 16, 16
    ks = jax.random.split(key, 5)

    # PyTorch-style NCHW input, transposed to the kernel's NHWC layout.
    x_nchw = jax.random.normal(ks[0], (N, C, H, W), jnp.float32)
    x = jnp.transpose(x_nchw, (0, 2, 3, 1))

    # Conv weights in HWIO (3,3,Cin,Cout); BatchNorm2d affine defaults.
    w1 = jax.random.normal(ks[1], (3, 3, C, C), jnp.float32) * 0.2
    w2 = jax.random.normal(ks[2], (3, 3, C, C), jnp.float32) * 0.2
    b1 = jax.random.normal(ks[3], (1, C), jnp.float32) * 0.1
    b2 = jax.random.normal(ks[4], (1, C), jnp.float32) * 0.1
    g1 = jnp.ones((1, C), jnp.float32)
    be1 = jnp.zeros((1, C), jnp.float32)
    g2 = jnp.ones((1, C), jnp.float32)
    be2 = jnp.zeros((1, C), jnp.float32)

    # TODO(synk): BatchNorm running_mean/running_var buffer updates (training
    # side effect) are not reproduced; only the forward normalization math is.

    fwd = jax.jit(gross_residual_forward)
    out = jax.block_until_ready(fwd(x, w1, b1, g1, be1, w2, b2, g2, be2))

    ref = ref_forward(x, w1, b1, g1, be1, w2, b2, g2, be2)
    assert out.shape == x.shape
    max_err = float(jnp.max(jnp.abs(out - ref)))
    assert jnp.allclose(out, ref, atol=1e-2, rtol=1e-2), max_err
    print("KERNEL_OK")
</pallas_src>

<mosaic_0001>
module attributes {stable_mosaic.version = 11 : i64} {
  func.func @_conv_stats_kernel(%arg0: i32, %arg1: memref<256x1152xbf16, #tpu.memory_space<vmem>>, %arg2: memref<1152x128xbf16, #tpu.memory_space<vmem>>, %arg3: memref<1x128xf32, #tpu.memory_space<vmem>>, %arg4: memref<256x128xf32, #tpu.memory_space<vmem>>, %arg5: memref<1x128xf32, #tpu.memory_space<vmem>>, %arg6: memref<1x128xf32, #tpu.memory_space<vmem>>) attributes {dimension_semantics = [#tpu.dimension_semantics<arbitrary>], iteration_bounds = array<i64: 2>, scalar_prefetch = 0 : i64, scratch_operands = 0 : i64, tpu.core_type = #tpu.core_type<tc>, window_params = [{transform_indices = @transform_0, window_bounds = array<i64: 256, 1152>}, {pipeline_mode = #tpu.pipeline_mode<synchronous>, transform_indices = @transform_1, window_bounds = array<i64: 1152, 128>}, {pipeline_mode = #tpu.pipeline_mode<synchronous>, transform_indices = @transform_2, window_bounds = array<i64: 1, 128>}, {transform_indices = @transform_3, window_bounds = array<i64: 256, 128>}, {pipeline_mode = #tpu.pipeline_mode<synchronous>, transform_indices = @transform_4, window_bounds = array<i64: 1, 128>}, {pipeline_mode = #tpu.pipeline_mode<synchronous>, transform_indices = @transform_5, window_bounds = array<i64: 1, 128>}]} {
    %c0_i32 = arith.constant 0 : i32
    %0 = arith.cmpi eq, %arg0, %c0_i32 : i32
    %1 = arith.extui %0 : i1 to i32
    %c0_i32_0 = arith.constant 0 : i32
    %2 = arith.cmpi ne, %1, %c0_i32_0 : i32
    scf.if %2 {
      %cst_19 = arith.constant 0.000000e+00 : f32
      %31 = vector.broadcast %cst_19 : f32 to vector<1x128xf32>
      %c0_20 = arith.constant 0 : index
      %c0_21 = arith.constant 0 : index
      %32 = vector.load %arg5[%c0_20, %c0_21] : memref<1x128xf32, #tpu.memory_space<vmem>>, vector<1x128xf32>
      tpu.vector_store %arg5[%c0_20, %c0_21], %31 {strides = array<i32>} : memref<1x128xf32, #tpu.memory_space<vmem>>, vector<1x128xf32>,
      %cst_22 = arith.constant 0.000000e+00 : f32
      %33 = vector.broadcast %cst_22 : f32 to vector<1x128xf32>
      %c0_23 = arith.constant 0 : index
      %c0_24 = arith.constant 0 : index
      %34 = vector.load %arg6[%c0_23, %c0_24] : memref<1x128xf32, #tpu.memory_space<vmem>>, vector<1x128xf32>
      tpu.vector_store %arg6[%c0_23, %c0_24], %33 {strides = array<i32>} : memref<1x128xf32, #tpu.memory_space<vmem>>, vector<1x128xf32>,
    } else {
    }
    %c0 = arith.constant 0 : index
    %c0_1 = arith.constant 0 : index
    %3 = vector.load %arg1[%c0, %c0_1] : memref<256x1152xbf16, #tpu.memory_space<vmem>>, vector<256x1152xbf16>
    %c0_2 = arith.constant 0 : index
    %c0_3 = arith.constant 0 : index
    %4 = vector.load %arg2[%c0_2, %c0_3] : memref<1152x128xbf16, #tpu.memory_space<vmem>>, vector<1152x128xbf16>
    %cst = arith.constant dense<0.000000e+00> : vector<256x128xf32>
    %5 = tpu.matmul %3, %4, %cst {dimension_numbers = #tpu.dot_dimension_numbers<[1], [0], [0], [1], [0, 0, 1, 1], [], []>} : vector<256x1152xbf16>, vector<1152x128xbf16>, vector<256x128xf32> -> vector<256x128xf32>
    %c0_4 = arith.constant 0 : index
    %c0_5 = arith.constant 0 : index
    %6 = vector.load %arg3[%c0_4, %c0_5] : memref<1x128xf32, #tpu.memory_space<vmem>>, vector<1x128xf32>
    %7 = vector.broadcast %6 : vector<1x128xf32> to vector<256x128xf32>
    %8 = arith.addf %5, %7 : vector<256x128xf32>
    %c0_6 = arith.constant 0 : index
    %c0_7 = arith.constant 0 : index
    %9 = vector.load %arg4[%c0_6, %c0_7] : memref<256x128xf32, #tpu.memory_space<vmem>>, vector<256x128xf32>
    tpu.vector_store %arg4[%c0_6, %c0_7], %8 {strides = array<i32>} : memref<256x128xf32, #tpu.memory_space<vmem>>, vector<256x128xf32>,
    %10 = tpu.iota {dimensions = array<i32: 0>} : vector<256x1xi32>
    %c256_i32 = arith.constant 256 : i32
    %11 = arith.muli %arg0, %c256_i32 : i32
    %12 = vector.broadcast %11 : i32 to vector<256x1xi32>
    %13 = arith.addi %10, %12 : vector<256x1xi32>
    %c512_i32 = arith.constant 512 : i32
    %14 = vector.broadcast %c512_i32 : i32 to vector<256x1xi32>
    %15 = arith.cmpi slt, %13, %14 : vector<256x1xi32>
    %cst_8 = arith.constant 0.000000e+00 : f32
    %16 = vector.shape_cast %15 : vector<256x1xi1> to vector<256x1xi1>
    %17 = vector.broadcast %16 : vector<256x1xi1> to vector<256x128xi1>
    %18 = vector.broadcast %cst_8 : f32 to vector<256x128xf32>
    %19 = arith.select %17, %8, %18 : vector<256x128xi1>, vector<256x128xf32>
    %c0_9 = arith.constant 0 : index
    %c0_10 = arith.constant 0 : index
    %20 = vector.load %arg5[%c0_9, %c0_10] : memref<1x128xf32, #tpu.memory_space<vmem>>, vector<1x128xf32>
    %cst_11 = arith.constant dense<0.000000e+00> : vector<128xf32>
    %21 = vector.multi_reduction <add>, %19, %cst_11 [0] : vector<256x128xf32> to vector<128xf32>
    %22 = vector.shape_cast %21 : vector<128xf32> to vector<1x128xf32>
    %23 = arith.addf %20, %22 : vector<1x128xf32>
    %c0_12 = arith.constant 0 : index
    %c0_13 = arith.constant 0 : index
    %24 = vector.load %arg5[%c0_12, %c0_13] : memref<1x128xf32, #tpu.memory_space<vmem>>, vector<1x128xf32>
    tpu.vector_store %arg5[%c0_12, %c0_13], %23 {strides = array<i32>} : memref<1x128xf32, #tpu.memory_space<vmem>>, vector<1x128xf32>,
    %c0_14 = arith.constant 0 : index
    %c0_15 = arith.constant 0 : index
    %25 = vector.load %arg6[%c0_14, %c0_15] : memref<1x128xf32, #tpu.memory_space<vmem>>, vector<1x128xf32>
    %26 = arith.mulf %19, %19 : vector<256x128xf32>
    %cst_16 = arith.constant dense<0.000000e+00> : vector<128xf32>
    %27 = vector.multi_reduction <add>, %26, %cst_16 [0] : vector<256x128xf32> to vector<128xf32>
    %28 = vector.shape_cast %27 : vector<128xf32> to vector<1x128xf32>
    %29 = arith.addf %25, %28 : vector<1x128xf32>
    %c0_17 = arith.constant 0 : index
    %c0_18 = arith.constant 0 : index
    %30 = vector.load %arg6[%c0_17, %c0_18] : memref<1x128xf32, #tpu.memory_space<vmem>>, vector<1x128xf32>
    tpu.vector_store %arg6[%c0_17, %c0_18], %29 {strides = array<i32>} : memref<1x128xf32, #tpu.memory_space<vmem>>, vector<1x128xf32>,
    return
  }
  func.func @transform_0(%arg0: i32) -> (i32, i32) {
    %c0_i32 = arith.constant 0 : i32
    %c0_i32_0 = arith.constant 0 : i32
    return %arg0, %c0_i32 : i32, i32
  }
  func.func @transform_1(%arg0: i32) -> (i32, i32) {
    %c0_i32 = arith.constant 0 : i32
    %c0_i32_0 = arith.constant 0 : i32
    %c0_i32_1 = arith.constant 0 : i32
    return %c0_i32, %c0_i32_0 : i32, i32
  }
  func.func @transform_2(%arg0: i32) -> (i32, i32) {
    %c0_i32 = arith.constant 0 : i32
    %c0_i32_0 = arith.constant 0 : i32
    %c0_i32_1 = arith.constant 0 : i32
    return %c0_i32, %c0_i32_0 : i32, i32
  }
  func.func @transform_3(%arg0: i32) -> (i32, i32) {
    %c0_i32 = arith.constant 0 : i32
    %c0_i32_0 = arith.constant 0 : i32
    return %arg0, %c0_i32 : i32, i32
  }
  func.func @transform_4(%arg0: i32) -> (i32, i32) {
    %c0_i32 = arith.constant 0 : i32
    %c0_i32_0 = arith.constant 0 : i32
    %c0_i32_1 = arith.constant 0 : i32
    return %c0_i32, %c0_i32_0 : i32, i32
  }
  func.func @transform_5(%arg0: i32) -> (i32, i32) {
    %c0_i32 = arith.constant 0 : i32
    %c0_i32_0 = arith.constant 0 : i32
    %c0_i32_1 = arith.constant 0 : i32
    return %c0_i32, %c0_i32_0 : i32, i32
  }
}

module attributes {stable_mosaic.version = 11 : i64} {
  func.func @_bn_act_kernel(%arg0: i32, %arg1: memref<256x128xf32, #tpu.memory_space<vmem>>, %arg2: memref<1x128xf32, #tpu.memory_space<vmem>>, %arg3: memref<1x128xf32, #tpu.memory_space<vmem>>, %arg4: memref<1x128xf32, #tpu.memory_space<vmem>>, %arg5: memref<1x128xf32, #tpu.memory_space<vmem>>, %arg6: memref<256x128xf32, #tpu.memory_space<vmem>>) attributes {dimension_semantics = [#tpu.dimension_semantics<parallel>], iteration_bounds = array<i64: 2>, scalar_prefetch = 0 : i64, scratch_operands = 0 : i64, tpu.core_type = #tpu.core_type<tc>, window_params = [{transform_indices = @transform_0, window_bounds = array<i64: 256, 128>}, {pipeline_mode = #tpu.pipeline_mode<synchronous>, transform_indices = @transform_1, window_bounds = array<i64: 1, 128>}, {pipeline_mode = #tpu.pipeline_mode<synchronous>, transform_indices = @transform_2, window_bounds = array<i64: 1, 128>}, {pipeline_mode = #tpu.pipeline_mode<synchronous>, transform_indices = @transform_3, window_bounds = array<i64: 1, 128>}, {pipeline_mode = #tpu.pipeline_mode<synchronous>, transform_indices = @transform_4, window_bounds = array<i64: 1, 128>}, {transform_indices = @transform_5, window_bounds = array<i64: 256, 128>}]} {
    %c0 = arith.constant 0 : index
    %c0_0 = arith.constant 0 : index
    %0 = vector.load %arg1[%c0, %c0_0] : memref<256x128xf32, #tpu.memory_space<vmem>>, vector<256x128xf32>
    %c0_1 = arith.constant 0 : index
    %c0_2 = arith.constant 0 : index
    %1 = vector.load %arg2[%c0_1, %c0_2] : memref<1x128xf32, #tpu.memory_space<vmem>>, vector<1x128xf32>
    %c0_3 = arith.constant 0 : index
    %c0_4 = arith.constant 0 : index
    %2 = vector.load %arg3[%c0_3, %c0_4] : memref<1x128xf32, #tpu.memory_space<vmem>>, vector<1x128xf32>
    %c0_5 = arith.constant 0 : index
    %c0_6 = arith.constant 0 : index
    %3 = vector.load %arg4[%c0_5, %c0_6] : memref<1x128xf32, #tpu.memory_space<vmem>>, vector<1x128xf32>
    %c0_7 = arith.constant 0 : index
    %c0_8 = arith.constant 0 : index
    %4 = vector.load %arg5[%c0_7, %c0_8] : memref<1x128xf32, #tpu.memory_space<vmem>>, vector<1x128xf32>
    %cst = arith.constant 0.001953125 : f32
    %5 = vector.broadcast %cst : f32 to vector<1x128xf32>
    %6 = arith.mulf %1, %5 : vector<1x128xf32>
    %cst_9 = arith.constant 0.001953125 : f32
    %7 = vector.broadcast %cst_9 : f32 to vector<1x128xf32>
    %8 = arith.mulf %2, %7 : vector<1x128xf32>
    %9 = arith.mulf %6, %6 : vector<1x128xf32>
    %10 = arith.subf %8, %9 : vector<1x128xf32>
    %cst_10 = arith.constant 0.000000e+00 : f32
    %11 = vector.broadcast %cst_10 : f32 to vector<1x128xf32>
    %12 = arith.maximumf %10, %11 : vector<1x128xf32>
    %cst_11 = arith.constant 9.99999974E-6 : f32
    %13 = vector.broadcast %cst_11 : f32 to vector<1x128xf32>
    %14 = arith.addf %12, %13 : vector<1x128xf32>
    %15 = math.rsqrt %14 : vector<1x128xf32>
    %16 = arith.mulf %15, %3 : vector<1x128xf32>
    %17 = vector.broadcast %6 : vector<1x128xf32> to vector<256x128xf32>
    %18 = arith.subf %0, %17 : vector<256x128xf32>
    %19 = vector.broadcast %16 : vector<1x128xf32> to vector<256x128xf32>
    %20 = arith.mulf %18, %19 : vector<256x128xf32>
    %21 = vector.broadcast %4 : vector<1x128xf32> to vector<256x128xf32>
    %22 = arith.addf %20, %21 : vector<256x128xf32>
    %cst_12 = arith.constant 0.000000e+00 : f32
    %23 = vector.broadcast %cst_12 : f32 to vector<256x128xf32>
    %24 = arith.cmpf ogt, %22, %23 : vector<256x128xf32>
    %cst_13 = arith.constant 2.000000e-01 : f32
    %25 = vector.broadcast %cst_13 : f32 to vector<256x128xf32>
    %26 = arith.mulf %25, %22 : vector<256x128xf32>
    %27 = arith.select %24, %22, %26 : vector<256x128xi1>, vector<256x128xf32>
    %c0_14 = arith.constant 0 : index
    %c0_15 = arith.constant 0 : index
    %28 = vector.load %arg6[%c0_14, %c0_15] : memref<256x128xf32, #tpu.memory_space<vmem>>, vector<256x128xf32>
    tpu.vector_store %arg6[%c0_14, %c0_15], %27 {strides = array<i32>} : memref<256x128xf32, #tpu.memory_space<vmem>>, vector<256x128xf32>,
    return
  }
  func.func @transform_0(%arg0: i32) -> (i32, i32) {
    %c0_i32 = arith.constant 0 : i32
    %c0_i32_0 = arith.constant 0 : i32
    return %arg0, %c0_i32 : i32, i32
  }
  func.func @transform_1(%arg0: i32) -> (i32, i32) {
    %c0_i32 = arith.constant 0 : i32
    %c0_i32_0 = arith.constant 0 : i32
    %c0_i32_1 = arith.constant 0 : i32
    return %c0_i32, %c0_i32_0 : i32, i32
  }
  func.func @transform_2(%arg0: i32) -> (i32, i32) {
    %c0_i32 = arith.constant 0 : i32
    %c0_i32_0 = arith.constant 0 : i32
    %c0_i32_1 = arith.constant 0 : i32
    return %c0_i32, %c0_i32_0 : i32, i32
  }
  func.func @transform_3(%arg0: i32) -> (i32, i32) {
    %c0_i32 = arith.constant 0 : i32
    %c0_i32_0 = arith.constant 0 : i32
    %c0_i32_1 = arith.constant 0 : i32
    return %c0_i32, %c0_i32_0 : i32, i32
  }
  func.func @transform_4(%arg0: i32) -> (i32, i32) {
    %c0_i32 = arith.constant 0 : i32
    %c0_i32_0 = arith.constant 0 : i32
    %c0_i32_1 = arith.constant 0 : i32
    return %c0_i32, %c0_i32_0 : i32, i32
  }
  func.func @transform_5(%arg0: i32) -> (i32, i32) {
    %c0_i32 = arith.constant 0 : i32
    %c0_i32_0 = arith.constant 0 : i32
    return %arg0, %c0_i32 : i32, i32
  }
}

module attributes {stable_mosaic.version = 11 : i64} {
  func.func @_bn_act_res_kernel(%arg0: i32, %arg1: memref<256x128xf32, #tpu.memory_space<vmem>>, %arg2: memref<1x128xf32, #tpu.memory_space<vmem>>, %arg3: memref<1x128xf32, #tpu.memory_space<vmem>>, %arg4: memref<1x128xf32, #tpu.memory_space<vmem>>, %arg5: memref<1x128xf32, #tpu.memory_space<vmem>>, %arg6: memref<256x128xf32, #tpu.memory_space<vmem>>, %arg7: memref<256x128xf32, #tpu.memory_space<vmem>>) attributes {dimension_semantics = [#tpu.dimension_semantics<parallel>], iteration_bounds = array<i64: 2>, scalar_prefetch = 0 : i64, scratch_operands = 0 : i64, tpu.core_type = #tpu.core_type<tc>, window_params = [{transform_indices = @transform_0, window_bounds = array<i64: 256, 128>}, {pipeline_mode = #tpu.pipeline_mode<synchronous>, transform_indices = @transform_1, window_bounds = array<i64: 1, 128>}, {pipeline_mode = #tpu.pipeline_mode<synchronous>, transform_indices = @transform_2, window_bounds = array<i64: 1, 128>}, {pipeline_mode = #tpu.pipeline_mode<synchronous>, transform_indices = @transform_3, window_bounds = array<i64: 1, 128>}, {pipeline_mode = #tpu.pipeline_mode<synchronous>, transform_indices = @transform_4, window_bounds = array<i64: 1, 128>}, {transform_indices = @transform_5, window_bounds = array<i64: 256, 128>}, {transform_indices = @transform_6, window_bounds = array<i64: 256, 128>}]} {
    %c0 = arith.constant 0 : index
    %c0_0 = arith.constant 0 : index
    %0 = vector.load %arg1[%c0, %c0_0] : memref<256x128xf32, #tpu.memory_space<vmem>>, vector<256x128xf32>
    %c0_1 = arith.constant 0 : index
    %c0_2 = arith.constant 0 : index
    %1 = vector.load %arg2[%c0_1, %c0_2] : memref<1x128xf32, #tpu.memory_space<vmem>>, vector<1x128xf32>
    %c0_3 = arith.constant 0 : index
    %c0_4 = arith.constant 0 : index
    %2 = vector.load %arg3[%c0_3, %c0_4] : memref<1x128xf32, #tpu.memory_space<vmem>>, vector<1x128xf32>
    %c0_5 = arith.constant 0 : index
    %c0_6 = arith.constant 0 : index
    %3 = vector.load %arg4[%c0_5, %c0_6] : memref<1x128xf32, #tpu.memory_space<vmem>>, vector<1x128xf32>
    %c0_7 = arith.constant 0 : index
    %c0_8 = arith.constant 0 : index
    %4 = vector.load %arg5[%c0_7, %c0_8] : memref<1x128xf32, #tpu.memory_space<vmem>>, vector<1x128xf32>
    %c0_9 = arith.constant 0 : index
    %c0_10 = arith.constant 0 : index
    %5 = vector.load %arg6[%c0_9, %c0_10] : memref<256x128xf32, #tpu.memory_space<vmem>>, vector<256x128xf32>
    %cst = arith.constant 0.001953125 : f32
    %6 = vector.broadcast %cst : f32 to vector<1x128xf32>
    %7 = arith.mulf %1, %6 : vector<1x128xf32>
    %cst_11 = arith.constant 0.001953125 : f32
    %8 = vector.broadcast %cst_11 : f32 to vector<1x128xf32>
    %9 = arith.mulf %2, %8 : vector<1x128xf32>
    %10 = arith.mulf %7, %7 : vector<1x128xf32>
    %11 = arith.subf %9, %10 : vector<1x128xf32>
    %cst_12 = arith.constant 0.000000e+00 : f32
    %12 = vector.broadcast %cst_12 : f32 to vector<1x128xf32>
    %13 = arith.maximumf %11, %12 : vector<1x128xf32>
    %cst_13 = arith.constant 9.99999974E-6 : f32
    %14 = vector.broadcast %cst_13 : f32 to vector<1x128xf32>
    %15 = arith.addf %13, %14 : vector<1x128xf32>
    %16 = math.rsqrt %15 : vector<1x128xf32>
    %17 = arith.mulf %16, %3 : vector<1x128xf32>
    %18 = vector.broadcast %7 : vector<1x128xf32> to vector<256x128xf32>
    %19 = arith.subf %0, %18 : vector<256x128xf32>
    %20 = vector.broadcast %17 : vector<1x128xf32> to vector<256x128xf32>
    %21 = arith.mulf %19, %20 : vector<256x128xf32>
    %22 = vector.broadcast %4 : vector<1x128xf32> to vector<256x128xf32>
    %23 = arith.addf %21, %22 : vector<256x128xf32>
    %24 = arith.addf %23, %5 : vector<256x128xf32>
    %c0_14 = arith.constant 0 : index
    %c0_15 = arith.constant 0 : index
    %25 = vector.load %arg7[%c0_14, %c0_15] : memref<256x128xf32, #tpu.memory_space<vmem>>, vector<256x128xf32>
    tpu.vector_store %arg7[%c0_14, %c0_15], %24 {strides = array<i32>} : memref<256x128xf32, #tpu.memory_space<vmem>>, vector<256x128xf32>,
    return
  }
  func.func @transform_0(%arg0: i32) -> (i32, i32) {
    %c0_i32 = arith.constant 0 : i32
    %c0_i32_0 = arith.constant 0 : i32
    return %arg0, %c0_i32 : i32, i32
  }
  func.func @transform_1(%arg0: i32) -> (i32, i32) {
    %c0_i32 = arith.constant 0 : i32
    %c0_i32_0 = arith.constant 0 : i32
    %c0_i32_1 = arith.constant 0 : i32
    return %c0_i32, %c0_i32_0 : i32, i32
  }
  func.func @transform_2(%arg0: i32) -> (i32, i32) {
    %c0_i32 = arith.constant 0 : i32
    %c0_i32_0 = arith.constant 0 : i32
    %c0_i32_1 = arith.constant 0 : i32
    return %c0_i32, %c0_i32_0 : i32, i32
  }
  func.func @transform_3(%arg0: i32) -> (i32, i32) {
    %c0_i32 = arith.constant 0 : i32
    %c0_i32_0 = arith.constant 0 : i32
    %c0_i32_1 = arith.constant 0 : i32
    return %c0_i32, %c0_i32_0 : i32, i32
  }
  func.func @transform_4(%arg0: i32) -> (i32, i32) {
    %c0_i32 = arith.constant 0 : i32
    %c0_i32_0 = arith.constant 0 : i32
    %c0_i32_1 = arith.constant 0 : i32
    return %c0_i32, %c0_i32_0 : i32, i32
  }
  func.func @transform_5(%arg0: i32) -> (i32, i32) {
    %c0_i32 = arith.constant 0 : i32
    %c0_i32_0 = arith.constant 0 : i32
    return %arg0, %c0_i32 : i32, i32
  }
  func.func @transform_6(%arg0: i32) -> (i32, i32) {
    %c0_i32 = arith.constant 0 : i32
    %c0_i32_0 = arith.constant 0 : i32
    return %arg0, %c0_i32 : i32, i32
  }
}

</mosaic_0001>

<bundles_post_ra>
// kernel: gross_residual_forward.5
= control target key start
LH: loop header
LB: loop body
LE: loop exit
PB: predicated region body
PF: predicated region fallthrough
CT: control target
= control target key end

     0   :  { %s630_s18 = smov 0   ;;  %s1011_s0 = inlined_call_operand.vmem [shape: f32[512,128], index: 0, kind: input, shape index: {}]   ;;  %s1012_s1 = inlined_call_operand.vmem [shape: f32[1,128], index: 1, kind: input, shape index: {}]   ;;  %s1013_s2 = inlined_call_operand.vmem [shape: f32[1,128], index: 2, kind: input, shape index: {}]   ;;  %s1014_s3 = inlined_call_operand.vmem [shape: f32[1,128], index: 3, kind: input, shape index: {}]   ;;  %s1015_s4 = inlined_call_operand.vmem [shape: f32[1,128], index: 4, kind: input, shape index: {}]   ;;  %s1016_s5 = inlined_call_operand.vmem [shape: f32[512,128], index: 5, kind: output, shape index: {}]  }
   0x1 LB: > { %s570_s19 = sadd.s32 4294967295, %s598_s18   ;;  %p574_p0 = scmp.ge.s32.totalorder %s598_s18, 1  ;;  %s598_s18 = sphi %s630_s18, %s15_s18  }
   0x2   : > { %p188_p1 = scmp.lt.s32.totalorder %s598_s18, 3 }
   0x4   : > { %p189_p2 = pnand %p574_p0, %p188_p1 }
   0x5   : > { %s575_s20 = sshll.u32 (!%p189_p2), %s570_s19, 5  ;;  %v260_v0 = vld [vmem:[%s1012_s1] sm:$0x1] (!%p189_p2)  ;;  %v273_v3 = vlaneseq (!%p189_p2) }
   0x6   : > { %192 = sbr.rel (%p189_p2) target bundleno = 79 (0x4f), region = 40  ;;  %v261_v1 = vld [vmem:[%s1013_s2] sm:$0x1] (!%p189_p2)  ;;  %p217_p3 = scmp.lt.s32.totalorder (!%p189_p2), %s575_s20, 63  ;;  %v264_v2 = vmul.f32 (!%p189_p2), 0.001953125, %v260_v0 }
   0x7   : > { %v265_v4 = vmul.f32 (!%p189_p2), 0.001953125, %v261_v1  ;;  %v646_v7 = vshrl.u32 (!%p189_p2), %v273_v3, 7  ;;  %v262_v26 = vld [vmem:[%s1014_s3] sm:$0x1] (!%p189_p2) }
   0x8   : > { %v266_v5 = vmul.f32 (!%p189_p2), %v264_v2, %v264_v2 }
   0x9   : > { %v275_v10 = vsub.s32 (!%p189_p2), 0, %v646_v7 }
   0xa   : > { %v267_v6 = vsub.f32 (!%p189_p2), %v265_v4, %v266_v5 }
   0xb   : > { %v665_v13 = vrot.slane (!%p189_p2), %v264_v2, %v275_v10 }
   0xc   : > { %v268_v8 = vmax.f32 (!%p189_p2), %v267_v6, 0.0 }
   0xd   : > { %s1025_s20 = smov (!%p217_p3, %s575_s20), 63 }
   0xe   : > { %s576_s25 = sshll.u32 %s1025_s20, 3  ;;  %v269_v9 = vadd.f32 1e-05, %v268_v8 }
   0xf   : > { %s654_s28 = scalar_lea.vmem %s1011_s0, %s576_s25  ;;  %s854_s10 = scalar_lea.vmem %s1016_s5, %s576_s25 }
  0x10   : > { %590 = vrsqrt.f32 %v269_v9  ;;  %v658_v11 = vld [vmem:[%s654_s28] sm:$0xff]  ;;  %v661_v12 = vld [vmem:[%s654_s28 + $0x8] sm:$0xff]  ;;  %v668_v14 = vld [vmem:[%s654_s28 + $0x10] sm:$0xff] }
  0x11   : > { %v671_v15 = vld [vmem:[%s654_s28 + $0x18] sm:$0xff]  ;;  %v674_v16 = vld [vmem:[%s654_s28 + $0x20] sm:$0xff]  ;;  %v677_v17 = vld [vmem:[%s654_s28 + $0x28] sm:$0xff]  ;;  %v278_v27 = vsub.f32 %v658_v11, %v665_v13  ;;  %v279_v28 = vsub.f32 %v661_v12, %v665_v13  ;;  %v280_v32 = vsub.f32 %v668_v14, %v665_v13 }
  0x12   : > { %v680_v18 = vld [vmem:[%s654_s28 + $0x30] sm:$0xff]  ;;  %v683_v19 = vld [vmem:[%s654_s28 + $0x38] sm:$0xff]  ;;  %v686_v20 = vld [vmem:[%s654_s28 + $0x40] sm:$0xff]  ;;  %v281_v33 = vsub.f32 %v671_v15, %v665_v13  ;;  %v282_v34 = vsub.f32 %v674_v16, %v665_v13  ;;  %v283_v35 = vsub.f32 %v677_v17, %v665_v13 }
  0x13   : > { %v689_v21 = vld [vmem:[%s654_s28 + $0x48] sm:$0xff]  ;;  %v692_v22 = vld [vmem:[%s654_s28 + $0x50] sm:$0xff]  ;;  %v695_v23 = vld [vmem:[%s654_s28 + $0x58] sm:$0xff]  ;;  %v284_v39 = vsub.f32 %v680_v18, %v665_v13  ;;  %v285_v40 = vsub.f32 %v683_v19, %v665_v13  ;;  %v286_v41 = vsub.f32 %v686_v20, %v665_v13 }
  0x14   : > { %v698_v24 = vld [vmem:[%s654_s28 + $0x60] sm:$0xff]  ;;  %v701_v25 = vld [vmem:[%s654_s28 + $0x68] sm:$0xff]  ;;  %v711_v29 = vld [vmem:[%s654_s28 + $0x70] sm:$0xff]  ;;  %v287_v42 = vsub.f32 %v689_v21, %v665_v13  ;;  %v288_v46 = vsub.f32 %v692_v22, %v665_v13  ;;  %v289_v47 = vsub.f32 %v695_v23, %v665_v13 }
  0x15   : > { %v714_v30 = vld [vmem:[%s654_s28 + $0x78] sm:$0xff]  ;;  %v717_v31 = vld [vmem:[%s654_s28 + $0x80] sm:$0xff]  ;;  %v728_v36 = vld [vmem:[%s654_s28 + $0x88] sm:$0xff]  ;;  %v290_v48 = vsub.f32 %v698_v24, %v665_v13  ;;  %v291_v49 = vsub.f32 %v701_v25, %v665_v13  ;;  %v292_v54 = vsub.f32 %v711_v29, %v665_v13 }
  0x16   : > { %v731_v37 = vld [vmem:[%s654_s28 + $0x90] sm:$0xff]  ;;  %v734_v38 = vld [vmem:[%s654_s28 + $0x98] sm:$0xff]  ;;  %v745_v43 = vld [vmem:[%s654_s28 + $0xa0] sm:$0xff]  ;;  %v293_v55 = vsub.f32 %v714_v30, %v665_v13  ;;  %v294_v56 = vsub.f32 %v717_v31, %v665_v13  ;;  %v295_v57 = vsub.f32 %v728_v36, %v665_v13 }
  0x17   : > { %v748_v44 = vld [vmem:[%s654_s28 + $0xa8] sm:$0xff]  ;;  %v751_v45 = vld [vmem:[%s654_s28 + $0xb0] sm:$0xff]  ;;  %v762_v50 = vld [vmem:[%s654_s28 + $0xb8] sm:$0xff]  ;;  %v296_v62 = vsub.f32 %v731_v37, %v665_v13  ;;  %v297_v63 = vsub.f32 %v734_v38, %v665_v13  ;;  %v298_v0 = vsub.f32 %v745_v43, %v665_v13 }
  0x18   : > { %v765_v51 = vld [vmem:[%s654_s28 + $0xc0] sm:$0xff]  ;;  %v768_v52 = vld [vmem:[%s654_s28 + $0xc8] sm:$0xff]  ;;  %v779_v58 = vld [vmem:[%s654_s28 + $0xd0] sm:$0xff]  ;;  %v299_v4 = vsub.f32 %v748_v44, %v665_v13  ;;  %v300_v5 = vsub.f32 %v751_v45, %v665_v13  ;;  %v301_v6 = vsub.f32 %v762_v50, %v665_v13 }
  0x19   : > { %v782_v59 = vld [vmem:[%s654_s28 + $0xd8] sm:$0xff]  ;;  %v785_v60 = vld [vmem:[%s654_s28 + $0xe0] sm:$0xff]  ;;  %v794_v1 = vld [vmem:[%s654_s28 + $0xe8] sm:$0xff]  ;;  %v302_v8 = vsub.f32 %v765_v51, %v665_v13 }
  0x1a   : > { %v591_v53 = vpop.eup %590  ;;  %v797_v2 = vld [vmem:[%s654_s28 + $0xf0] sm:$0xff]  ;;  %v800_v3 = vld [vmem:[%s654_s28 + $0xf8] sm:$0xff]  ;;  %v823_v15 = vld [vmem:[%s1015_s4] ss:$0 sm:$0xff] }
  0x1b   : > { %v271_v61 = vmul.f32 %v591_v53, %v262_v26 }
  0x1d   : > { %v812_v9 = vrot.slane %v271_v61, %v275_v10 }
  0x1f   : > { %v316_v18 = vmul.f32 %v812_v9, %v278_v27  ;;  %v317_v19 = vmul.f32 %v812_v9, %v279_v28  ;;  %v318_v26 = vmul.f32 %v812_v9, %v280_v32  ;;  %v319_v53 = vmul.f32 %v812_v9, %v281_v33 }
  0x20   : > { %v320_v61 = vmul.f32 %v812_v9, %v282_v34  ;;  %v321_v16 = vmul.f32 %v812_v9, %v283_v35  ;;  %v322_v7 = vmul.f32 %v812_v9, %v284_v39  ;;  %v323_v10 = vmul.f32 %v812_v9, %v285_v40 }
  0x21   : > { %v354_v14 = vadd.f32 %v823_v15, %v316_v18  ;;  %v355_v17 = vadd.f32 %v823_v15, %v317_v19  ;;  %v356_v27 = vadd.f32 %v823_v15, %v318_v26  ;;  %v357_v28 = vadd.f32 %v823_v15, %v319_v53 }
  0x22   : > { %v358_v32 = vadd.f32 %v823_v15, %v320_v61  ;;  %v359_v33 = vadd.f32 %v823_v15, %v321_v16  ;;  %v360_v34 = vadd.f32 %v823_v15, %v322_v7  ;;  %v361_v35 = vadd.f32 %v823_v15, %v323_v10 }
  0x23   : > { %vm386_vm0 = vcmp.gt.f32.partialorder %v354_v14, 0.0  ;;  %v418_v39 = vmul.f32 0.2, %v354_v14  ;;  %vm387_vm1 = vcmp.gt.f32.partialorder %v355_v17, 0.0  ;;  %v419_v40 = vmul.f32 0.2, %v355_v17 }
  0x24   : > { %vm388_vm2 = vcmp.gt.f32.partialorder %v356_v27, 0.0  ;;  %v420_v16 = vmul.f32 0.2, %v356_v27  ;;  %vm389_vm3 = vcmp.gt.f32.partialorder %v357_v28, 0.0  ;;  %v421_v7 = vmul.f32 0.2, %v357_v28 }
  0x25   : > { %v450_v18 = vsel %vm386_vm0, %v354_v14, %v418_v39  ;;  %v451_v10 = vsel %vm387_vm1, %v355_v17, %v419_v40  ;;  %vm390_vm4 = vcmp.gt.f32.partialorder %v358_v32, 0.0  ;;  %v422_v19 = vmul.f32 0.2, %v358_v32 }
  0x26   : > { %482 = vst [vmem:[%s854_s10] sm:$0xff] %v450_v18  ;;  %483 = vst [vmem:[%s854_s10 + $0x8] sm:$0xff] %v451_v10  ;;  %v452_v26 = vsel %vm388_vm2, %v356_v27, %v420_v16  ;;  %v453_v53 = vsel %vm389_vm3, %v357_v28, %v421_v7  ;;  %vm391_vm5 = vcmp.gt.f32.partialorder %v359_v33, 0.0  ;;  %v423_v61 = vmul.f32 0.2, %v359_v33 }
  0x27   : > { %484 = vst [vmem:[%s854_s10 + $0x10] sm:$0xff] %v452_v26  ;;  %485 = vst [vmem:[%s854_s10 + $0x18] sm:$0xff] %v453_v53  ;;  %v454_v12 = vsel %vm390_vm4, %v358_v32, %v422_v19  ;;  %vm392_vm6 = vcmp.gt.f32.partialorder %v360_v34, 0.0  ;;  %v424_v11 = vmul.f32 0.2, %v360_v34  ;;  %vm393_vm7 = vcmp.gt.f32.partialorder %v361_v35, 0.0 }
  0x28   : > { %486 = vst [vmem:[%s854_s10 + $0x20] sm:$0xff] %v454_v12  ;;  %v455_v14 = vsel %vm391_vm5, %v359_v33, %v423_v61  ;;  %v425_v17 = vmul.f32 0.2, %v361_v35  ;;  %v324_v39 = vmul.f32 %v812_v9, %v286_v41  ;;  %v325_v27 = vmul.f32 %v812_v9, %v287_v42 }
  0x29   : > { %487 = vst [vmem:[%s854_s10 + $0x28] sm:$0xff] %v455_v14  ;;  %v456_v28 = vsel %vm392_vm6, %v360_v34, %v424_v11  ;;  %v326_v32 = vmul.f32 %v812_v9, %v288_v46  ;;  %v327_v12 = vmul.f32 %v812_v9, %v289_v47  ;;  %v328_v20 = vmul.f32 %v812_v9, %v290_v48 }
  0x2a   : > { %488 = vst [vmem:[%s854_s10 + $0x30] sm:$0xff] %v456_v28  ;;  %v457_v21 = vsel %vm393_vm7, %v361_v35, %v425_v17  ;;  %v362_v41 = vadd.f32 %v823_v15, %v324_v39  ;;  %v363_v42 = vadd.f32 %v823_v15, %v325_v27  ;;  %v329_v22 = vmul.f32 %v812_v9, %v291_v49 }
  0x2b   : > { %489 = vst [vmem:[%s854_s10 + $0x38] sm:$0xff] %v457_v21  ;;  %v364_v23 = vadd.f32 %v823_v15, %v326_v32  ;;  %v365_v46 = vadd.f32 %v823_v15, %v327_v12  ;;  %v366_v24 = vadd.f32 %v823_v15, %v328_v20  ;;  %v330_v47 = vmul.f32 %v812_v9, %v292_v54 }
  0x2c   : > { %vm394_vm8 = vcmp.gt.f32.partialorder %v362_v41, 0.0  ;;  %v426_v48 = vmul.f32 0.2, %v362_v41  ;;  %vm395_vm9 = vcmp.gt.f32.partialorder %v363_v42, 0.0  ;;  %v427_v25 = vmul.f32 0.2, %v363_v42 }
  0x2d   : > { %vm396_vm10 = vcmp.gt.f32.partialorder %v364_v23, 0.0  ;;  %v428_v49 = vmul.f32 0.2, %v364_v23  ;;  %vm397_vm11 = vcmp.gt.f32.partialorder %v365_v46, 0.0  ;;  %v429_v11 = vmul.f32 0.2, %v365_v46 }
  0x2e   : > { %v458_v33 = vsel %vm394_vm8, %v362_v41, %v426_v48  ;;  %v459_v34 = vsel %vm395_vm9, %v363_v42, %v427_v25  ;;  %vm398_vm12 = vcmp.gt.f32.partialorder %v366_v24, 0.0  ;;  %v430_v35 = vmul.f32 0.2, %v366_v24 }
  0x2f   : > { %490 = vst [vmem:[%s854_s10 + $0x40] sm:$0xff] %v458_v33  ;;  %491 = vst [vmem:[%s854_s10 + $0x48] sm:$0xff] %v459_v34  ;;  %v460_v29 = vsel %vm396_vm10, %v364_v23, %v428_v49  ;;  %v461_v40 = vsel %vm397_vm11, %v365_v46, %v429_v11  ;;  %v367_v54 = vadd.f32 %v823_v15, %v329_v22 }
  0x30   : > { %v368_v16 = vadd.f32 %v823_v15, %v330_v47  ;;  %492 = vst [vmem:[%s854_s10 + $0x50] sm:$0xff] %v460_v29  ;;  %493 = vst [vmem:[%s854_s10 + $0x58] sm:$0xff] %v461_v40  ;;  %v462_v7 = vsel %vm398_vm12, %v366_v24, %v430_v35  ;;  %v331_v18 = vmul.f32 %v812_v9, %v293_v55 }
  0x31   : > { %v332_v10 = vmul.f32 %v812_v9, %v294_v56  ;;  %v333_v19 = vmul.f32 %v812_v9, %v295_v57  ;;  %494 = vst [vmem:[%s854_s10 + $0x60] sm:$0xff] %v462_v7  ;;  %vm399_vm13 = vcmp.gt.f32.partialorder %v367_v54, 0.0  ;;  %v431_v26 = vmul.f32 0.2, %v367_v54 }
  0x32   : > { %vm400_vm14 = vcmp.gt.f32.partialorder %v368_v16, 0.0  ;;  %v432_v53 = vmul.f32 0.2, %v368_v16  ;;  %v369_v30 = vadd.f32 %v823_v15, %v331_v18  ;;  %v334_v56 = vmul.f32 %v812_v9, %v296_v62 }
  0x33   : > { %v370_v55 = vadd.f32 %v823_v15, %v332_v10  ;;  %v371_v31 = vadd.f32 %v823_v15, %v333_v19  ;;  %v463_v36 = vsel %vm399_vm13, %v367_v54, %v431_v26  ;;  %v335_v57 = vmul.f32 %v812_v9, %v297_v63 }
  0x34   : > { %v464_v61 = vsel %vm400_vm14, %v368_v16, %v432_v53  ;;  %v336_v14 = vmul.f32 %v812_v9, %v298_v0  ;;  %495 = vst [vmem:[%s854_s10 + $0x68] sm:$0xff] %v463_v36  ;;  %vm401_vm15 = vcmp.gt.f32.partialorder %v369_v30, 0.0  ;;  %v433_v37 = vmul.f32 0.2, %v369_v30 }
  0x35   : > { %496 = vst [vmem:[%s854_s10 + $0x70] sm:$0xff] %v464_v61  ;;  %vm402_vm0 = vcmp.gt.f32.partialorder %v370_v55, 0.0  ;;  %v434_v62 = vmul.f32 0.2, %v370_v55  ;;  %vm403_vm1 = vcmp.gt.f32.partialorder %v371_v31, 0.0  ;;  %v372_v38 = vadd.f32 %v823_v15, %v334_v56 }
  0x36   : > { %v435_v17 = vmul.f32 0.2, %v371_v31  ;;  %v373_v63 = vadd.f32 %v823_v15, %v335_v57  ;;  %v465_v39 = vsel %vm401_vm15, %v369_v30, %v433_v37  ;;  %v374_v43 = vadd.f32 %v823_v15, %v336_v14 }
  0x37   : > { %v466_v27 = vsel %vm402_vm0, %v370_v55, %v434_v62  ;;  %v337_v0 = vmul.f32 %v812_v9, %v299_v4  ;;  %497 = vst [vmem:[%s854_s10 + $0x78] sm:$0xff] %v465_v39  ;;  %vm404_vm2 = vcmp.gt.f32.partialorder %v372_v38, 0.0  ;;  %v436_v32 = vmul.f32 0.2, %v372_v38 }
  0x38   : > { %498 = vst [vmem:[%s854_s10 + $0x80] sm:$0xff] %v466_v27  ;;  %v467_v28 = vsel %vm403_vm1, %v371_v31, %v435_v17  ;;  %vm405_vm3 = vcmp.gt.f32.partialorder %v373_v63, 0.0  ;;  %v437_v12 = vmul.f32 0.2, %v373_v63  ;;  %vm406_vm4 = vcmp.gt.f32.partialorder %v374_v43, 0.0 }
  0x39   : > { %499 = vst [vmem:[%s854_s10 + $0x88] sm:$0xff] %v467_v28  ;;  %v438_v20 = vmul.f32 0.2, %v374_v43  ;;  %v375_v21 = vadd.f32 %v823_v15, %v337_v0  ;;  %v468_v41 = vsel %vm404_vm2, %v372_v38, %v436_v32  ;;  %v338_v44 = vmul.f32 %v812_v9, %v300_v5 }
  0x3a   : > { %v339_v4 = vmul.f32 %v812_v9, %v301_v6  ;;  %v340_v42 = vmul.f32 %v812_v9, %v302_v8  ;;  %500 = vst [vmem:[%s854_s10 + $0x90] sm:$0xff] %v468_v41  ;;  %v469_v22 = vsel %vm405_vm3, %v373_v63, %v437_v12  ;;  %v1017_v6 = vsub.f32 %v768_v52, %v665_v13 }
  0x3b   : > { %v470_v23 = vsel %vm406_vm4, %v374_v43, %v438_v20  ;;  %vm407_vm5 = vcmp.gt.f32.partialorder %v375_v21, 0.0  ;;  %v439_v46 = vmul.f32 0.2, %v375_v21  ;;  %501 = vst [vmem:[%s854_s10 + $0x98] sm:$0xff] %v469_v22  ;;  %v376_v45 = vadd.f32 %v823_v15, %v338_v44 }
  0x3c   : > { %502 = vst [vmem:[%s854_s10 + $0xa0] sm:$0xff] %v470_v23  ;;  %v377_v5 = vadd.f32 %v823_v15, %v339_v4  ;;  %v378_v50 = vadd.f32 %v823_v15, %v340_v42  ;;  %v341_v51 = vmul.f32 %v812_v9, %v1017_v6  ;;  %v1018_v24 = vsub.f32 %v779_v58, %v665_v13 }
  0x3d   : > { %v471_v8 = vsel %vm407_vm5, %v375_v21, %v439_v46  ;;  %v1019_v48 = vsub.f32 %v782_v59, %v665_v13  ;;  %v1020_v49 = vsub.f32 %v785_v60, %v665_v13  ;;  %vm408_vm6 = vcmp.gt.f32.partialorder %v376_v45, 0.0 }
  0x3e   : > { %v342_v47 = vmul.f32 %v812_v9, %v1018_v24  ;;  %503 = vst [vmem:[%s854_s10 + $0xa8] sm:$0xff] %v471_v8  ;;  %v440_v11 = vmul.f32 0.2, %v376_v45  ;;  %vm409_vm7 = vcmp.gt.f32.partialorder %v377_v5, 0.0  ;;  %v441_v58 = vmul.f32 0.2, %v377_v5 }
  0x3f   : > { %v343_v25 = vmul.f32 %v812_v9, %v1019_v48  ;;  %v344_v52 = vmul.f32 %v812_v9, %v1020_v49  ;;  %vm410_vm8 = vcmp.gt.f32.partialorder %v378_v50, 0.0  ;;  %v442_v33 = vmul.f32 0.2, %v378_v50 }
  0x40   : > { %v379_v34 = vadd.f32 %v823_v15, %v341_v51  ;;  %v380_v59 = vadd.f32 %v823_v15, %v342_v47  ;;  %v472_v35 = vsel %vm408_vm6, %v376_v45, %v440_v11  ;;  %v473_v29 = vsel %vm409_vm7, %v377_v5, %v441_v58 }
  0x41   : > { %v381_v40 = vadd.f32 %v823_v15, %v343_v25  ;;  %v382_v60 = vadd.f32 %v823_v15, %v344_v52  ;;  %504 = vst [vmem:[%s854_s10 + $0xb0] sm:$0xff] %v472_v35  ;;  %505 = vst [vmem:[%s854_s10 + $0xb8] sm:$0xff] %v473_v29  ;;  %v474_v54 = vsel %vm410_vm8, %v378_v50, %v442_v33 }
  0x42   : > { %vm411_vm9 = vcmp.gt.f32.partialorder %v379_v34, 0.0  ;;  %v443_v16 = vmul.f32 0.2, %v379_v34  ;;  %vm412_vm10 = vcmp.gt.f32.partialorder %v380_v59, 0.0  ;;  %506 = vst [vmem:[%s854_s10 + $0xc0] sm:$0xff] %v474_v54  ;;  %v1021_v26 = vsub.f32 %v794_v1, %v665_v13 }
  0x43   : > { %v444_v7 = vmul.f32 0.2, %v380_v59  ;;  %vm413_vm11 = vcmp.gt.f32.partialorder %v381_v40, 0.0  ;;  %v445_v18 = vmul.f32 0.2, %v381_v40  ;;  %vm414_vm12 = vcmp.gt.f32.partialorder %v382_v60, 0.0 }
  0x44   : > { %v475_v10 = vsel %vm411_vm9, %v379_v34, %v443_v16  ;;  %v446_v19 = vmul.f32 0.2, %v382_v60  ;;  %v345_v53 = vmul.f32 %v812_v9, %v1021_v26  ;;  %v1022_v30 = vsub.f32 %v797_v2, %v665_v13 }
  0x45   : > { %507 = vst [vmem:[%s854_s10 + $0xc8] sm:$0xff] %v475_v10  ;;  %v476_v31 = vsel %vm412_vm10, %v380_v59, %v444_v7  ;;  %v477_v56 = vsel %vm413_vm11, %v381_v40, %v445_v18  ;;  %v1023_v36 = vsub.f32 %v800_v3, %v665_v13 }
  0x46   : > { %v346_v55 = vmul.f32 %v812_v9, %v1022_v30  ;;  %508 = vst [vmem:[%s854_s10 + $0xd0] sm:$0xff] %v476_v31  ;;  %509 = vst [vmem:[%s854_s10 + $0xd8] sm:$0xff] %v477_v56  ;;  %v478_v1 = vsel %vm414_vm12, %v382_v60, %v446_v19  ;;  %v383_v57 = vadd.f32 %v823_v15, %v345_v53 }
  0x47   : > { %v347_v61 = vmul.f32 %v812_v9, %v1023_v36  ;;  %510 = vst [vmem:[%s854_s10 + $0xe0] sm:$0xff] %v478_v1 }
  0x48   : > { %v384_v2 = vadd.f32 %v823_v15, %v346_v55  ;;  %vm415_vm13 = vcmp.gt.f32.partialorder %v383_v57, 0.0  ;;  %v447_v37 = vmul.f32 0.2, %v383_v57 }
  0x49   : > { %v385_v14 = vadd.f32 %v823_v15, %v347_v61 }
  0x4a   : > { %vm416_vm14 = vcmp.gt.f32.partialorder %v384_v2, 0.0  ;;  %v448_v62 = vmul.f32 0.2, %v384_v2  ;;  %v479_v3 = vsel %vm415_vm13, %v383_v57, %v447_v37 }
  0x4b   : > { %vm417_vm15 = vcmp.gt.f32.partialorder %v385_v14, 0.0  ;;  %v449_v13 = vmul.f32 0.2, %v385_v14  ;;  %511 = vst [vmem:[%s854_s10 + $0xe8] sm:$0xff] %v479_v3 }
  0x4c   : > { %v480_v9 = vsel %vm416_vm14, %v384_v2, %v448_v62 }
  0x4d   : > { %512 = vst [vmem:[%s854_s10 + $0xf0] sm:$0xff] %v480_v9  ;;  %v481_v17 = vsel %vm417_vm15, %v385_v14, %v449_v13 }
  0x4e   : > { %513 = vst [vmem:[%s854_s10 + $0xf8] sm:$0xff] %v481_v17 }
  0x4f PF: > { %s15_s18 = sadd.s32 1, %s598_s18  }
  0x50   : > { %p12_p4 = scmp.ge.s32.totalorder %s15_s18, 4  }
  0x52   :  { %14 = sbr.rel (!%p12_p4) target bundleno = 1 (0x1), region = 70 }

// kernel: gross_residual_forward.4
= control target key start
LH: loop header
LB: loop body
LE: loop exit
PB: predicated region body
PF: predicated region fallthrough
CT: control target
= control target key end

     0   :  { %s4019_s18 = smov 0   ;;  %s5035_s0 = inlined_call_operand.vmem [shape: bf16[512,1152], index: 0, kind: input, shape index: {}]   ;;  %s5036_s1 = inlined_call_operand.vmem [shape: bf16[1152,128], index: 1, kind: input, shape index: {}]   ;;  %s5037_s2 = inlined_call_operand.vmem [shape: f32[1,128], index: 2, kind: input, shape index: {}]   ;;  %s5038_s3 = inlined_call_operand.vmem [shape: f32[512,128], index: 3, kind: output, shape index: {0}]   ;;  %s5039_s4 = inlined_call_operand.vmem [shape: f32[1,128], index: 4, kind: output, shape index: {1}]   ;;  %s5040_s5 = inlined_call_operand.vmem [shape: f32[1,128], index: 5, kind: output, shape index: {2}]  }
   0x1 LB: > { %s4025_s19 = sadd.s32 4294967295, %s3986_s18   ;;  %p2928_p0 = scmp.ge.s32.totalorder %s3986_s18, 1  ;;  %s3986_s18 = sphi %s4019_s18, %s16_s18  }
   0x2   : > { %p184_p1 = scmp.lt.s32.totalorder %s3986_s18, 3 }
   0x4   : > { %p185_p2 = pnand %p2928_p0, %p184_p1 }
   0x5   : > { %s2929_s20 = sshll.u32 (!%p185_p2), %s4025_s19, 5  ;;  %p2933_p4 = scmp.ne.s32.totalorder (!%p185_p2), %s4025_s19, 0 }
   0x6   : > { %188 = sbr.rel (%p185_p2) target bundleno = 575 (0x23f), region = 32  ;;  %p214_p3 = scmp.lt.s32.totalorder (!%p185_p2), %s2929_s20, 63 }
   0xd   : > { %s5042_s20 = smov (!%p214_p3, %s2929_s20), 63  ;;  %230 = sbr.rel (%p2933_p4) target bundleno = 20 (0x14), region = 36 }
   0xe   : > { %s3690_s21 = smul.u32 36, %s5042_s20  ;;  %s2932_s22 = sshll.u32 %s5042_s20, 3  ;;  %v3988_v0 = vmov (!%p2933_p4), 0.0  }
   0xf   : > { %s4033_s25 = scalar_lea.vmem %s5038_s3, %s2932_s22  ;;  %231 = vst [vmem:[%s5039_s4] sm:$0x1] (!%p2933_p4), %v3988_v0  ;;  %232 = vst [vmem:[%s5040_s5] sm:$0x1] (!%p2933_p4), %v3988_v0 }
  0x10   : > { %s4038_s28 = scalar_lea.vmem %s5035_s0, %s3690_s21 }
  0x14 PF: > { %v3700_v1 = vld [vmem:[%s5036_s1 + $0x40] sm:$0xff]   ;;  %v3702_v3 = vld [vmem:[%s5036_s1 + $0x48] sm:$0xff]   ;;  %v3704_v5 = vld [vmem:[%s5036_s1 + $0x50] sm:$0xff]  }
  0x15   : > { %v3701_v2 = vld [vmem:[%s5036_s1] sm:$0xff]   ;;  %3154 = vmatprep.subr.bf16.mxu0 %v3700_v1  ;;  %3674 = vmatprep.subr.bf16.mxu1 %v3700_v1  ;;  %v3703_v4 = vld [vmem:[%s5036_s1 + $0x8] sm:$0xff]   ;;  %v3705_v6 = vld [vmem:[%s5036_s1 + $0x10] sm:$0xff]  }
  0x16   : > { %3155 = vmatpush3.bf16.msra.mxu0 %v3701_v2  ;;  %3682 = vmatpush3.bf16.msra.mxu1 %v3701_v2  ;;  %v3706_v7 = vld [vmem:[%s5036_s1 + $0x58] sm:$0xff]   ;;  %v3708_v9 = vld [vmem:[%s5036_s1 + $0x60] sm:$0xff]   ;;  %v3710_v11 = vld [vmem:[%s5036_s1 + $0x68] sm:$0xff]  }
  0x17   : > { %3156 = vmatprep.subr.bf16.mxu0 %v3702_v3  ;;  %3675 = vmatprep.subr.bf16.mxu1 %v3702_v3  ;;  %v3707_v8 = vld [vmem:[%s5036_s1 + $0x18] sm:$0xff]   ;;  %v3709_v10 = vld [vmem:[%s5036_s1 + $0x20] sm:$0xff]   ;;  %v3711_v14 = vld [vmem:[%s5036_s1 + $0x28] sm:$0xff]  }
  0x18   : > { %v3718_v12 = vld [vmem:[%s4038_s28 + $0x4] ss:$36 sps:$4 sm:$0xff]   ;;  %v3712_v15 = vld [vmem:[%s5036_s1 + $0x70] sm:$0xff]   ;;  %v3714_v17 = vld [vmem:[%s5036_s1 + $0x78] sm:$0xff]  }
  0x19   : > { %v3721_v13 = vld [vmem:[%s4038_s28 + $0x364] ss:$36 sps:$4 sm:$0xff]   ;;  %1744 = vmatprep.mubr.bf16.mxu0 %v3718_v12  ;;  %v3713_v16 = vld [vmem:[%s5036_s1 + $0x30] sm:$0xff]   ;;  %v3715_v18 = vld [vmem:[%s5036_s1 + $0x38] sm:$0xff]  }
  0x1a   : > { %3157 = vmatpush3.bf16.msra.mxu0 %v3703_v4  ;;  %3683 = vmatpush3.bf16.msra.mxu1 %v3703_v4  ;;  %v3722_v19 = vld [vmem:[%s5036_s1 + $0xc0] sm:$0xff]   ;;  %v3726_v25 = vld [vmem:[%s5036_s1 + $0xc8] sm:$0xff]   ;;  %v3734_v33 = vld [vmem:[%s5036_s1 + $0xd0] sm:$0xff]  }
  0x1b   : > { %3158 = vmatprep.subr.bf16.mxu0 %v3704_v5  ;;  %3676 = vmatprep.subr.bf16.mxu1 %v3704_v5  ;;  %v3716_v20 = vld [vmem:[%s4038_s28] ss:$36 sps:$4 sm:$0xff]   ;;  %v3728_v26 = vld [vmem:[%s4038_s28 + $0x4c] ss:$36 sps:$4 sm:$0xff]   ;;  %v3736_v35 = vld [vmem:[%s5036_s1 + $0xd8] sm:$0xff]  }
  0x1c   : > { %1840 = vmatprep.mubr.bf16.mxu1 %v3721_v13  ;;  %v3719_v21 = vld [vmem:[%s4038_s28 + $0x360] ss:$36 sps:$4 sm:$0xff]   ;;  %v3730_v27 = vld [vmem:[%s4038_s28 + $0x3ac] ss:$36 sps:$4 sm:$0xff]   ;;  %v3740_v36 = vld [vmem:[%s4038_s28 + $0x94] ss:$36 sps:$4 sm:$0xff]  }
  0x1d   : > { %v3723_v22 = vld [vmem:[%s5036_s1 + $0x140] sm:$0xff]   ;;  %v3737_v28 = vld [vmem:[%s5036_s1 + $0x148] sm:$0xff]   ;;  %v3735_v34 = vld [vmem:[%s5036_s1 + $0x90] sm:$0xff]  }
  0x1e   : > { %3159 = vmatpush3.bf16.msra.mxu0 %v3705_v6  ;;  %3684 = vmatpush3.bf16.msra.mxu1 %v3705_v6  ;;  %v3724_v23 = vld [vmem:[%s5036_s1 + $0x80] sm:$0xff]   ;;  %v3727_v29 = vld [vmem:[%s5036_s1 + $0x88] sm:$0xff]   ;;  %v3742_v37 = vld [vmem:[%s4038_s28 + $0x3f4] ss:$36 sps:$4 sm:$0xff]  }
  0x1f   : > { %3160 = vmatprep.subr.bf16.mxu0 %v3706_v7  ;;  %3677 = vmatprep.subr.bf16.mxu1 %v3706_v7  ;;  %v3725_v24 = vld [vmem:[%s5036_s1 + $0x100] sm:$0xff]   ;;  %v3739_v30 = vld [vmem:[%s5036_s1 + $0x108] sm:$0xff]   ;;  %v3738_v38 = vld [vmem:[%s5036_s1 + $0x98] sm:$0xff]  }
  0x20   : > { %v3732_v31 = vld [vmem:[%s4038_s28 + $0x48] ss:$36 sps:$4 sm:$0xff]   ;;  %v3746_v39 = vld [vmem:[%s5036_s1 + $0xe0] sm:$0xff]   ;;  %v3744_v40 = vld [vmem:[%s4038_s28 + $0x90] ss:$36 sps:$4 sm:$0xff]  }
  0x21   : > { %v3733_v32 = vld [vmem:[%s4038_s28 + $0x3a8] ss:$36 sps:$4 sm:$0xff]   ;;  %v3745_v41 = vld [vmem:[%s4038_s28 + $0x3f0] ss:$36 sps:$4 sm:$0xff]   ;;  %v3747_v43 = vld [vmem:[%s5036_s1 + $0xa0] sm:$0xff]  }
  0x22   : > { %3161 = vmatpush3.bf16.msra.mxu0 %v3707_v8  ;;  %3685 = vmatpush3.bf16.msra.mxu1 %v3707_v8  ;;  %v3757_v42 = vld [vmem:[%s5036_s1 + $0x150] sm:$0xff]   ;;  %v3748_v44 = vld [vmem:[%s5036_s1 + $0xe8] sm:$0xff]   ;;  %v3750_v46 = vld [vmem:[%s4038_s28 + $0xdc] ss:$36 sps:$4 sm:$0xff]  }
  0x23   : > { %3162 = vmatprep.subr.bf16.mxu0 %v3708_v9  ;;  %3678 = vmatprep.subr.bf16.mxu1 %v3708_v9  ;;  %v3759_v45 = vld [vmem:[%s5036_s1 + $0x110] sm:$0xff]   ;;  %v3752_v47 = vld [vmem:[%s4038_s28 + $0x43c] ss:$36 sps:$4 sm:$0xff]   ;;  %v3749_v48 = vld [vmem:[%s5036_s1 + $0xa8] sm:$0xff]  }
  0x24   : > { %v3754_v49 = vld [vmem:[%s4038_s28 + $0xd8] ss:$36 sps:$4 sm:$0xff]   ;;  %v3756_v51 = vld [vmem:[%s5036_s1 + $0xf0] sm:$0xff]   ;;  %v3762_v53 = vld [vmem:[%s4038_s28 + $0x124] ss:$36 sps:$4 sm:$0xff]  }
  0x25   : > { %v3755_v50 = vld [vmem:[%s4038_s28 + $0x438] ss:$36 sps:$4 sm:$0xff]   ;;  %v3758_v52 = vld [vmem:[%s5036_s1 + $0xb0] sm:$0xff]   ;;  %v3764_v59 = vld [vmem:[%s4038_s28 + $0x8] ss:$36 sps:$4 sm:$0xff]  }
  0x26   : > { %3163 = vmatpush3.bf16.msra.mxu0 %v3709_v10  ;;  %3686 = vmatpush3.bf16.msra.mxu1 %v3709_v10  ;;  %v3760_v54 = vld [vmem:[%s5036_s1 + $0xf8] sm:$0xff]   ;;  %v3766_v57 = vld [vmem:[%s4038_s28 + $0xc] ss:$36 sps:$4 sm:$0xff]   ;;  %v3767_v60 = vld [vmem:[%s4038_s28 + $0x120] ss:$36 sps:$4 sm:$0xff]  }
  0x27   : > { %3164 = vmatprep.subr.bf16.mxu0 %v3710_v11  ;;  %3679 = vmatprep.subr.bf16.mxu1 %v3710_v11  ;;  %v3770_v55 = vld [vmem:[%s5036_s1 + $0x158] sm:$0xff]   ;;  %v3768_v61 = vld [vmem:[%s5036_s1 + $0x1c0] sm:$0xff]   ;;  %v3772_v63 = vld [vmem:[%s4038_s28 + $0x16c] ss:$36 sps:$4 sm:$0xff]  }
  0x28   : > { %v3771_v56 = vld [vmem:[%s5036_s1 + $0x118] sm:$0xff]   ;;  %v3769_v62 = vld [vmem:[%s5036_s1 + $0x180] sm:$0xff]   ;;  %v3785_v3 = vld [vmem:[%s5036_s1 + $0x1c8] sm:$0xff]  }
  0x29   : > { %v3761_v58 = vld [vmem:[%s5036_s1 + $0xb8] sm:$0xff]   ;;  %v3784_v0 = vld [vmem:[%s5036_s1 + $0x160] sm:$0xff]   ;;  %v3787_v4 = vld [vmem:[%s5036_s1 + $0x188] sm:$0xff]  }
  0x2a   : > { %3165 = vmatpush3.bf16.msra.mxu0 %v3711_v14  ;;  %3687 = vmatpush3.bf16.msra.mxu1 %v3711_v14  ;;  %v3774_v1 = vld [vmem:[%s4038_s28 + $0x54] ss:$36 sps:$4 sm:$0xff]   ;;  %v3786_v2 = vld [vmem:[%s5036_s1 + $0x120] sm:$0xff]   ;;  %v3776_v5 = vld [vmem:[%s4038_s28 + $0x168] ss:$36 sps:$4 sm:$0xff]  }
  0x2b   : > { %3166 = vmatprep.subr.bf16.mxu0 %v3712_v15  ;;  %3680 = vmatprep.subr.bf16.mxu1 %v3712_v15  ;;  %v3794_v6 = vld [vmem:[%s5036_s1 + $0x168] sm:$0xff]   ;;  %v3777_v8 = vld [vmem:[%s4038_s28 + $0x50] ss:$36 sps:$4 sm:$0xff]   ;;  %v3780_v10 = vld [vmem:[%s4038_s28 + $0x9c] ss:$36 sps:$4 sm:$0xff]  }
  0x2c   : > { %v3795_v7 = vld [vmem:[%s5036_s1 + $0x128] sm:$0xff]   ;;  %v3778_v9 = vld [vmem:[%s4038_s28 + $0x1b4] ss:$36 sps:$4 sm:$0xff]   ;;  %v3788_v15 = vld [vmem:[%s4038_s28 + $0x1fc] ss:$36 sps:$4 sm:$0xff]  }
  0x2d   : > { %v3802_v11 = vld [vmem:[%s5036_s1 + $0x1d0] sm:$0xff]   ;;  %v3783_v14 = vld [vmem:[%s4038_s28 + $0x98] ss:$36 sps:$4 sm:$0xff]  }
  0x2e   : > { %3167 = vmatpush3.bf16.msra.mxu0 %v3713_v16  ;;  %3688 = vmatpush3.bf16.msra.mxu1 %v3713_v16  ;;  %v3803_v12 = vld [vmem:[%s5036_s1 + $0x190] sm:$0xff]  }
  0x2f   : > { %3168 = vmatprep.subr.bf16.mxu0 %v3714_v17  ;;  %3681 = vmatprep.subr.bf16.mxu1 %v3714_v17  ;;  %v3782_v13 = vld [vmem:[%s4038_s28 + $0x1b0] ss:$36 sps:$4 sm:$0xff]  }
  0x30   : > { %v3810_v16 = vld [vmem:[%s5036_s1 + $0x170] sm:$0xff]  }
  0x31   : > { %v3811_v17 = vld [vmem:[%s5036_s1 + $0x130] sm:$0xff]  }
  0x32   : > { %3169 = vmatpush3.bf16.msra.mxu0 %v3715_v18  ;;  %3689 = vmatpush3.bf16.msra.mxu1 %v3715_v18  ;;  %v3790_v18 = vld [vmem:[%s4038_s28 + $0xe4] ss:$36 sps:$4 sm:$0xff]  }
  0x33   : > { %3266 = vmatprep.subr.bf16.mxu1 %v3722_v19  ;;  %3378 = vmatprep.subr.bf16.mxu0 %v3723_v22  ;;  %v3818_v19 = vld [vmem:[%s5036_s1 + $0x1d8] sm:$0xff]  }
  0x34   : > { %v3820_v22 = vld [vmem:[%s5036_s1 + $0x178] sm:$0xff]  }
  0x35   : > { %1745 = vmatmul.mubr.bf16.vlgmr.msra.gmra.mrb[0].mxu0 %v3716_v20  ;;  %1841 = vmatmul.mubr.bf16.vlgmr.msra.gmra.mrb[0].mxu1 %v3719_v21  ;;  %v3819_v20 = vld [vmem:[%s5036_s1 + $0x198] sm:$0xff]  }
  0x36   : > { %3267 = vmatpush3.bf16.msra.mxu1 %v3724_v23  ;;  %3379 = vmatpush3.bf16.msra.mxu0 %v3725_v24  ;;  %v3792_v21 = vld [vmem:[%s4038_s28 + $0x1f8] ss:$36 sps:$4 sm:$0xff]   ;;  %v3793_v24 = vld [vmem:[%s4038_s28 + $0xe0] ss:$36 sps:$4 sm:$0xff]  }
  0x37   : > { %3268 = vmatprep.subr.bf16.mxu1 %v3726_v25  ;;  %1752 = vmatprep.mubr.bf16.mxu0 %v3728_v26  ;;  %v3821_v23 = vld [vmem:[%s5036_s1 + $0x138] sm:$0xff]   ;;  %v3796_v25 = vld [vmem:[%s4038_s28 + $0x244] ss:$36 sps:$4 sm:$0xff]   ;;  %v3798_v26 = vld [vmem:[%s4038_s28 + $0x12c] ss:$36 sps:$4 sm:$0xff]  }
  0x38   : > { %1848 = vmatprep.mubr.bf16.mxu1 %v3730_v27  ;;  %3380 = vmatprep.subr.bf16.mxu0 %v3737_v28  ;;  %v3834_v27 = vld [vmem:[%s5036_s1 + $0x1e0] sm:$0xff]  }
  0x39   : > { %v3800_v28 = vld [vmem:[%s4038_s28 + $0x240] ss:$36 sps:$4 sm:$0xff]  }
  0x3a   : > { %3269 = vmatpush3.bf16.msra.mxu1 %v3727_v29  ;;  %3381 = vmatpush3.bf16.msra.mxu0 %v3739_v30  ;;  %v3835_v29 = vld [vmem:[%s5036_s1 + $0x200] sm:$0xff]  }
  0x3b   : > { %3270 = vmatprep.subr.bf16.mxu1 %v3734_v33  ;;  %3382 = vmatprep.subr.bf16.mxu0 %v3757_v42  ;;  %v3836_v30 = vld [vmem:[%s5036_s1 + $0x1a0] sm:$0xff]   ;;  %v3806_v33 = vld [vmem:[%s4038_s28 + $0x174] ss:$36 sps:$4 sm:$0xff]  }
  0x3c   : > { %v3864_v42 = vld [vmem:[%s5036_s1 + $0x1f0] sm:$0xff]  }
  0x3d   : > { %1753 = vmatmul.mubr.bf16.gmra.mrb[4].mxu0 %v3732_v31  ;;  %1849 = vmatmul.mubr.bf16.gmra.mrb[4].mxu1 %v3733_v32  ;;  %v3801_v31 = vld [vmem:[%s4038_s28 + $0x128] ss:$36 sps:$4 sm:$0xff]  }
  0x3e   : > { %3271 = vmatpush3.bf16.msra.mxu1 %v3735_v34  ;;  %1760 = vmatprep.mubr.bf16.mxu0 %v3740_v36  ;;  %v3804_v32 = vld [vmem:[%s4038_s28 + $0x28c] ss:$36 sps:$4 sm:$0xff]  }
  0x3f   : > { %3272 = vmatprep.subr.bf16.mxu1 %v3736_v35  ;;  %1856 = vmatprep.mubr.bf16.mxu1 %v3742_v37  ;;  %v3849_v34 = vld [vmem:[%s5036_s1 + $0x1e8] sm:$0xff]   ;;  %v3809_v36 = vld [vmem:[%s4038_s28 + $0x170] ss:$36 sps:$4 sm:$0xff]  }
  0x40   : > { %3383 = vmatpush3.bf16.msra.mxu0 %v3759_v45  ;;  %v3808_v35 = vld [vmem:[%s4038_s28 + $0x288] ss:$36 sps:$4 sm:$0xff]  }
  0x41   : > { %3384 = vmatprep.subr.bf16.mxu0 %v3770_v55  ;;  %v3851_v37 = vld [vmem:[%s5036_s1 + $0x1a8] sm:$0xff]   ;;  %v3839_v55 = vld [vmem:[%s4038_s28 + $0x5c] ss:$36 sps:$4 sm:$0xff]  }
  0x42   : > { %3273 = vmatpush3.bf16.msra.mxu1 %v3738_v38  ;;  %v3812_v38 = vld [vmem:[%s4038_s28 + $0x2d4] ss:$36 sps:$4 sm:$0xff]   ;;  %v3824_v45 = vld [vmem:[%s4038_s28 + $0x204] ss:$36 sps:$4 sm:$0xff]  }
  0x43   : > { %3274 = vmatprep.subr.bf16.mxu1 %v3746_v39  ;;  %v3814_v39 = vld [vmem:[%s4038_s28 + $0x1bc] ss:$36 sps:$4 sm:$0xff]  }
  0x44   : > { %3385 = vmatpush3.bf16.msra.mxu0 %v3771_v56  ;;  %v3850_v56 = vld [vmem:[%s5036_s1 + $0x208] sm:$0xff]  }
  0x45   : > { %1761 = vmatmul.mubr.bf16.gmra.mrb[8].mxu0 %v3744_v40  ;;  %1857 = vmatmul.mubr.bf16.gmra.mrb[8].mxu1 %v3745_v41  ;;  %v3816_v40 = vld [vmem:[%s4038_s28 + $0x2d0] ss:$36 sps:$4 sm:$0xff]   ;;  %v3817_v41 = vld [vmem:[%s4038_s28 + $0x1b8] ss:$36 sps:$4 sm:$0xff]  }
  0x46   : > { %3275 = vmatpush3.bf16.msra.mxu1 %v3747_v43  ;;  %1768 = vmatprep.mubr.bf16.mxu0 %v3750_v46  ;;  %v3822_v43 = vld [vmem:[%s4038_s28 + $0x31c] ss:$36 sps:$4 sm:$0xff]  }
  0x47   : > { %3276 = vmatprep.subr.bf16.mxu1 %v3748_v44  ;;  %1864 = vmatprep.mubr.bf16.mxu1 %v3752_v47  ;;  %v3866_v44 = vld [vmem:[%s5036_s1 + $0x1b0] sm:$0xff]   ;;  %v3826_v46 = vld [vmem:[%s4038_s28 + $0x318] ss:$36 sps:$4 sm:$0xff]   ;;  %v3827_v47 = vld [vmem:[%s4038_s28 + $0x200] ss:$36 sps:$4 sm:$0xff]  }
  0x48   : > { %3386 = vmatprep.subr.bf16.mxu0 %v3784_v0  ;;  %v3847_v0 = vld [vmem:[%s4038_s28 + $0x2d8] ss:$36 sps:$4 sm:$0xff]  }
  0x49   : > { %3387 = vmatpush3.bf16.msra.mxu0 %v3786_v2  ;;  %v3852_v2 = vld [vmem:[%s4038_s28 + $0x324] ss:$36 sps:$4 sm:$0xff]  }
  0x4a   : > { %3277 = vmatpush3.bf16.msra.mxu1 %v3749_v48  ;;  %3388 = vmatprep.subr.bf16.mxu0 %v3794_v6  ;;  %v3879_v48 = vld [vmem:[%s5036_s1 + $0x1f8] sm:$0xff]   ;;  %v3857_v6 = vld [vmem:[%s4038_s28 + $0xe8] ss:$36 sps:$4 sm:$0xff]  }
  0x4b   : > { %3278 = vmatprep.subr.bf16.mxu1 %v3756_v51  ;;  %v3832_v51 = vld [vmem:[%s4038_s28 + $0x14] ss:$36 sps:$4 sm:$0xff]  }
  0x4d   : > { %1769 = vmatmul.mubr.bf16.gmra.mrb[12].mxu0 %v3754_v49  ;;  %1865 = vmatmul.mubr.bf16.gmra.mrb[12].mxu1 %v3755_v50  ;;  %v3828_v49 = vld [vmem:[%s4038_s28 + $0x24c] ss:$36 sps:$4 sm:$0xff]   ;;  %v3881_v50 = vld [vmem:[%s5036_s1 + $0x1b8] sm:$0xff]  }
  0x4e   : > { %3279 = vmatpush3.bf16.msra.mxu1 %v3758_v52  ;;  %1776 = vmatprep.mubr.bf16.mxu0 %v3762_v53  ;;  %v3830_v52 = vld [vmem:[%s4038_s28 + $0x10] ss:$36 sps:$4 sm:$0xff]   ;;  %v3833_v53 = vld [vmem:[%s4038_s28 + $0x248] ss:$36 sps:$4 sm:$0xff]  }
  0x4f   : > { %3280 = vmatprep.subr.bf16.mxu1 %v3760_v54  ;;  %1905 = vmatprep.mubr.bf16.mxu1 %v3766_v57  ;;  %v3837_v54 = vld [vmem:[%s4038_s28 + $0x294] ss:$36 sps:$4 sm:$0xff]  }
  0x50   : > { %3389 = vmatpush3.bf16.msra.mxu0 %v3795_v7  ;;  %v3865_v57 = vld [vmem:[%s5036_s1 + $0x210] sm:$0xff]  }
  0x51   : > { %3390 = vmatprep.subr.bf16.mxu0 %v3810_v16  ;;  %v3920_v7 = vld [vmem:[%s5036_s1 + $0x230] sm:$0xff]   ;;  %v3872_v16 = vld [vmem:[%s4038_s28 + $0x178] ss:$36 sps:$4 sm:$0xff]  }
  0x52   : > { %3281 = vmatpush3.bf16.msra.mxu1 %v3761_v58  ;;  %v3841_v58 = vld [vmem:[%s4038_s28 + $0x290] ss:$36 sps:$4 sm:$0xff]  }
  0x53   : > { %3490 = vmatprep.subr.bf16.mxu1 %v3768_v61  ;;  %v3845_v61 = vld [vmem:[%s4038_s28 + $0xa4] ss:$36 sps:$4 sm:$0xff]  }
  0x54   : > { %3391 = vmatpush3.bf16.msra.mxu0 %v3811_v17  ;;  %v3873_v17 = vld [vmem:[%s4038_s28 + $0x3fc] ss:$36 sps:$4 sm:$0xff]  }
  0x55   : > { %1777 = vmatmul.mubr.bf16.gmra.mrb[16].mxu0 %v3767_v60  ;;  %1906 = vmatmul.mubr.bf16.vlgmr.msra.gmra.mrb[16].mxu1 %v3764_v59  ;;  %v3842_v59 = vld [vmem:[%s4038_s28 + $0x58] ss:$36 sps:$4 sm:$0xff]  }
  0x56   : > { %3491 = vmatpush3.bf16.msra.mxu1 %v3769_v62  ;;  %1784 = vmatprep.mubr.bf16.mxu0 %v3772_v63  ;;  %v3843_v60 = vld [vmem:[%s4038_s28 + $0x2dc] ss:$36 sps:$4 sm:$0xff]  }
  0x57   : > { %1913 = vmatprep.mubr.bf16.mxu1 %v3774_v1  ;;  %3492 = vmatprep.subr.bf16.mxu1 %v3785_v3  ;;  %v3880_v62 = vld [vmem:[%s5036_s1 + $0x218] sm:$0xff]   ;;  %v3894_v63 = vld [vmem:[%s5036_s1 + $0x220] sm:$0xff]   ;;  %v3854_v3 = vld [vmem:[%s4038_s28 + $0xec] ss:$36 sps:$4 sm:$0xff]  }
  0x58   : > { %3392 = vmatprep.subr.bf16.mxu0 %v3820_v22  ;;  %v3848_v1 = vld [vmem:[%s4038_s28 + $0xa0] ss:$36 sps:$4 sm:$0xff]   ;;  %v3884_v22 = vld [vmem:[%s4038_s28 + $0x20c] ss:$36 sps:$4 sm:$0xff]  }
  0x59   : > { %3393 = vmatpush3.bf16.msra.mxu0 %v3821_v23  ;;  %v3886_v23 = vld [vmem:[%s4038_s28 + $0x440] ss:$36 sps:$4 sm:$0xff]  }
  0x5a   : > { %3493 = vmatpush3.bf16.msra.mxu1 %v3787_v4  ;;  %3626 = vmatprep.subr.bf16.mxu0 %v3835_v29  ;;  %v3907_v4 = vld [vmem:[%s5036_s1 + $0x228] sm:$0xff]  }
  0x5b   : > { %3494 = vmatprep.subr.bf16.mxu1 %v3802_v11  ;;  %v3862_v11 = vld [vmem:[%s4038_s28 + $0x368] ss:$36 sps:$4 sm:$0xff]  }
  0x5d   : > { %1785 = vmatmul.mubr.bf16.gmra.mrb[20].mxu0 %v3776_v5  ;;  %1914 = vmatmul.mubr.bf16.gmra.mrb[20].mxu1 %v3777_v8  ;;  %v3856_v5 = vld [vmem:[%s4038_s28 + $0x320] ss:$36 sps:$4 sm:$0xff]   ;;  %v3858_v8 = vld [vmem:[%s4038_s28 + $0x36c] ss:$36 sps:$4 sm:$0xff]  }
  0x5e   : > { %1792 = vmatprep.mubr.bf16.mxu0 %v3778_v9  ;;  %1921 = vmatprep.mubr.bf16.mxu1 %v3780_v10  ;;  %v3860_v9 = vld [vmem:[%s4038_s28 + $0x134] ss:$36 sps:$4 sm:$0xff]  }
  0x5f   : > { %3495 = vmatpush3.bf16.msra.mxu1 %v3803_v12  ;;  %v3933_v10 = vld [vmem:[%s5036_s1 + $0x238] sm:$0xff]   ;;  %v3863_v12 = vld [vmem:[%s4038_s28 + $0x130] ss:$36 sps:$4 sm:$0xff]  }
  0x60   : > { %3496 = vmatprep.subr.bf16.mxu1 %v3818_v19  ;;  %v3877_v19 = vld [vmem:[%s4038_s28 + $0x3f8] ss:$36 sps:$4 sm:$0xff]  }
  0x63   : > { %3497 = vmatpush3.bf16.msra.mxu1 %v3819_v20  ;;  %v3878_v20 = vld [vmem:[%s4038_s28 + $0x1c0] ss:$36 sps:$4 sm:$0xff]  }
  0x64   : > { %3498 = vmatprep.subr.bf16.mxu1 %v3834_v27  ;;  %v3890_v27 = vld [vmem:[%s4038_s28 + $0x18] ss:$36 sps:$4 sm:$0xff]  }
  0x65   : > { %1793 = vmatmul.mubr.bf16.gmra.mrb[24].mxu0 %v3782_v13  ;;  %1922 = vmatmul.mubr.bf16.gmra.mrb[24].mxu1 %v3783_v14  ;;  %v3867_v13 = vld [vmem:[%s4038_s28 + $0x3b4] ss:$36 sps:$4 sm:$0xff]   ;;  %v3869_v14 = vld [vmem:[%s4038_s28 + $0x17c] ss:$36 sps:$4 sm:$0xff]  }
  0x66   : > { %1800 = vmatprep.mubr.bf16.mxu0 %v3788_v15  ;;  %1929 = vmatprep.mubr.bf16.mxu1 %v3790_v18  ;;  %v3871_v15 = vld [vmem:[%s4038_s28 + $0x3b0] ss:$36 sps:$4 sm:$0xff]   ;;  %v3875_v18 = vld [vmem:[%s4038_s28 + $0x1c4] ss:$36 sps:$4 sm:$0xff]  }
  0x67   : > { %3499 = vmatpush3.bf16.msra.mxu1 %v3836_v30  ;;  %v3897_v30 = vld [vmem:[%s4038_s28 + $0x64] ss:$36 sps:$4 sm:$0xff]  }
  0x68   : > { %3500 = vmatprep.subr.bf16.mxu1 %v3849_v34  ;;  %v3903_v34 = vld [vmem:[%s4038_s28 + $0xac] ss:$36 sps:$4 sm:$0xff]  }
  0x6b   : > { %3501 = vmatpush3.bf16.msra.mxu1 %v3851_v37  ;;  %v3908_v37 = vld [vmem:[%s4038_s28 + $0x32c] ss:$36 sps:$4 sm:$0xff]  }
  0x6c   : > { %3502 = vmatprep.subr.bf16.mxu1 %v3864_v42  ;;  %v3916_v42 = vld [vmem:[%s4038_s28 + $0x13c] ss:$36 sps:$4 sm:$0xff]  }
  0x6d   : > { %1801 = vmatmul.mubr.bf16.gmra.mrb[28].mxu0 %v3792_v21  ;;  %1930 = vmatmul.mubr.bf16.gmra.mrb[28].mxu1 %v3793_v24  ;;  %v3882_v21 = vld [vmem:[%s4038_s28 + $0x444] ss:$36 sps:$4 sm:$0xff]  }
  0x6e   : > { %1808 = vmatprep.mubr.bf16.mxu0 %v3796_v25  ;;  %1937 = vmatprep.mubr.bf16.mxu1 %v3798_v26  ;;  %v3887_v24 = vld [vmem:[%s4038_s28 + $0x208] ss:$36 sps:$4 sm:$0xff]   ;;  %v3888_v25 = vld [vmem:[%s4038_s28 + $0x254] ss:$36 sps:$4 sm:$0xff]   ;;  %v3892_v26 = vld [vmem:[%s4038_s28 + $0x1c] ss:$36 sps:$4 sm:$0xff]  }
  0x6f   : > { %3503 = vmatpush3.bf16.msra.mxu1 %v3866_v44  ;;  %v3919_v44 = vld [vmem:[%s4038_s28 + $0x138] ss:$36 sps:$4 sm:$0xff]  }
  0x70   : > { %3504 = vmatprep.subr.bf16.mxu1 %v3879_v48  ;;  %v3926_v48 = vld [vmem:[%s4038_s28 + $0x180] ss:$36 sps:$4 sm:$0xff]  }
  0x73   : > { %3505 = vmatpush3.bf16.msra.mxu1 %v3881_v50  ;;  %v3929_v50 = vld [vmem:[%s4038_s28 + $0x1cc] ss:$36 sps:$4 sm:$0xff]  }
  0x75   : > { %1809 = vmatmul.mubr.bf16.gmra.mrb[32].mxu0 %v3800_v28  ;;  %1938 = vmatmul.mubr.bf16.gmra.mrb[32].mxu1 %v3801_v31  ;;  %v3893_v28 = vld [vmem:[%s4038_s28 + $0x250] ss:$36 sps:$4 sm:$0xff]   ;;  %v3899_v31 = vld [vmem:[%s4038_s28 + $0x298] ss:$36 sps:$4 sm:$0xff]  }
  0x76   : > { %1816 = vmatprep.mubr.bf16.mxu0 %v3804_v32  ;;  %1945 = vmatprep.mubr.bf16.mxu1 %v3806_v33  ;;  %v3900_v32 = vld [vmem:[%s4038_s28 + $0x60] ss:$36 sps:$4 sm:$0xff]  }
  0x77   : > { %v3901_v33 = vld [vmem:[%s4038_s28 + $0x2e4] ss:$36 sps:$4 sm:$0xff]  }
  0x7d   : > { %1817 = vmatmul.mubr.bf16.gmra.mrb[36].mxu0 %v3808_v35  ;;  %1946 = vmatmul.mubr.bf16.gmra.mrb[36].mxu1 %v3809_v36  ;;  %v3905_v35 = vld [vmem:[%s4038_s28 + $0x2e0] ss:$36 sps:$4 sm:$0xff]   ;;  %v3906_v36 = vld [vmem:[%s4038_s28 + $0xa8] ss:$36 sps:$4 sm:$0xff]  }
  0x7e   : > { %1824 = vmatprep.mubr.bf16.mxu0 %v3812_v38  ;;  %1953 = vmatprep.mubr.bf16.mxu1 %v3814_v39  ;;  %v3910_v38 = vld [vmem:[%s4038_s28 + $0xf4] ss:$36 sps:$4 sm:$0xff]   ;;  %v3912_v39 = vld [vmem:[%s4038_s28 + $0x328] ss:$36 sps:$4 sm:$0xff]  }
  0x85   : > { %1825 = vmatmul.mubr.bf16.gmra.mrb[40].mxu0 %v3816_v40  ;;  %1954 = vmatmul.mubr.bf16.gmra.mrb[40].mxu1 %v3817_v41  ;;  %v3913_v40 = vld [vmem:[%s4038_s28 + $0xf0] ss:$36 sps:$4 sm:$0xff]  }
  0x86   : > { %1832 = vmatprep.mubr.bf16.mxu0 %v3822_v43  ;;  %1961 = vmatprep.mubr.bf16.mxu1 %v3824_v45  ;;  %v3914_v41 = vld [vmem:[%s4038_s28 + $0x374] ss:$36 sps:$4 sm:$0xff]   ;;  %v3921_v45 = vld [vmem:[%s4038_s28 + $0x3bc] ss:$36 sps:$4 sm:$0xff]  }
  0x87   : > { %v3918_v43 = vld [vmem:[%s4038_s28 + $0x370] ss:$36 sps:$4 sm:$0xff]  }
  0x8d   : > { %1833 = vmatmul.mubr.bf16.gmra.mrb[44].mxu0 %v3826_v46  ;;  %1962 = vmatmul.mubr.bf16.gmra.mrb[44].mxu1 %v3827_v47  ;;  %v3923_v46 = vld [vmem:[%s4038_s28 + $0x184] ss:$36 sps:$4 sm:$0xff]   ;;  %v3925_v47 = vld [vmem:[%s4038_s28 + $0x3b8] ss:$36 sps:$4 sm:$0xff]  }
  0x8e   : > { %1969 = vmatprep.mubr.bf16.mxu1 %v3828_v49  ;;  %2066 = vmatprep.mubr.bf16.mxu0 %v3832_v51  ;;  %v3927_v49 = vld [vmem:[%s4038_s28 + $0x404] ss:$36 sps:$4 sm:$0xff]  }
  0x8f   : > { %v3931_v51 = vld [vmem:[%s4038_s28 + $0x400] ss:$36 sps:$4 sm:$0xff]  }
  0x95   : > { %1970 = vmatmul.mubr.bf16.gmra.mrb[48].mxu1 %v3833_v53  ;;  %2067 = vmatmul.mubr.bf16.vlgmr.msra.gmra.mrb[48].mxu0 %v3830_v52  ;;  %v3932_v52 = vld [vmem:[%s4038_s28 + $0x1c8] ss:$36 sps:$4 sm:$0xff]  }
  0x96   : > { %3627 = vmatpush3.bf16.msra.mxu0 %v3835_v29  ;;  %1977 = vmatprep.mubr.bf16.mxu1 %v3837_v54  ;;  %v3895_v29 = vld [vmem:[%s4038_s28 + $0x29c] ss:$36 sps:$4 sm:$0xff]   ;;  %v3934_v53 = vld [vmem:[%s4038_s28 + $0x44c] ss:$36 sps:$4 sm:$0xff]   ;;  %v3936_v54 = vld [vmem:[%s4038_s28 + $0x214] ss:$36 sps:$4 sm:$0xff]  }
  0x97   : > { %2074 = vmatprep.mubr.bf16.mxu0 %v3839_v55  ;;  %3628 = vmatprep.subr.bf16.mxu0 %v3850_v56 }
  0x9a   : > { %3629 = vmatpush3.bf16.msra.mxu0 %v3850_v56 }
  0x9b   : > { %3630 = vmatprep.subr.bf16.mxu0 %v3865_v57 }
  0x9d   : > { %1978 = vmatmul.mubr.bf16.gmra.mrb[52].mxu1 %v3841_v58  ;;  %2075 = vmatmul.mubr.bf16.gmra.mrb[52].mxu0 %v3842_v59  ;;  %v3938_v59 = vld [vmem:[%s4038_s28 + $0x448] ss:$36 sps:$4 sm:$0xff]  }
  0x9e   : > { %1985 = vmatprep.mubr.bf16.mxu1 %v3843_v60  ;;  %2082 = vmatprep.mubr.bf16.mxu0 %v3845_v61  ;;  %v3939_v60 = vld [vmem:[%s4038_s28 + $0x210] ss:$36 sps:$4 sm:$0xff]  }
  0x9f   : > { %3631 = vmatpush3.bf16.msra.mxu0 %v3865_v57 }
  0xa0   : > { %3632 = vmatprep.subr.bf16.mxu0 %v3880_v62 }
  0xa3   : > { %3633 = vmatpush3.bf16.msra.mxu0 %v3880_v62 }
  0xa4   : > { %3634 = vmatprep.subr.bf16.mxu0 %v3894_v63 }
  0xa5   : > { %1986 = vmatmul.mubr.bf16.gmra.mrb[56].mxu1 %v3847_v0  ;;  %2083 = vmatmul.mubr.bf16.gmra.mrb[56].mxu0 %v3848_v1  ;;  %v3940_v1 = vld [vmem:[%s4038_s28 + $0x25c] ss:$36 sps:$4 sm:$0xff]  }
  0xa6   : > { %1993 = vmatprep.mubr.bf16.mxu1 %v3852_v2  ;;  %2090 = vmatprep.mubr.bf16.mxu0 %v3854_v3  ;;  %v3942_v2 = vld [vmem:[%s4038_s28 + $0x20] ss:$36 sps:$4 sm:$0xff]  }
  0xa7   : > { %3635 = vmatpush3.bf16.msra.mxu0 %v3894_v63 }
  0xa8   : > { %3636 = vmatprep.subr.bf16.mxu0 %v3907_v4 }
  0xab   : > { %3637 = vmatpush3.bf16.msra.mxu0 %v3907_v4 }
  0xac   : > { %3638 = vmatprep.subr.bf16.mxu0 %v3920_v7 }
  0xad   : > { %1994 = vmatmul.mubr.bf16.gmra.mrb[60].mxu1 %v3856_v5  ;;  %2091 = vmatmul.mubr.bf16.gmra.mrb[60].mxu0 %v3857_v6 }
  0xae   : > { %2001 = vmatprep.mubr.bf16.mxu1 %v3858_v8  ;;  %2098 = vmatprep.mubr.bf16.mxu0 %v3860_v9 }
  0xaf   : > { %3639 = vmatpush3.bf16.msra.mxu0 %v3920_v7 }
  0xb0   : > { %3640 = vmatprep.subr.bf16.mxu0 %v3933_v10 }
  0xb3   : > { %3641 = vmatpush3.bf16.msra.mxu0 %v3933_v10 }
  0xb5   : > { %2002 = vmatmul.mubr.bf16.gmra.mrb[64].mxu1 %v3862_v11  ;;  %2099 = vmatmul.mubr.bf16.gmra.mrb[64].mxu0 %v3863_v12  ;;  %v3943_v11 = vld [vmem:[%s4038_s28 + $0x258] ss:$36 sps:$4 sm:$0xff]   ;;  %v3944_v12 = vld [vmem:[%s4038_s28 + $0x68] ss:$36 sps:$4 sm:$0xff]  }
  0xb6   : > { %2009 = vmatprep.mubr.bf16.mxu1 %v3867_v13  ;;  %2106 = vmatprep.mubr.bf16.mxu0 %v3869_v14 }
  0xbd   : > { %2010 = vmatmul.mubr.bf16.gmra.mrb[68].mxu1 %v3871_v15  ;;  %2107 = vmatmul.mubr.bf16.gmra.mrb[68].mxu0 %v3872_v16 }
  0xbe   : > { %2017 = vmatprep.mubr.bf16.mxu1 %v3873_v17  ;;  %2114 = vmatprep.mubr.bf16.mxu0 %v3875_v18  ;;  %v3945_v17 = vld [vmem:[%s4038_s28 + $0x2a4] ss:$36 sps:$4 sm:$0xff]   ;;  %v3947_v18 = vld [vmem:[%s4038_s28 + $0xb0] ss:$36 sps:$4 sm:$0xff]  }
  0xc5   : > { %2018 = vmatmul.mubr.bf16.gmra.mrb[72].mxu1 %v3877_v19  ;;  %2115 = vmatmul.mubr.bf16.gmra.mrb[72].mxu0 %v3878_v20 }
  0xc6   : > { %2025 = vmatprep.mubr.bf16.mxu1 %v3882_v21  ;;  %2122 = vmatprep.mubr.bf16.mxu0 %v3884_v22 }
  0xcd   : > { %2026 = vmatmul.mubr.bf16.gmra.mrb[76].mxu1 %v3886_v23  ;;  %2123 = vmatmul.mubr.bf16.gmra.mrb[76].mxu0 %v3887_v24 }
  0xce   : > { %2130 = vmatprep.mubr.bf16.mxu0 %v3888_v25  ;;  %2227 = vmatprep.mubr.bf16.mxu1 %v3892_v26 }
  0xd5   : > { %2131 = vmatmul.mubr.bf16.gmra.mrb[80].mxu0 %v3893_v28  ;;  %2228 = vmatmul.mubr.bf16.vlgmr.msra.gmra.mrb[80].mxu1 %v3890_v27  ;;  %v3948_v27 = vld [vmem:[%s4038_s28 + $0x2a0] ss:$36 sps:$4 sm:$0xff]   ;;  %v3949_v28 = vld [vmem:[%s4038_s28 + $0xf8] ss:$36 sps:$4 sm:$0xff]  }
  0xd6   : > { %2138 = vmatprep.mubr.bf16.mxu0 %v3895_v29  ;;  %2235 = vmatprep.mubr.bf16.mxu1 %v3897_v30 }
  0xdd   : > { %2139 = vmatmul.mubr.bf16.gmra.mrb[84].mxu0 %v3899_v31  ;;  %2236 = vmatmul.mubr.bf16.gmra.mrb[84].mxu1 %v3900_v32 }
  0xde   : > { %2146 = vmatprep.mubr.bf16.mxu0 %v3901_v33  ;;  %2243 = vmatprep.mubr.bf16.mxu1 %v3903_v34  ;;  %v3950_v33 = vld [vmem:[%s4038_s28 + $0x2ec] ss:$36 sps:$4 sm:$0xff]   ;;  %v3952_v34 = vld [vmem:[%s4038_s28 + $0x140] ss:$36 sps:$4 sm:$0xff]  }
  0xe5   : > { %2147 = vmatmul.mubr.bf16.gmra.mrb[88].mxu0 %v3905_v35  ;;  %2244 = vmatmul.mubr.bf16.gmra.mrb[88].mxu1 %v3906_v36 }
  0xe6   : > { %2154 = vmatprep.mubr.bf16.mxu0 %v3908_v37  ;;  %2251 = vmatprep.mubr.bf16.mxu1 %v3910_v38 }
  0xed   : > { %2155 = vmatmul.mubr.bf16.gmra.mrb[92].mxu0 %v3912_v39  ;;  %2252 = vmatmul.mubr.bf16.gmra.mrb[92].mxu1 %v3913_v40 }
  0xee   : > { %2162 = vmatprep.mubr.bf16.mxu0 %v3914_v41  ;;  %2259 = vmatprep.mubr.bf16.mxu1 %v3916_v42 }
  0xf5   : > { %2163 = vmatmul.mubr.bf16.gmra.mrb[96].mxu0 %v3918_v43  ;;  %2260 = vmatmul.mubr.bf16.gmra.mrb[96].mxu1 %v3919_v44  ;;  %v3953_v43 = vld [vmem:[%s4038_s28 + $0x2e8] ss:$36 sps:$4 sm:$0xff]  }
  0xf6   : > { %2170 = vmatprep.mubr.bf16.mxu0 %v3921_v45  ;;  %2267 = vmatprep.mubr.bf16.mxu1 %v3923_v46  ;;  %v3954_v44 = vld [vmem:[%s4038_s28 + $0x188] ss:$36 sps:$4 sm:$0xff]  }
  0xfd   : > { %2171 = vmatmul.mubr.bf16.gmra.mrb[100].mxu0 %v3925_v47  ;;  %2268 = vmatmul.mubr.bf16.gmra.mrb[100].mxu1 %v3926_v48 }
  0xfe   : > { %2178 = vmatprep.mubr.bf16.mxu0 %v3927_v49  ;;  %2275 = vmatprep.mubr.bf16.mxu1 %v3929_v50  ;;  %v3955_v49 = vld [vmem:[%s4038_s28 + $0x334] ss:$36 sps:$4 sm:$0xff]  }
  0xff   : > { %v3957_v50 = vld [vmem:[%s4038_s28 + $0x1d0] ss:$36 sps:$4 sm:$0xff]  }
 0x105   : > { %2179 = vmatmul.mubr.bf16.gmra.mrb[104].mxu0 %v3931_v51  ;;  %2276 = vmatmul.mubr.bf16.gmra.mrb[104].mxu1 %v3932_v52 }
 0x106   : > { %2186 = vmatprep.mubr.bf16.mxu0 %v3934_v53  ;;  %2283 = vmatprep.mubr.bf16.mxu1 %v3936_v54 }
 0x108   : > { %v3170_v55 = vpop.f32.mrb[0].mxu0  ;;  %v3242_v56 = vpop.f32.mrb[0].mxu1 }
 0x109   : > { %v3171_v57 = vpop.f32.mrb[1].mxu0  ;;  %v3243_v58 = vpop.f32.mrb[1].mxu1 }
 0x10a   : > { %v4375_v61 = vadd.f32 %v3171_v57, %v3170_v55  ;;  %v4377_v62 = vadd.f32 %v3243_v58, %v3242_v56  ;;  %v3173_v63 = vpop.f32.mrb[2].mxu0  ;;  %v3245_v0 = vpop.f32.mrb[2].mxu1  ;;  %v4424_v55 = vld [vmem:[%s5037_s2] ss:$0 sm:$0xff] }
 0x10b   : > { %v3174_v3 = vpop.f32.mrb[3].mxu0  ;;  %v3246_v4 = vpop.f32.mrb[3].mxu1 }
 0x10c   : > { %v4381_v5 = vadd.f32 %v3174_v3, %v3173_v63  ;;  %v4383_v6 = vadd.f32 %v3246_v4, %v3245_v0  ;;  %v3959_v63 = vld [vmem:[%s4038_s28 + $0x218] ss:$36 sps:$4 sm:$0xff]   ;;  %v1747_v0 = vadd.f32 %v4375_v61, %v4424_v55 }
 0x10d   : > { %2187 = vmatmul.mubr.bf16.gmra.mrb[108].mxu0 %v3938_v59  ;;  %2284 = vmatmul.mubr.bf16.gmra.mrb[108].mxu1 %v3939_v60  ;;  %v3958_v60 = vld [vmem:[%s4038_s28 + $0x330] ss:$36 sps:$4 sm:$0xff]  }
 0x10e   : > { %2291 = vmatprep.mubr.bf16.mxu1 %v3940_v1  ;;  %3642 = vmatprep.mubr.bf16.mxu0 %v3942_v2 }
 0x110   : > { %v3176_v7 = vpop.f32.mrb[4].mxu0  ;;  %v3248_v8 = vpop.f32.mrb[4].mxu1 }
 0x111   : > { %v3177_v9 = vpop.f32.mrb[5].mxu0  ;;  %v3249_v10 = vpop.f32.mrb[5].mxu1 }
 0x112   : > { %v4387_v13 = vadd.f32 %v3177_v9, %v3176_v7  ;;  %v4389_v14 = vadd.f32 %v3249_v10, %v3248_v8  ;;  %v3179_v15 = vpop.f32.mrb[6].mxu0  ;;  %v3251_v16 = vpop.f32.mrb[6].mxu1  ;;  %v3960_v7 = vld [vmem:[%s4038_s28 + $0x37c] ss:$36 sps:$4 sm:$0xff]  }
 0x113   : > { %v3180_v19 = vpop.f32.mrb[7].mxu0  ;;  %v3252_v20 = vpop.f32.mrb[7].mxu1  ;;  %v3962_v8 = vld [vmem:[%s4038_s28 + $0x260] ss:$36 sps:$4 sm:$0xff]  }
 0x114   : > { %v4393_v21 = vadd.f32 %v3180_v19, %v3179_v15  ;;  %v4395_v22 = vadd.f32 %v3252_v20, %v3251_v16 }
 0x115   : > { %2292 = vmatmul.mubr.bf16.gmra.mrb[112].mxu1 %v3943_v11  ;;  %3643 = vmatmul.mubr.bf16.vlgmr.msra.gmra.mrb[112].mxu0 %v3944_v12  ;;  %v1750_v11 = vadd.f32 %v4381_v5, %v4424_v55  ;;  %v1755_v5 = vadd.f32 %v4387_v13, %v4424_v55 }
 0x116   : > { %2299 = vmatprep.mubr.bf16.mxu1 %v3945_v17  ;;  %3646 = vmatprep.mubr.bf16.mxu0 %v3947_v18 }
 0x118   : > { %v3182_v23 = vpop.f32.mrb[8].mxu0  ;;  %v3254_v24 = vpop.f32.mrb[8].mxu1 }
 0x119   : > { %v3183_v25 = vpop.f32.mrb[9].mxu0  ;;  %v3255_v26 = vpop.f32.mrb[9].mxu1 }
 0x11a   : > { %v4399_v29 = vadd.f32 %v3183_v25, %v3182_v23  ;;  %v4401_v30 = vadd.f32 %v3255_v26, %v3254_v24  ;;  %v3185_v31 = vpop.f32.mrb[10].mxu0  ;;  %v3257_v32 = vpop.f32.mrb[10].mxu1  ;;  %v3963_v23 = vld [vmem:[%s4038_s28 + $0x378] ss:$36 sps:$4 sm:$0xff]   ;;  %v3964_v24 = vld [vmem:[%s4038_s28 + $0x2a8] ss:$36 sps:$4 sm:$0xff]  }
 0x11b   : > { %v3186_v35 = vpop.f32.mrb[11].mxu0  ;;  %v3258_v36 = vpop.f32.mrb[11].mxu1 }
 0x11c   : > { %v4405_v37 = vadd.f32 %v3186_v35, %v3185_v31  ;;  %v4407_v38 = vadd.f32 %v3258_v36, %v3257_v32  ;;  %v3965_v31 = vld [vmem:[%s4038_s28 + $0x3c4] ss:$36 sps:$4 sm:$0xff]   ;;  %v3967_v32 = vld [vmem:[%s4038_s28 + $0x2f0] ss:$36 sps:$4 sm:$0xff]   ;;  %v1758_v35 = vadd.f32 %v4393_v21, %v4424_v55  ;;  %v1763_v21 = vadd.f32 %v4399_v29, %v4424_v55 }
 0x11d   : > { %2300 = vmatmul.mubr.bf16.gmra.mrb[116].mxu1 %v3948_v27  ;;  %3647 = vmatmul.mubr.bf16.gmra.mrb[116].mxu0 %v3949_v28 }
 0x11e   : > { %2307 = vmatprep.mubr.bf16.mxu1 %v3950_v33  ;;  %3650 = vmatprep.mubr.bf16.mxu0 %v3952_v34 }
 0x120   : > { %v3188_v39 = vpop.f32.mrb[12].mxu0  ;;  %v3260_v40 = vpop.f32.mrb[12].mxu1 }
 0x121   : > { %v3189_v41 = vpop.f32.mrb[13].mxu0  ;;  %v3261_v42 = vpop.f32.mrb[13].mxu1 }
 0x122   : > { %v4411_v45 = vadd.f32 %v3189_v41, %v3188_v39  ;;  %v4413_v46 = vadd.f32 %v3261_v42, %v3260_v40  ;;  %v3191_v47 = vpop.f32.mrb[14].mxu0  ;;  %v3263_v48 = vpop.f32.mrb[14].mxu1 }
 0x123   : > { %v3192_v51 = vpop.f32.mrb[15].mxu0  ;;  %v3264_v52 = vpop.f32.mrb[15].mxu1 }
 0x124   : > { %v4417_v53 = vadd.f32 %v3192_v51, %v3191_v47  ;;  %v4419_v54 = vadd.f32 %v3264_v52, %v3263_v48  ;;  %v3968_v47 = vld [vmem:[%s4038_s28 + $0x3c0] ss:$36 sps:$4 sm:$0xff]   ;;  %v3969_v48 = vld [vmem:[%s4038_s28 + $0x338] ss:$36 sps:$4 sm:$0xff]  }
 0x125   : > { %2308 = vmatmul.mubr.bf16.gmra.mrb[120].mxu1 %v3953_v43  ;;  %3651 = vmatmul.mubr.bf16.gmra.mrb[120].mxu0 %v3954_v44 }
 0x126   : > { %2315 = vmatprep.mubr.bf16.mxu1 %v3955_v49  ;;  %3654 = vmatprep.mubr.bf16.mxu0 %v3957_v50 }
 0x128   : > { %v3194_v56 = vpop.f32.mrb[16].mxu0  ;;  %v3282_v57 = vpop.f32.mrb[16].mxu1 }
 0x129   : > { %v3195_v58 = vpop.f32.mrb[17].mxu0  ;;  %v3283_v59 = vpop.f32.mrb[17].mxu1 }
 0x12a   : > { %v4430_v1 = vadd.f32 %v3195_v58, %v3194_v56  ;;  %v3284_v2 = vadd.f32 %v3283_v59, %v3282_v57  ;;  %v3197_v3 = vpop.f32.mrb[18].mxu0  ;;  %v3285_v4 = vpop.f32.mrb[18].mxu1  ;;  %v3970_v56 = vld [vmem:[%s4038_s28 + $0x40c] ss:$36 sps:$4 sm:$0xff]   ;;  %v3972_v57 = vld [vmem:[%s4038_s28 + $0x380] ss:$36 sps:$4 sm:$0xff]  }
 0x12b   : > { %v3198_v9 = vpop.f32.mrb[19].mxu0  ;;  %v3286_v10 = vpop.f32.mrb[19].mxu1 }
 0x12c   : > { %v4436_v12 = vadd.f32 %v3284_v2, %v1747_v0  ;;  %v4438_v15 = vadd.f32 %v3198_v9, %v3197_v3  ;;  %v3287_v16 = vadd.f32 %v3286_v10, %v3285_v4  ;;  %v3973_v9 = vld [vmem:[%s4038_s28 + $0x408] ss:$36 sps:$4 sm:$0xff]  }
 0x12d   : > { %2316 = vmatmul.mubr.bf16.gmra.mrb[124].mxu1 %v3958_v60  ;;  %3655 = vmatmul.mubr.bf16.gmra.mrb[124].mxu0 %v3959_v63  ;;  %v1766_v60 = vadd.f32 %v4405_v37, %v4424_v55  ;;  %v3974_v10 = vld [vmem:[%s4038_s28 + $0x3c8] ss:$36 sps:$4 sm:$0xff]   ;;  %v1771_v37 = vadd.f32 %v4411_v45, %v4424_v55 }
 0x12e   : > { %v4440_v61 = vadd.f32 %v3287_v16, %v1750_v11  ;;  %2323 = vmatprep.mubr.bf16.mxu1 %v3960_v7  ;;  %3658 = vmatprep.mubr.bf16.mxu0 %v3962_v8 }
 0x130   : > { %v3200_v17 = vpop.f32.mrb[20].mxu0  ;;  %v3288_v18 = vpop.f32.mrb[20].mxu1 }
 0x131   : > { %v3201_v19 = vpop.f32.mrb[21].mxu0  ;;  %v3289_v20 = vpop.f32.mrb[21].mxu1 }
 0x132   : > { %v4446_v25 = vadd.f32 %v3201_v19, %v3200_v17  ;;  %v3290_v26 = vadd.f32 %v3289_v20, %v3288_v18  ;;  %v3203_v27 = vpop.f32.mrb[22].mxu0  ;;  %v3291_v28 = vpop.f32.mrb[22].mxu1  ;;  %v3975_v19 = vld [vmem:[%s4038_s28 + $0x454] ss:$36 sps:$4 sm:$0xff]  }
 0x133   : > { %v3204_v33 = vpop.f32.mrb[23].mxu0  ;;  %v3292_v34 = vpop.f32.mrb[23].mxu1  ;;  %v3977_v20 = vld [vmem:[%s4038_s28 + $0x410] ss:$36 sps:$4 sm:$0xff]  }
 0x134   : > { %v4452_v36 = vadd.f32 %v3290_v26, %v1755_v5  ;;  %v4454_v39 = vadd.f32 %v3204_v33, %v3203_v27  ;;  %v3293_v40 = vadd.f32 %v3292_v34, %v3291_v28  ;;  %v1774_v5 = vadd.f32 %v4417_v53, %v4424_v55 }
 0x135   : > { %2324 = vmatmul.mubr.bf16.gmra.mrb[128].mxu1 %v3963_v23  ;;  %3659 = vmatmul.mubr.bf16.gmra.mrb[128].mxu0 %v3964_v24  ;;  %v1779_v53 = vadd.f32 %v4430_v1, %v4424_v55 }
 0x136   : > { %v4456_v13 = vadd.f32 %v3293_v40, %v1758_v35  ;;  %2331 = vmatprep.mubr.bf16.mxu1 %v3965_v31  ;;  %3662 = vmatprep.mubr.bf16.mxu0 %v3967_v32  ;;  %v3978_v35 = vld [vmem:[%s4038_s28 + $0x450] ss:$36 sps:$4 sm:$0xff]   ;;  %v3979_v40 = vld [vmem:[%s4038_s28 + $0x458] ss:$36 sps:$4 sm:$0xff]   ;;  %s3151_s28 = sshll.u32 %s4025_s19, 8 }
 0x138   : > { %v3206_v41 = vpop.f32.mrb[24].mxu0  ;;  %v3294_v42 = vpop.f32.mrb[24].mxu1 }
 0x139   : > { %v3207_v43 = vpop.f32.mrb[25].mxu0  ;;  %v3295_v44 = vpop.f32.mrb[25].mxu1 }
 0x13a   : > { %v4462_v49 = vadd.f32 %v3207_v43, %v3206_v41  ;;  %v3296_v50 = vadd.f32 %v3295_v44, %v3294_v42  ;;  %v3209_v51 = vpop.f32.mrb[26].mxu0  ;;  %v3297_v52 = vpop.f32.mrb[26].mxu1 }
 0x13b   : > { %v3210_v58 = vpop.f32.mrb[27].mxu0  ;;  %v3298_v59 = vpop.f32.mrb[27].mxu1 }
 0x13c   : > { %v4468_v63 = vadd.f32 %v3296_v50, %v1763_v21  ;;  %v4470_v0 = vadd.f32 %v3210_v58, %v3209_v51  ;;  %v3299_v2 = vadd.f32 %v3298_v59, %v3297_v52  ;;  %v1782_v21 = vadd.f32 %v4438_v15, %v4424_v55 }
 0x13d   : > { %2332 = vmatmul.mubr.bf16.gmra.mrb[132].mxu1 %v3968_v47  ;;  %3663 = vmatmul.mubr.bf16.gmra.mrb[132].mxu0 %v3969_v48 }
 0x13e   : > { %v4472_v29 = vadd.f32 %v3299_v2, %v1766_v60  ;;  %2339 = vmatprep.mubr.bf16.mxu1 %v3970_v56  ;;  %3666 = vmatprep.mubr.bf16.mxu0 %v3972_v57  ;;  %v1787_v60 = vadd.f32 %v4446_v25, %v4424_v55 }
 0x140   : > { %v3212_v3 = vpop.f32.mrb[28].mxu0  ;;  %v3300_v4 = vpop.f32.mrb[28].mxu1 }
 0x141   : > { %v3213_v7 = vpop.f32.mrb[29].mxu0  ;;  %v3301_v8 = vpop.f32.mrb[29].mxu1 }
 0x142   : > { %v4478_v11 = vadd.f32 %v3213_v7, %v3212_v3  ;;  %v3302_v16 = vadd.f32 %v3301_v8, %v3300_v4  ;;  %v3215_v17 = vpop.f32.mrb[30].mxu0  ;;  %v3303_v18 = vpop.f32.mrb[30].mxu1 }
 0x143   : > { %v3216_v23 = vpop.f32.mrb[31].mxu0  ;;  %v3304_v24 = vpop.f32.mrb[31].mxu1 }
 0x144   : > { %v4484_v26 = vadd.f32 %v3302_v16, %v1771_v37  ;;  %v4486_v27 = vadd.f32 %v3216_v23, %v3215_v17  ;;  %v3305_v28 = vadd.f32 %v3304_v24, %v3303_v18  ;;  %v1795_v23 = vadd.f32 %v4462_v49, %v4424_v55 }
 0x145   : > { %2340 = vmatmul.mubr.bf16.gmra.mrb[136].mxu1 %v3973_v9  ;;  %3667 = vmatmul.mubr.bf16.gmra.mrb[136].mxu0 %v3974_v10  ;;  %v1790_v9 = vadd.f32 %v4454_v39, %v4424_v55 }
 0x146   : > { %v4488_v45 = vadd.f32 %v3305_v28, %v1774_v5  ;;  %2347 = vmatprep.mubr.bf16.mxu1 %v3975_v19  ;;  %3670 = vmatprep.mubr.bf16.mxu0 %v3977_v20 }
 0x148   : > { %v3218_v31 = vpop.f32.mrb[32].mxu0  ;;  %v3306_v32 = vpop.f32.mrb[32].mxu1 }
 0x149   : > { %v3219_v33 = vpop.f32.mrb[33].mxu0  ;;  %v3307_v34 = vpop.f32.mrb[33].mxu1 }
 0x14a   : > { %v4494_v41 = vadd.f32 %v3219_v33, %v3218_v31  ;;  %v3308_v42 = vadd.f32 %v3307_v34, %v3306_v32  ;;  %v3221_v43 = vpop.f32.mrb[34].mxu0  ;;  %v3309_v44 = vpop.f32.mrb[34].mxu1  ;;  %v1798_v33 = vadd.f32 %v4470_v0, %v4424_v55 }
 0x14b   : > { %v3222_v47 = vpop.f32.mrb[35].mxu0  ;;  %v3310_v48 = vpop.f32.mrb[35].mxu1 }
 0x14c   : > { %v4498_v50 = vadd.f32 %v3308_v42, %v1779_v53  ;;  %v3223_v51 = vadd.f32 %v3222_v47, %v3221_v43  ;;  %v3311_v52 = vadd.f32 %v3310_v48, %v3309_v44  ;;  %v1803_v47 = vadd.f32 %v4478_v11, %v4424_v55 }
 0x14d   : > { %2348 = vmatmul.mubr.bf16.gmra.mrb[140].mxu1 %v3978_v35  ;;  %3671 = vmatmul.mubr.bf16.gmra.mrb[140].mxu0 %v3979_v40 }
 0x14e   : > { %v4500_v56 = vadd.f32 %v3311_v52, %v1782_v21 }
 0x150   : > { %v3224_v57 = vpop.f32.mrb[36].mxu0  ;;  %v3312_v1 = vpop.f32.mrb[36].mxu1 }
 0x151   : > { %v3225_v58 = vpop.f32.mrb[37].mxu0  ;;  %v3313_v59 = vpop.f32.mrb[37].mxu1 }
 0x152   : > { %v4504_v2 = vadd.f32 %v3225_v58, %v3224_v57  ;;  %v3314_v3 = vadd.f32 %v3313_v59, %v3312_v1  ;;  %v3227_v4 = vpop.f32.mrb[38].mxu0  ;;  %v3315_v15 = vpop.f32.mrb[38].mxu1  ;;  %v1806_v58 = vadd.f32 %v4486_v27, %v4424_v55  ;;  %v1814_v27 = vadd.f32 %v3223_v51, %v4424_v55 }
 0x153   : > { %v3228_v7 = vpop.f32.mrb[39].mxu0  ;;  %v3316_v8 = vpop.f32.mrb[39].mxu1 }
 0x154   : > { %v4508_v10 = vadd.f32 %v3314_v3, %v1787_v60  ;;  %v3229_v37 = vadd.f32 %v3228_v7, %v3227_v4  ;;  %v3317_v16 = vadd.f32 %v3316_v8, %v3315_v15  ;;  %v1819_v51 = vadd.f32 %v4504_v2, %v4424_v55 }
 0x156   : > { %v4510_v17 = vadd.f32 %v3317_v16, %v1790_v9  ;;  %v1811_v9 = vadd.f32 %v4494_v41, %v4424_v55 }
 0x158   : > { %v3230_v18 = vpop.f32.mrb[40].mxu0  ;;  %v3318_v19 = vpop.f32.mrb[40].mxu1 }
 0x159   : > { %v3231_v20 = vpop.f32.mrb[41].mxu0  ;;  %v3319_v25 = vpop.f32.mrb[41].mxu1 }
 0x15a   : > { %v4514_v24 = vadd.f32 %v3231_v20, %v3230_v18  ;;  %v3320_v5 = vadd.f32 %v3319_v25, %v3318_v19  ;;  %v3233_v28 = vpop.f32.mrb[42].mxu0  ;;  %v3321_v31 = vpop.f32.mrb[42].mxu1 }
 0x15b   : > { %v3234_v32 = vpop.f32.mrb[43].mxu0  ;;  %v3322_v39 = vpop.f32.mrb[43].mxu1 }
 0x15c   : > { %v4518_v34 = vadd.f32 %v3320_v5, %v1795_v23  ;;  %v4520_v35 = vadd.f32 %v3234_v32, %v3233_v28  ;;  %v3323_v40 = vadd.f32 %v3322_v39, %v3321_v31 }
 0x15e   : > { %v4522_v53 = vadd.f32 %v3323_v40, %v1798_v33 }
 0x160   : > { %v3236_v42 = vpop.f32.mrb[44].mxu0  ;;  %v3324_v43 = vpop.f32.mrb[44].mxu1 }
 0x161   : > { %v3237_v49 = vpop.f32.mrb[45].mxu0  ;;  %v3325_v44 = vpop.f32.mrb[45].mxu1 }
 0x162   : > { %v4526_v48 = vadd.f32 %v3237_v49, %v3236_v42  ;;  %v3326_v21 = vadd.f32 %v3325_v44, %v3324_v43  ;;  %v3239_v52 = vpop.f32.mrb[46].mxu0  ;;  %v3327_v57 = vpop.f32.mrb[46].mxu1 }
 0x163   : > { %v3240_v0 = vpop.f32.mrb[47].mxu0  ;;  %v3328_v1 = vpop.f32.mrb[47].mxu1 }
 0x164   : > { %v4530_v59 = vadd.f32 %v3326_v21, %v1803_v47  ;;  %v4532_v60 = vadd.f32 %v3240_v0, %v3239_v52  ;;  %v3329_v3 = vadd.f32 %v3328_v1, %v3327_v57 }
 0x166   : > { %v4534_v4 = vadd.f32 %v3329_v3, %v1806_v58 }
 0x168   : > { %v3330_v15 = vpop.f32.mrb[48].mxu1  ;;  %v3394_v7 = vpop.f32.mrb[48].mxu0 }
 0x169   : > { %v3331_v11 = vpop.f32.mrb[49].mxu1  ;;  %v3395_v8 = vpop.f32.mrb[49].mxu0 }
 0x16a   : > { %v3332_v16 = vadd.f32 %v3331_v11, %v3330_v15  ;;  %v3396_v18 = vadd.f32 %v3395_v8, %v3394_v7  ;;  %v3333_v19 = vpop.f32.mrb[50].mxu1  ;;  %v3397_v20 = vpop.f32.mrb[50].mxu0 }
 0x16b   : > { %v3334_v25 = vpop.f32.mrb[51].mxu1  ;;  %v3398_v23 = vpop.f32.mrb[51].mxu0 }
 0x16c   : > { %v4539_v5 = vadd.f32 %v3332_v16, %v1811_v9  ;;  %v4542_v28 = vadd.f32 %v3396_v18, %v4436_v12  ;;  %v3335_v31 = vadd.f32 %v3334_v25, %v3333_v19  ;;  %v3399_v32 = vadd.f32 %v3398_v23, %v3397_v20 }
 0x16d   : > { %v1822_v12 = vadd.f32 %v3229_v37, %v4424_v55  ;;  %v1827_v37 = vadd.f32 %v4514_v24, %v4424_v55 }
 0x16e   : > { %v4544_v39 = vadd.f32 %v3335_v31, %v1814_v27  ;;  %v4547_v33 = vadd.f32 %v3399_v32, %v4440_v61 }
 0x170   : > { %v3336_v41 = vpop.f32.mrb[52].mxu1  ;;  %v3400_v40 = vpop.f32.mrb[52].mxu0 }
 0x171   : > { %v3337_v42 = vpop.f32.mrb[53].mxu1  ;;  %v3401_v43 = vpop.f32.mrb[53].mxu0 }
 0x172   : > { %v3338_v49 = vadd.f32 %v3337_v42, %v3336_v41  ;;  %v3402_v44 = vadd.f32 %v3401_v43, %v3400_v40  ;;  %v3339_v47 = vpop.f32.mrb[54].mxu1  ;;  %v3403_v21 = vpop.f32.mrb[54].mxu0 }
 0x173   : > { %v3340_v52 = vpop.f32.mrb[55].mxu1  ;;  %v3404_v57 = vpop.f32.mrb[55].mxu0 }
 0x174   : > { %v4552_v0 = vadd.f32 %v3338_v49, %v1819_v51  ;;  %v4555_v61 = vadd.f32 %v3402_v44, %v4452_v36  ;;  %v3341_v1 = vadd.f32 %v3340_v52, %v3339_v47  ;;  %v3405_v58 = vadd.f32 %v3404_v57, %v3403_v21 }
 0x175   : > { %v1830_v36 = vadd.f32 %v4520_v35, %v4424_v55  ;;  %v1835_v35 = vadd.f32 %v4526_v48, %v4424_v55 }
 0x176   : > { %v4557_v3 = vadd.f32 %v3341_v1, %v1822_v12  ;;  %v4560_v15 = vadd.f32 %v3405_v58, %v4456_v13 }
 0x178   : > { %v3342_v2 = vpop.f32.mrb[56].mxu1  ;;  %v3406_v7 = vpop.f32.mrb[56].mxu0 }
 0x179   : > { %v3343_v11 = vpop.f32.mrb[57].mxu1  ;;  %v3407_v8 = vpop.f32.mrb[57].mxu0 }
 0x17a   : > { %v3344_v9 = vadd.f32 %v3343_v11, %v3342_v2  ;;  %v3408_v16 = vadd.f32 %v3407_v8, %v3406_v7  ;;  %v3345_v18 = vpop.f32.mrb[58].mxu1  ;;  %v3409_v19 = vpop.f32.mrb[58].mxu0 }
 0x17b   : > { %v3346_v20 = vpop.f32.mrb[59].mxu1  ;;  %v3410_v27 = vpop.f32.mrb[59].mxu0 }
 0x17c   : > { %v4566_v25 = vadd.f32 %v3344_v9, %v1827_v37  ;;  %v4569_v13 = vadd.f32 %v3408_v16, %v4468_v63  ;;  %v3347_v23 = vadd.f32 %v3346_v20, %v3345_v18  ;;  %v3411_v31 = vadd.f32 %v3410_v27, %v3409_v19 }
 0x17d   : > { %v1838_v63 = vadd.f32 %v4532_v60, %v4424_v55  ;;  %v1843_v60 = vadd.f32 %v4377_v62, %v4424_v55 }
 0x17e   : > { %v4571_v32 = vadd.f32 %v3347_v23, %v1830_v36  ;;  %v4574_v24 = vadd.f32 %v3411_v31, %v4472_v29 }
 0x180   : > { %v3348_v41 = vpop.f32.mrb[60].mxu1  ;;  %v3412_v40 = vpop.f32.mrb[60].mxu0 }
 0x181   : > { %v3349_v42 = vpop.f32.mrb[61].mxu1  ;;  %v3413_v43 = vpop.f32.mrb[61].mxu0 }
 0x182   : > { %v3350_v51 = vadd.f32 %v3349_v42, %v3348_v41  ;;  %v3414_v49 = vadd.f32 %v3413_v43, %v3412_v40  ;;  %v3351_v44 = vpop.f32.mrb[62].mxu1  ;;  %v3415_v47 = vpop.f32.mrb[62].mxu0 }
 0x183   : > { %v3352_v21 = vpop.f32.mrb[63].mxu1  ;;  %v3416_v12 = vpop.f32.mrb[63].mxu0 }
 0x184   : > { %v4580_v52 = vadd.f32 %v3350_v51, %v1835_v35  ;;  %v4583_v29 = vadd.f32 %v3414_v49, %v4484_v26  ;;  %v3353_v57 = vadd.f32 %v3352_v21, %v3351_v44  ;;  %v3417_v1 = vadd.f32 %v3416_v12, %v3415_v47 }
 0x185   : > { %v1846_v26 = vadd.f32 %v4383_v6, %v4424_v55  ;;  %v1851_v6 = vadd.f32 %v4389_v14, %v4424_v55 }
 0x186   : > { %v4585_v58 = vadd.f32 %v3353_v57, %v1838_v63  ;;  %v4588_v48 = vadd.f32 %v3417_v1, %v4488_v45 }
 0x188   : > { %v3354_v2 = vpop.f32.mrb[64].mxu1  ;;  %v3418_v7 = vpop.f32.mrb[64].mxu0 }
 0x189   : > { %v3355_v11 = vpop.f32.mrb[65].mxu1  ;;  %v3419_v8 = vpop.f32.mrb[65].mxu0 }
 0x18a   : > { %v3356_v37 = vadd.f32 %v3355_v11, %v3354_v2  ;;  %v3420_v9 = vadd.f32 %v3419_v8, %v3418_v7  ;;  %v3357_v16 = vpop.f32.mrb[66].mxu1  ;;  %v3421_v18 = vpop.f32.mrb[66].mxu0 }
 0x18b   : > { %v3358_v19 = vpop.f32.mrb[67].mxu1  ;;  %v3422_v36 = vpop.f32.mrb[67].mxu0 }
 0x18c   : > { %v4594_v20 = vadd.f32 %v3356_v37, %v1843_v60  ;;  %v4597_v45 = vadd.f32 %v3420_v9, %v4498_v50  ;;  %v3359_v27 = vadd.f32 %v3358_v19, %v3357_v16  ;;  %v3423_v23 = vadd.f32 %v3422_v36, %v3421_v18 }
 0x18d   : > { %v1854_v50 = vadd.f32 %v4395_v22, %v4424_v55  ;;  %v1859_v22 = vadd.f32 %v4401_v30, %v4424_v55 }
 0x18e   : > { %v4599_v31 = vadd.f32 %v3359_v27, %v1846_v26  ;;  %v4602_v62 = vadd.f32 %v3423_v23, %v4500_v56 }
 0x190   : > { %v3360_v41 = vpop.f32.mrb[68].mxu1  ;;  %v3424_v40 = vpop.f32.mrb[68].mxu0 }
 0x191   : > { %v3361_v42 = vpop.f32.mrb[69].mxu1  ;;  %v3425_v43 = vpop.f32.mrb[69].mxu0 }
 0x192   : > { %v3362_v35 = vadd.f32 %v3361_v42, %v3360_v41  ;;  %v3426_v51 = vadd.f32 %v3425_v43, %v3424_v40  ;;  %v3363_v49 = vpop.f32.mrb[70].mxu1  ;;  %v3427_v44 = vpop.f32.mrb[70].mxu0 }
 0x193   : > { %v3364_v47 = vpop.f32.mrb[71].mxu1  ;;  %v3428_v63 = vpop.f32.mrb[71].mxu0 }
 0x194   : > { %v4608_v21 = vadd.f32 %v3362_v35, %v1851_v6  ;;  %v4611_v56 = vadd.f32 %v3426_v51, %v4508_v10  ;;  %v3365_v12 = vadd.f32 %v3364_v47, %v3363_v49  ;;  %v3429_v57 = vadd.f32 %v3428_v63, %v3427_v44 }
 0x195   : > { %v1862_v10 = vadd.f32 %v4407_v38, %v4424_v55  ;;  %v1867_v38 = vadd.f32 %v4413_v46, %v4424_v55 }
 0x196   : > { %v4613_v1 = vadd.f32 %v3365_v12, %v1854_v50  ;;  %v4616_v14 = vadd.f32 %v3429_v57, %v4510_v17 }
 0x198   : > { %v3366_v2 = vpop.f32.mrb[72].mxu1  ;;  %v3430_v7 = vpop.f32.mrb[72].mxu0 }
 0x199   : > { %v3367_v11 = vpop.f32.mrb[73].mxu1  ;;  %v3431_v8 = vpop.f32.mrb[73].mxu0 }
 0x19a   : > { %v3368_v60 = vadd.f32 %v3367_v11, %v3366_v2  ;;  %v3432_v37 = vadd.f32 %v3431_v8, %v3430_v7  ;;  %v3369_v9 = vpop.f32.mrb[74].mxu1  ;;  %v3433_v16 = vpop.f32.mrb[74].mxu0 }
 0x19b   : > { %v3370_v18 = vpop.f32.mrb[75].mxu1  ;;  %v3434_v26 = vpop.f32.mrb[75].mxu0 }
 0x19c   : > { %v4622_v19 = vadd.f32 %v3368_v60, %v1859_v22  ;;  %v4625_v17 = vadd.f32 %v3432_v37, %v4518_v34  ;;  %v3371_v36 = vadd.f32 %v3370_v18, %v3369_v9  ;;  %v3435_v27 = vadd.f32 %v3434_v26, %v3433_v16 }
 0x19d   : > { %v1870_v34 = vadd.f32 %v4419_v54, %v4424_v55 }
 0x19e   : > { %v4627_v23 = vadd.f32 %v3371_v36, %v1862_v10  ;;  %v4630_v30 = vadd.f32 %v3435_v27, %v4522_v53 }
 0x1a0   : > { %v3372_v41 = vpop.f32.mrb[76].mxu1  ;;  %v3436_v40 = vpop.f32.mrb[76].mxu0 }
 0x1a1   : > { %v3373_v42 = vpop.f32.mrb[77].mxu1  ;;  %v3437_v43 = vpop.f32.mrb[77].mxu0 }
 0x1a2   : > { %v3374_v6 = vadd.f32 %v3373_v42, %v3372_v41  ;;  %v3438_v35 = vadd.f32 %v3437_v43, %v3436_v40  ;;  %v3375_v51 = vpop.f32.mrb[78].mxu1  ;;  %v3439_v49 = vpop.f32.mrb[78].mxu0 }
 0x1a3   : > { %v3376_v44 = vpop.f32.mrb[79].mxu1  ;;  %v3440_v50 = vpop.f32.mrb[79].mxu0 }
 0x1a4   : > { %v4636_v47 = vadd.f32 %v3374_v6, %v1867_v38  ;;  %v4639_v53 = vadd.f32 %v3438_v35, %v4530_v59  ;;  %v3377_v63 = vadd.f32 %v3376_v44, %v3375_v51  ;;  %v3441_v12 = vadd.f32 %v3440_v50, %v3439_v49 }
 0x1a6   : > { %v4641_v57 = vadd.f32 %v3377_v63, %v1870_v34  ;;  %v4644_v46 = vadd.f32 %v3441_v12, %v4534_v4 }
 0x1a8   : > { %v3442_v2 = vpop.f32.mrb[80].mxu0  ;;  %v3506_v7 = vpop.f32.mrb[80].mxu1 }
 0x1a9   : > { %v3443_v11 = vpop.f32.mrb[81].mxu0  ;;  %v3507_v8 = vpop.f32.mrb[81].mxu1 }
 0x1aa   : > { %v3444_v22 = vadd.f32 %v3443_v11, %v3442_v2  ;;  %v3508_v54 = vadd.f32 %v3507_v8, %v3506_v7  ;;  %v3445_v55 = vpop.f32.mrb[82].mxu0  ;;  %v3509_v60 = vpop.f32.mrb[82].mxu1 }
 0x1ab   : > { %v3446_v37 = vpop.f32.mrb[83].mxu0  ;;  %v3510_v9 = vpop.f32.mrb[83].mxu1 }
 0x1ac   : > { %v4647_v59 = vadd.f32 %v3444_v22, %v4539_v5  ;;  %v3447_v16 = vadd.f32 %v3446_v37, %v3445_v55  ;;  %v3511_v10 = vadd.f32 %v3510_v9, %v3509_v60  ;;  %v4650_v18 = vadd.f32 %v3508_v54, %v4542_v28 }
 0x1ae   : > { %v4653_v4 = vadd.f32 %v3447_v16, %v4544_v39  ;;  %v4656_v26 = vadd.f32 %v3511_v10, %v4547_v33 }
 0x1b0   : > { %v3448_v36 = vpop.f32.mrb[84].mxu0  ;;  %v3512_v27 = vpop.f32.mrb[84].mxu1 }
 0x1b1   : > { %v3449_v41 = vpop.f32.mrb[85].mxu0  ;;  %v3513_v40 = vpop.f32.mrb[85].mxu1 }
 0x1b2   : > { %v3450_v42 = vadd.f32 %v3449_v41, %v3448_v36  ;;  %v3514_v43 = vadd.f32 %v3513_v40, %v3512_v27  ;;  %v3451_v38 = vpop.f32.mrb[86].mxu0  ;;  %v3515_v5 = vpop.f32.mrb[86].mxu1 }
 0x1b3   : > { %v3452_v6 = vpop.f32.mrb[87].mxu0  ;;  %v3516_v35 = vpop.f32.mrb[87].mxu1 }
 0x1b4   : > { %v4659_v51 = vadd.f32 %v3450_v42, %v4552_v0  ;;  %v3453_v28 = vadd.f32 %v3452_v6, %v3451_v38  ;;  %v3517_v49 = vadd.f32 %v3516_v35, %v3515_v5  ;;  %v4662_v39 = vadd.f32 %v3514_v43, %v4555_v61 }
 0x1b6   : > { %v4665_v33 = vadd.f32 %v3453_v28, %v4557_v3  ;;  %v4668_v34 = vadd.f32 %v3517_v49, %v4560_v15 }
 0x1b8   : > { %v3454_v44 = vpop.f32.mrb[88].mxu0  ;;  %v3518_v50 = vpop.f32.mrb[88].mxu1 }
 0x1b9   : > { %v3455_v63 = vpop.f32.mrb[89].mxu0  ;;  %v3519_v12 = vpop.f32.mrb[89].mxu1 }
 0x1ba   : > { %v3456_v2 = vadd.f32 %v3455_v63, %v3454_v44  ;;  %v3520_v7 = vadd.f32 %v3519_v12, %v3518_v50  ;;  %v3457_v11 = vpop.f32.mrb[90].mxu0  ;;  %v3521_v0 = vpop.f32.mrb[90].mxu1 }
 0x1bb   : > { %v3458_v8 = vpop.f32.mrb[91].mxu0  ;;  %v3522_v22 = vpop.f32.mrb[91].mxu1 }
 0x1bc   : > { %v4671_v54 = vadd.f32 %v3456_v2, %v4566_v25  ;;  %v3459_v61 = vadd.f32 %v3458_v8, %v3457_v11  ;;  %v3523_v55 = vadd.f32 %v3522_v22, %v3521_v0  ;;  %v4674_v3 = vadd.f32 %v3520_v7, %v4569_v13 }
 0x1be   : > { %v4677_v15 = vadd.f32 %v3459_v61, %v4571_v32  ;;  %v4680_v60 = vadd.f32 %v3523_v55, %v4574_v24 }
 0x1c0   : > { %v3460_v37 = vpop.f32.mrb[92].mxu0  ;;  %v3524_v9 = vpop.f32.mrb[92].mxu1 }
 0x1c1   : > { %v3461_v16 = vpop.f32.mrb[93].mxu0  ;;  %v3525_v10 = vpop.f32.mrb[93].mxu1 }
 0x1c2   : > { %v3462_v36 = vadd.f32 %v3461_v16, %v3460_v37  ;;  %v3526_v27 = vadd.f32 %v3525_v10, %v3524_v9  ;;  %v3463_v41 = vpop.f32.mrb[94].mxu0  ;;  %v3527_v25 = vpop.f32.mrb[94].mxu1 }
 0x1c3   : > { %v3464_v40 = vpop.f32.mrb[95].mxu0  ;;  %v3528_v42 = vpop.f32.mrb[95].mxu1 }
 0x1c4   : > { %v4683_v43 = vadd.f32 %v3462_v36, %v4580_v52  ;;  %v3465_v13 = vadd.f32 %v3464_v40, %v3463_v41  ;;  %v3529_v38 = vadd.f32 %v3528_v42, %v3527_v25  ;;  %v4686_v32 = vadd.f32 %v3526_v27, %v4583_v29 }
 0x1c5   : > { %v2549_v40 = vlaneseq }
 0x1c6   : > { %v4689_v24 = vadd.f32 %v3465_v13, %v4585_v58  ;;  %v4692_v5 = vadd.f32 %v3529_v38, %v4588_v48 }
 0x1c8   : > { %v3466_v6 = vpop.f32.mrb[96].mxu0  ;;  %v3530_v35 = vpop.f32.mrb[96].mxu1 }
 0x1c9   : > { %v3467_v28 = vpop.f32.mrb[97].mxu0  ;;  %v3531_v49 = vpop.f32.mrb[97].mxu1 }
 0x1ca   : > { %v3468_v44 = vadd.f32 %v3467_v28, %v3466_v6  ;;  %v3532_v50 = vadd.f32 %v3531_v49, %v3530_v35  ;;  %v3469_v63 = vpop.f32.mrb[98].mxu0  ;;  %v3533_v52 = vpop.f32.mrb[98].mxu1 }
 0x1cb   : > { %v3470_v12 = vpop.f32.mrb[99].mxu0  ;;  %v3534_v2 = vpop.f32.mrb[99].mxu1 }
 0x1cc   : > { %v4695_v7 = vadd.f32 %v3468_v44, %v4594_v20  ;;  %v3471_v29 = vadd.f32 %v3470_v12, %v3469_v63  ;;  %v3535_v11 = vadd.f32 %v3534_v2, %v3533_v52  ;;  %v4698_v58 = vadd.f32 %v3532_v50, %v4597_v45 }
 0x1ce   : > { %v4701_v48 = vadd.f32 %v3471_v29, %v4599_v31  ;;  %v4704_v0 = vadd.f32 %v3535_v11, %v4602_v62 }
 0x1d0   : > { %v3472_v8 = vpop.f32.mrb[100].mxu0  ;;  %v3536_v22 = vpop.f32.mrb[100].mxu1 }
 0x1d1   : > { %v3473_v61 = vpop.f32.mrb[101].mxu0  ;;  %v3537_v55 = vpop.f32.mrb[101].mxu1 }
 0x1d2   : > { %v3474_v37 = vadd.f32 %v3473_v61, %v3472_v8  ;;  %v3538_v9 = vadd.f32 %v3537_v55, %v3536_v22  ;;  %v3475_v16 = vpop.f32.mrb[102].mxu0  ;;  %v3539_v20 = vpop.f32.mrb[102].mxu1  ;;  %v4734_v22 = vstv %s3151_s28 }
 0x1d3   : > { %v3476_v10 = vpop.f32.mrb[103].mxu0  ;;  %v3540_v36 = vpop.f32.mrb[103].mxu1 }
 0x1d4   : > { %v4707_v27 = vadd.f32 %v3474_v37, %v4608_v21  ;;  %v3477_v45 = vadd.f32 %v3476_v10, %v3475_v16  ;;  %v3541_v41 = vadd.f32 %v3540_v36, %v3539_v20  ;;  %v4710_v31 = vadd.f32 %v3538_v9, %v4611_v56 }
 0x1d5   : > { %v4718_v56 = vshrl.u32 %v2549_v40, 7 }
 0x1d6   : > { %v4713_v62 = vadd.f32 %v3477_v45, %v4613_v1  ;;  %v4716_v25 = vadd.f32 %v3541_v41, %v4616_v14 }
 0x1d7   : > { %v2552_v29 = vadd.s32 16, %v4718_v56  ;;  %v2553_v16 = vadd.s32 24, %v4718_v56  ;;  %v2584_v36 = vadd.s32 %v4734_v22, %v4718_v56  ;;  %v2556_v45 = vadd.s32 48, %v4718_v56 }
 0x1d8   : > { %v3478_v42 = vpop.f32.mrb[104].mxu0  ;;  %v3542_v13 = vpop.f32.mrb[104].mxu1  ;;  %v2554_v41 = vadd.s32 32, %v4718_v56 }
 0x1d9   : > { %v3479_v38 = vpop.f32.mrb[105].mxu0  ;;  %v3543_v6 = vpop.f32.mrb[105].mxu1  ;;  %vm2616_vm1 = vcmp.lt.s32.totalorder %v2584_v36, 512 }
 0x1da   : > { %v3480_v35 = vadd.f32 %v3479_v38, %v3478_v42  ;;  %v3544_v21 = vadd.f32 %v3543_v6, %v3542_v13  ;;  %v3481_v28 = vpop.f32.mrb[106].mxu0  ;;  %v3545_v49 = vpop.f32.mrb[106].mxu1  ;;  %v2557_v6 = vadd.s32 56, %v4718_v56 }
 0x1db   : > { %v3482_v44 = vpop.f32.mrb[107].mxu0  ;;  %v3546_v50 = vpop.f32.mrb[107].mxu1 }
 0x1dc   : > { %v4721_v1 = vadd.f32 %v3480_v35, %v4622_v19  ;;  %v3483_v63 = vadd.f32 %v3482_v44, %v3481_v28  ;;  %v3547_v14 = vadd.f32 %v3546_v50, %v3545_v49  ;;  %v4724_v52 = vadd.f32 %v3544_v21, %v4625_v17 }
 0x1dd   : > { %v2555_v35 = vadd.s32 40, %v4718_v56  ;;  %v2587_v28 = vadd.s32 %v4734_v22, %v2553_v16  ;;  %v2560_v16 = vadd.s32 80, %v4718_v56 }
 0x1de   : > { %v4728_v12 = vadd.f32 %v3483_v63, %v4627_v23  ;;  %v4731_v2 = vadd.f32 %v3547_v14, %v4630_v30  ;;  %v2551_v23 = vadd.s32 8, %v4718_v56  ;;  %v2586_v30 = vadd.s32 %v4734_v22, %v2552_v29 }
 0x1df   : > { %vm2619_vm2 = vcmp.lt.s32.totalorder %v2587_v28, 512 }
 0x1e0   : > { %v3484_v11 = vpop.f32.mrb[108].mxu0  ;;  %v3548_v8 = vpop.f32.mrb[108].mxu1  ;;  %v2585_v49 = vadd.s32 %v4734_v22, %v2551_v23  ;;  %vm2618_vm0 = vcmp.lt.s32.totalorder %v2586_v30, 512  ;;  %v2561_v23 = vadd.s32 88, %v4718_v56 }
 0x1e1   : > { %v3485_v19 = vpop.f32.mrb[109].mxu0  ;;  %v3549_v61 = vpop.f32.mrb[109].mxu1 }
 0x1e2   : > { %v3486_v55 = vadd.f32 %v3485_v19, %v3484_v11  ;;  %v3550_v37 = vadd.f32 %v3549_v61, %v3548_v8  ;;  %v3487_v9 = vpop.f32.mrb[110].mxu0  ;;  %v3551_v17 = vpop.f32.mrb[110].mxu1  ;;  %v4767_v11 = vadd.s32 %v4734_v22, %v2557_v6  ;;  %v2558_v8 = vadd.s32 64, %v4718_v56 }
 0x1e3   : > { %v3488_v20 = vpop.f32.mrb[111].mxu0  ;;  %v3552_v10 = vpop.f32.mrb[111].mxu1  ;;  %vm2617_vm3 = vcmp.lt.s32.totalorder %v2585_v49, 512  ;;  %v4805_v30 = vadd.s32 %v4734_v22, %v2561_v23  ;;  %v2563_v23 = vadd.s32 104, %v4718_v56 }
 0x1e4   : > { %v4744_v40 = vadd.f32 %v3486_v55, %v4636_v47  ;;  %v3489_v42 = vadd.f32 %v3488_v20, %v3487_v9  ;;  %v3553_v13 = vadd.f32 %v3552_v10, %v3551_v17  ;;  %v4747_v38 = vadd.f32 %v3550_v37, %v4639_v53 }
 0x1e5   : > { %v4760_v47 = vadd.s32 %v4734_v22, %v2556_v45  ;;  %v4763_v53 = vadd.s32 %v4734_v22, %v2554_v41  ;;  %v2559_v45 = vadd.s32 72, %v4718_v56  ;;  %vm2623_vm6 = vcmp.lt.s32.totalorder %v4767_v11, 512 }
 0x1e6   : > { %v4752_v21 = vadd.f32 %v3489_v42, %v4641_v57  ;;  %v4757_v44 = vadd.f32 %v3553_v13, %v4644_v46  ;;  %v4770_v46 = vadd.s32 %v4734_v22, %v2555_v35  ;;  %vm2627_vm10 = vcmp.lt.s32.totalorder %v4805_v30, 512 }
 0x1e7   : > { %vm2622_vm4 = vcmp.lt.s32.totalorder %v4760_v47, 512  ;;  %vm2620_vm5 = vcmp.lt.s32.totalorder %v4763_v53, 512  ;;  %v4808_v49 = vadd.s32 %v4734_v22, %v2559_v45 }
 0x1e8   : > { %v3554_v50 = vpop.f32.mrb[112].mxu1  ;;  %v3644_v63 = vpop.f32.mrb[112].mxu0  ;;  %vm2621_vm7 = vcmp.lt.s32.totalorder %v4770_v46, 512 }
 0x1e9   : > { %v2399_v57 = vadd.f32 %v3644_v63, %v4662_v39  ;;  %v3555_v14 = vpop.f32.mrb[113].mxu1  ;;  %v2390_v29 = vpop.f32.mrb[113].mxu0  ;;  %v4801_v63 = vadd.s32 %v4734_v22, %v2560_v16  ;;  %vm2625_vm11 = vcmp.lt.s32.totalorder %v4808_v49, 512 }
 0x1ea   : > { %v3556_v19 = vadd.f32 %v3555_v14, %v3554_v50  ;;  %v2391_v61 = vadd.f32 %v2390_v29, %v4650_v18  ;;  %v3557_v55 = vpop.f32.mrb[114].mxu1  ;;  %v3645_v37 = vpop.f32.mrb[114].mxu0 }
 0x1eb   : > { %2519 = vst [vmem:[%s4033_s25 + $0x10] sm:$0xff] %v2399_v57  ;;  %v2402_v39 = vadd.f32 %v3645_v37, %v4668_v34  ;;  %v3558_v9 = vpop.f32.mrb[115].mxu1  ;;  %v2393_v17 = vpop.f32.mrb[115].mxu0  ;;  %v4788_v34 = vadd.s32 %v4734_v22, %v2558_v8  ;;  %v2714_v42 = vsel %vm2618_vm0, %v2399_v57, 0.0  ;;  %v2562_v57 = vadd.s32 96, %v4718_v56 }
 0x1ec   : > { %2517 = vst [vmem:[%s4033_s25] sm:$0xff] %v2391_v61  ;;  %v2712_v18 = vsel %vm2616_vm1, %v2391_v61, 0.0  ;;  %v3559_v20 = vadd.f32 %v3558_v9, %v3557_v55  ;;  %v2394_v10 = vadd.f32 %v2393_v17, %v4656_v26  ;;  %v4791_v41 = vadd.f32 %v3556_v19, %v4647_v59 }
 0x1ed   : > { %2520 = vst [vmem:[%s4033_s25 + $0x18] sm:$0xff] %v2402_v39  ;;  %v2564_v26 = vadd.s32 112, %v4718_v56  ;;  %v2785_v6 = vmul.f32 %v2712_v18, %v2712_v18  ;;  %v2715_v14 = vsel %vm2619_vm2, %v2402_v39, 0.0  ;;  %vm2624_vm8 = vcmp.lt.s32.totalorder %v4788_v34, 512 }
 0x1ee   : > { %2518 = vst [vmem:[%s4033_s25 + $0x8] sm:$0xff] %v2394_v10  ;;  %v2713_v36 = vsel %vm2617_vm3, %v2394_v10, 0.0  ;;  %v4798_v13 = vadd.f32 %v3559_v20, %v4653_v4  ;;  %v2787_v4 = vmul.f32 %v2714_v42, %v2714_v42  ;;  %vm2626_vm9 = vcmp.lt.s32.totalorder %v4801_v63, 512 }
 0x1ef   : > { %v2745_v35 = vadd.f32 %v2713_v36, %v2712_v18  ;;  %v2786_v50 = vmul.f32 %v2713_v36, %v2713_v36  ;;  %v4815_v16 = vadd.s32 %v4734_v22, %v2564_v26  ;;  %v2788_v18 = vmul.f32 %v2715_v14, %v2715_v14 }
 0x1f0   : > { %v3560_v59 = vpop.f32.mrb[116].mxu1  ;;  %v3648_v29 = vpop.f32.mrb[116].mxu0 }
 0x1f1   : > { %v2746_v8 = vadd.f32 %v2745_v35, %v2714_v42  ;;  %v2817_v19 = vadd.f32 %v2786_v50, %v2785_v6  ;;  %v2415_v61 = vadd.f32 %v3648_v29, %v4686_v32  ;;  %v3561_v55 = vpop.f32.mrb[117].mxu1  ;;  %v2406_v37 = vpop.f32.mrb[117].mxu0  ;;  %v2565_v6 = vadd.s32 120, %v4718_v56 }
 0x1f2   : > { %v3562_v28 = vadd.f32 %v3561_v55, %v3560_v59  ;;  %v2407_v39 = vadd.f32 %v2406_v37, %v4674_v3  ;;  %v3563_v9 = vpop.f32.mrb[118].mxu1  ;;  %v3649_v17 = vpop.f32.mrb[118].mxu0  ;;  %v4843_v55 = vadd.s32 %v4734_v22, %v2563_v23  ;;  %vm2630_vm13 = vcmp.lt.s32.totalorder %v4815_v16, 512 }
 0x1f3   : > { %v2818_v20 = vadd.f32 %v2817_v19, %v2787_v4  ;;  %2523 = vst [vmem:[%s4033_s25 + $0x30] sm:$0xff] %v2415_v61  ;;  %v2747_v32 = vadd.f32 %v2746_v8, %v2715_v14  ;;  %v2418_v10 = vadd.f32 %v3649_v17, %v4692_v5  ;;  %v3564_v45 = vpop.f32.mrb[119].mxu1  ;;  %v2409_v42 = vpop.f32.mrb[119].mxu0  ;;  %v4829_v5 = vadd.s32 %v4734_v22, %v2562_v57 }
 0x1f4   : > { %2521 = vst [vmem:[%s4033_s25 + $0x20] sm:$0xff] %v2407_v39  ;;  %v2716_v3 = vsel %vm2620_vm5, %v2407_v39, 0.0  ;;  %v3565_v36 = vadd.f32 %v3564_v45, %v3563_v9  ;;  %v2410_v26 = vadd.f32 %v2409_v42, %v4680_v60  ;;  %v2718_v14 = vsel %vm2622_vm4, %v2415_v61, 0.0 }
 0x1f5   : > { %v2748_v35 = vadd.f32 %v2747_v32, %v2716_v3  ;;  %v2789_v50 = vmul.f32 %v2716_v3, %v2716_v3  ;;  %v2819_v59 = vadd.f32 %v2818_v20, %v2788_v18  ;;  %2524 = vst [vmem:[%s4033_s25 + $0x38] sm:$0xff] %v2418_v10  ;;  %v4837_v60 = vadd.f32 %v3562_v28, %v4659_v51 }
 0x1f6   : > { %2522 = vst [vmem:[%s4033_s25 + $0x28] sm:$0xff] %v2410_v26  ;;  %v2717_v53 = vsel %vm2621_vm7, %v2410_v26, 0.0  ;;  %v4840_v29 = vadd.f32 %v3565_v36, %v4665_v33  ;;  %v2719_v47 = vsel %vm2623_vm6, %v2418_v10, 0.0  ;;  %v4849_v46 = vadd.s32 %v4734_v22, %v2565_v6 }
 0x1f7   : > { %v2820_v4 = vadd.f32 %v2819_v59, %v2789_v50  ;;  %v2749_v8 = vadd.f32 %v2748_v35, %v2717_v53  ;;  %v2790_v19 = vmul.f32 %v2717_v53, %v2717_v53  ;;  %v2566_v51 = vadd.s32 128, %v4718_v56 }
 0x1f8   : > { %v3566_v57 = vpop.f32.mrb[120].mxu1  ;;  %v3652_v61 = vpop.f32.mrb[120].mxu0  ;;  %v2791_v33 = vmul.f32 %v2718_v14, %v2718_v14  ;;  %vm2628_vm12 = vcmp.lt.s32.totalorder %v4829_v5, 512  ;;  %v2568_v32 = vadd.s32 144, %v4718_v56  ;;  %v2569_v10 = vadd.s32 152, %v4718_v56 }
 0x1f9   : > { %v2750_v37 = vadd.f32 %v2749_v8, %v2718_v14  ;;  %v2821_v28 = vadd.f32 %v2820_v4, %v2790_v19  ;;  %v2431_v39 = vadd.f32 %v3652_v61, %v4710_v31  ;;  %v3567_v9 = vpop.f32.mrb[121].mxu1  ;;  %v2422_v17 = vpop.f32.mrb[121].mxu0  ;;  %v2792_v45 = vmul.f32 %v2719_v47, %v2719_v47 }
 0x1fa   : > { %v3568_v11 = vadd.f32 %v3567_v9, %v3566_v57  ;;  %v2423_v23 = vadd.f32 %v2422_v17, %v4698_v58  ;;  %v3569_v18 = vpop.f32.mrb[122].mxu1  ;;  %v3653_v20 = vpop.f32.mrb[122].mxu0  ;;  %vm2629_vm14 = vcmp.lt.s32.totalorder %v4843_v55, 512  ;;  %v2567_v50 = vadd.s32 136, %v4718_v56 }
 0x1fb   : > { %v2822_v42 = vadd.f32 %v2821_v28, %v2791_v33  ;;  %2527 = vst [vmem:[%s4033_s25 + $0x50] sm:$0xff] %v2431_v39  ;;  %v2751_v3 = vadd.f32 %v2750_v37, %v2719_v47  ;;  %v2434_v31 = vadd.f32 %v3653_v20, %v4716_v25  ;;  %v3570_v36 = vpop.f32.mrb[123].mxu1  ;;  %v2425_v26 = vpop.f32.mrb[123].mxu0  ;;  %vm2631_vm15 = vcmp.lt.s32.totalorder %v4849_v46, 512 }
 0x1fc   : > { %2525 = vst [vmem:[%s4033_s25 + $0x40] sm:$0xff] %v2423_v23  ;;  %v2720_v58 = vsel %vm2624_vm8, %v2423_v23, 0.0  ;;  %v3571_v6 = vadd.f32 %v3570_v36, %v3569_v18  ;;  %v2426_v35 = vadd.f32 %v2425_v26, %v4704_v0  ;;  %v4869_v25 = vadd.s32 %v4734_v22, %v2566_v51 }
 0x1fd   : > { %v2752_v59 = vadd.f32 %v2751_v3, %v2720_v58  ;;  %v2793_v14 = vmul.f32 %v2720_v58, %v2720_v58  ;;  %v2823_v53 = vadd.f32 %v2822_v42, %v2792_v45  ;;  %2528 = vst [vmem:[%s4033_s25 + $0x58] sm:$0xff] %v2434_v31  ;;  %v2722_v4 = vsel %vm2626_vm9, %v2431_v39, 0.0 }
 0x1fe   : > { %2526 = vst [vmem:[%s4033_s25 + $0x48] sm:$0xff] %v2426_v35  ;;  %v2721_v34 = vsel %vm2625_vm11, %v2426_v35, 0.0  ;;  %v4877_v0 = vadd.f32 %v3568_v11, %v4671_v54  ;;  %v4880_v8 = vadd.f32 %v3571_v6, %v4677_v15  ;;  %v4883_v61 = vadd.s32 %v4734_v22, %v2568_v32 }
 0x1ff   : > { %v2824_v19 = vadd.f32 %v2823_v53, %v2793_v14  ;;  %v2753_v47 = vadd.f32 %v2752_v59, %v2721_v34  ;;  %v2794_v57 = vmul.f32 %v2721_v34, %v2721_v34  ;;  %v2723_v63 = vsel %vm2627_vm10, %v2434_v31, 0.0 }
 0x200   : > { %v3572_v51 = vpop.f32.mrb[124].mxu1  ;;  %v3656_v33 = vpop.f32.mrb[124].mxu0  ;;  %v4888_v49 = vadd.s32 %v4734_v22, %v2569_v10  ;;  %v4891_v54 = vadd.s32 %v4734_v22, %v2567_v50  ;;  %v2570_v15 = vadd.s32 160, %v4718_v56  ;;  %v2795_v37 = vmul.f32 %v2722_v4, %v2722_v4 }
 0x201   : > { %v2754_v28 = vadd.f32 %v2753_v47, %v2722_v4  ;;  %v2825_v39 = vadd.f32 %v2824_v19, %v2794_v57  ;;  %v2447_v9 = vadd.f32 %v3656_v33, %v4747_v38  ;;  %v3573_v17 = vpop.f32.mrb[125].mxu1  ;;  %v2438_v11 = vpop.f32.mrb[125].mxu0  ;;  %vm2632_vm0 = vcmp.lt.s32.totalorder %v4869_v25, 512 }
 0x202   : > { %v3574_v30 = vadd.f32 %v3573_v17, %v3572_v51  ;;  %v2439_v23 = vadd.f32 %v2438_v11, %v4724_v52  ;;  %v3575_v18 = vpop.f32.mrb[126].mxu1  ;;  %v3657_v20 = vpop.f32.mrb[126].mxu0  ;;  %v2572_v32 = vadd.s32 176, %v4718_v56  ;;  %v2573_v10 = vadd.s32 184, %v4718_v56 }
 0x203   : > { %v2796_v45 = vmul.f32 %v2723_v63, %v2723_v63  ;;  %v2826_v42 = vadd.f32 %v2825_v39, %v2795_v37  ;;  %2531 = vst [vmem:[%s4033_s25 + $0x70] sm:$0xff] %v2447_v9  ;;  %v2755_v3 = vadd.f32 %v2754_v28, %v2723_v63  ;;  %v2450_v38 = vadd.f32 %v3657_v20, %v4757_v44  ;;  %v3576_v31 = vpop.f32.mrb[127].mxu1  ;;  %v2441_v36 = vpop.f32.mrb[127].mxu0 }
 0x204   : > { %vm2634_vm1 = vcmp.lt.s32.totalorder %v4883_v61, 512  ;;  %2529 = vst [vmem:[%s4033_s25 + $0x60] sm:$0xff] %v2439_v23  ;;  %v2724_v52 = vsel %vm2628_vm12, %v2439_v23, 0.0  ;;  %v3577_v26 = vadd.f32 %v3576_v31, %v3575_v18  ;;  %v2442_v58 = vadd.f32 %v2441_v36, %v4731_v2 }
 0x205   : > { %v4907_v6 = vadd.s32 %v4734_v22, %v2570_v15  ;;  %v2756_v35 = vadd.f32 %v2755_v3, %v2724_v52  ;;  %v2797_v50 = vmul.f32 %v2724_v52, %v2724_v52  ;;  %v2827_v59 = vadd.f32 %v2826_v42, %v2796_v45  ;;  %2532 = vst [vmem:[%s4033_s25 + $0x78] sm:$0xff] %v2450_v38 }
 0x206   : > { %v2571_v44 = vadd.s32 168, %v4718_v56  ;;  %v2726_v14 = vsel %vm2630_vm13, %v2447_v9, 0.0  ;;  %2530 = vst [vmem:[%s4033_s25 + $0x68] sm:$0xff] %v2442_v58  ;;  %v2725_v5 = vsel %vm2629_vm14, %v2442_v58, 0.0  ;;  %v2318_v53 = vadd.f32 %v3574_v30, %v4683_v43 }
 0x207   : > { %v4918_v2 = vadd.f32 %v3577_v26, %v4689_v24  ;;  %v2828_v4 = vadd.f32 %v2827_v59, %v2797_v50  ;;  %v2757_v34 = vadd.f32 %v2756_v35, %v2725_v5  ;;  %v2798_v19 = vmul.f32 %v2725_v5, %v2725_v5 }
 0x208   : > { %v4921_v47 = vadd.s32 %v4734_v22, %v2572_v32  ;;  %v2727_v57 = vsel %vm2631_vm15, %v2450_v38, 0.0  ;;  %v3578_v16 = vpop.f32.mrb[128].mxu1  ;;  %v3660_v63 = vpop.f32.mrb[128].mxu0  ;;  %vm2635_vm2 = vcmp.lt.s32.totalorder %v4888_v49, 512  ;;  %vm2633_vm3 = vcmp.lt.s32.totalorder %v4891_v54, 512 }
 0x209   : > { %v4928_v43 = vadd.s32 %v4734_v22, %v2573_v10  ;;  %v2799_v24 = vmul.f32 %v2726_v14, %v2726_v14  ;;  %v2758_v55 = vadd.f32 %v2757_v34, %v2726_v14  ;;  %v2829_v51 = vadd.f32 %v2828_v4, %v2798_v19  ;;  %v3579_v15 = vpop.f32.mrb[129].mxu1  ;;  %v2454_v37 = vpop.f32.mrb[129].mxu0 }
 0x20a   : > { %v2463_v33 = vadd.f32 %v3660_v63, %v4837_v60  ;;  %vm2636_vm4 = vcmp.lt.s32.totalorder %v4907_v6, 512  ;;  %v3580_v46 = vadd.f32 %v3579_v15, %v3578_v16  ;;  %v2455_v28 = vadd.f32 %v2454_v37, %v4791_v41  ;;  %v3581_v39 = vpop.f32.mrb[130].mxu1  ;;  %v3661_v9 = vpop.f32.mrb[130].mxu0 }
 0x20b   : > { %v4934_v17 = vadd.s32 %v4734_v22, %v2571_v44  ;;  %v2576_v11 = vadd.s32 208, %v4718_v56  ;;  %v2800_v30 = vmul.f32 %v2727_v57, %v2727_v57  ;;  %v2830_v23 = vadd.f32 %v2829_v51, %v2799_v24  ;;  %v3582_v20 = vpop.f32.mrb[131].mxu1  ;;  %v2457_v32 = vpop.f32.mrb[131].mxu0 }
 0x20c   : > { %2535 = vst [vmem:[%s4033_s25 + $0x90] sm:$0xff] %v2463_v33  ;;  %v2759_v60 = vadd.f32 %v2758_v55, %v2727_v57  ;;  %v2466_v18 = vadd.f32 %v3661_v9, %v4840_v29  ;;  %vm2638_vm5 = vcmp.lt.s32.totalorder %v4921_v47, 512  ;;  %2533 = vst [vmem:[%s4033_s25 + $0x80] sm:$0xff] %v2455_v28  ;;  %v2728_v41 = vsel %vm2632_vm0, %v2455_v28, 0.0 }
 0x20d   : > { %v3583_v10 = vadd.f32 %v3582_v20, %v3581_v39  ;;  %v2458_v45 = vadd.f32 %v2457_v32, %v4798_v13  ;;  %v2574_v42 = vadd.s32 192, %v4718_v56  ;;  %v2801_v38 = vmul.f32 %v2728_v41, %v2728_v41 }
 0x20e   : > { %v2760_v3 = vadd.f32 %v2759_v60, %v2728_v41  ;;  %v2831_v31 = vadd.f32 %v2830_v23, %v2800_v30  ;;  %2536 = vst [vmem:[%s4033_s25 + $0x98] sm:$0xff] %v2466_v18  ;;  %v2577_v36 = vadd.s32 216, %v4718_v56  ;;  %v2730_v29 = vsel %vm2634_vm1, %v2463_v33, 0.0 }
 0x20f   : > { %2534 = vst [vmem:[%s4033_s25 + $0x88] sm:$0xff] %v2458_v45  ;;  %v2729_v52 = vsel %vm2633_vm3, %v2458_v45, 0.0  ;;  %v4953_v25 = vadd.f32 %v3580_v46, %v4695_v7  ;;  %v4956_v13 = vadd.f32 %v3583_v10, %v4701_v48  ;;  %vm2639_vm6 = vcmp.lt.s32.totalorder %v4928_v43, 512 }
 0x210   : > { %v2832_v26 = vadd.f32 %v2831_v31, %v2801_v38  ;;  %v2761_v58 = vadd.f32 %v2760_v3, %v2729_v52  ;;  %v2802_v35 = vmul.f32 %v2729_v52, %v2729_v52  ;;  %v2731_v50 = vsel %vm2635_vm2, %v2466_v18, 0.0  ;;  %v3584_v61 = vpop.f32.mrb[132].mxu1  ;;  %v3664_v59 = vpop.f32.mrb[132].mxu0 }
 0x211   : > { %vm2637_vm7 = vcmp.lt.s32.totalorder %v4934_v17, 512  ;;  %v4963_v54 = vadd.s32 %v4734_v22, %v2576_v11  ;;  %v2575_v7 = vadd.s32 200, %v4718_v56  ;;  %v2803_v48 = vmul.f32 %v2730_v29, %v2730_v29  ;;  %v3585_v4 = vpop.f32.mrb[133].mxu1  ;;  %v2470_v34 = vpop.f32.mrb[133].mxu0 }
 0x212   : > { %v2762_v44 = vadd.f32 %v2761_v58, %v2730_v29  ;;  %v2833_v14 = vadd.f32 %v2832_v26, %v2802_v35  ;;  %v2479_v5 = vadd.f32 %v3664_v59, %v2318_v53  ;;  %v3586_v19 = vadd.f32 %v3585_v4, %v3584_v61  ;;  %v3587_v57 = vpop.f32.mrb[134].mxu1  ;;  %v3665_v16 = vpop.f32.mrb[134].mxu0 }
 0x213   : > { %v2471_v49 = vadd.f32 %v2470_v34, %v4877_v0  ;;  %v2608_v63 = vadd.s32 %v4734_v22, %v2574_v42  ;;  %v4969_v24 = vadd.s32 %v4734_v22, %v2577_v36  ;;  %v2804_v55 = vmul.f32 %v2731_v50, %v2731_v50  ;;  %v3588_v15 = vpop.f32.mrb[135].mxu1  ;;  %v2473_v37 = vpop.f32.mrb[135].mxu0 }
 0x214   : > { %v2834_v51 = vadd.f32 %v2833_v14, %v2803_v48  ;;  %2539 = vst [vmem:[%s4033_s25 + $0xb0] sm:$0xff] %v2479_v5  ;;  %v2763_v33 = vadd.f32 %v2762_v44, %v2731_v50  ;;  %v2482_v53 = vadd.f32 %v3665_v16, %v4918_v2  ;;  %v3589_v46 = vadd.f32 %v3588_v15, %v3587_v57 }
 0x215   : > { %2537 = vst [vmem:[%s4033_s25 + $0xa0] sm:$0xff] %v2471_v49  ;;  %v2732_v0 = vsel %vm2636_vm4, %v2471_v49, 0.0  ;;  %v2474_v28 = vadd.f32 %v2473_v37, %v4880_v8  ;;  %v2609_v39 = vadd.s32 %v4734_v22, %v2575_v7  ;;  %v2578_v23 = vadd.s32 224, %v4718_v56 }
 0x216   : > { %v2764_v9 = vadd.f32 %v2763_v33, %v2732_v0  ;;  %v2805_v11 = vmul.f32 %v2732_v0, %v2732_v0  ;;  %v2835_v30 = vadd.f32 %v2834_v51, %v2804_v55  ;;  %2540 = vst [vmem:[%s4033_s25 + $0xb8] sm:$0xff] %v2482_v53  ;;  %v2734_v2 = vsel %vm2638_vm5, %v2479_v5, 0.0 }
 0x217   : > { %2538 = vst [vmem:[%s4033_s25 + $0xa8] sm:$0xff] %v2474_v28  ;;  %v2733_v60 = vsel %vm2637_vm7, %v2474_v28, 0.0  ;;  %v2334_v6 = vadd.f32 %v3586_v19, %v4707_v27  ;;  %v2337_v18 = vadd.f32 %v3589_v46, %v4713_v62  ;;  %vm2642_vm8 = vcmp.lt.s32.totalorder %v4963_v54, 512 }
 0x218   : > { %v2836_v8 = vadd.f32 %v2835_v30, %v2805_v11  ;;  %v2765_v20 = vadd.f32 %v2764_v9, %v2733_v60  ;;  %v2806_v32 = vmul.f32 %v2733_v60, %v2733_v60  ;;  %v2735_v41 = vsel %vm2639_vm6, %v2482_v53, 0.0  ;;  %v3590_v10 = vpop.f32.mrb[136].mxu1  ;;  %v3668_v45 = vpop.f32.mrb[136].mxu0 }
 0x219   : > { %vm2640_vm9 = vcmp.lt.s32.totalorder %v2608_v63, 512  ;;  %vm2643_vm10 = vcmp.lt.s32.totalorder %v4969_v24, 512  ;;  %v2579_v47 = vadd.s32 232, %v4718_v56  ;;  %v2807_v17 = vmul.f32 %v2734_v2, %v2734_v2  ;;  %v3591_v3 = vpop.f32.mrb[137].mxu1  ;;  %v2486_v38 = vpop.f32.mrb[137].mxu0 }
 0x21a   : > { %v2766_v27 = vadd.f32 %v2765_v20, %v2734_v2  ;;  %v2837_v42 = vadd.f32 %v2836_v8, %v2806_v32  ;;  %v2495_v62 = vadd.f32 %v3668_v45, %v2334_v6  ;;  %v3592_v31 = vadd.f32 %v3591_v3, %v3590_v10  ;;  %v3593_v43 = vpop.f32.mrb[138].mxu1  ;;  %v3669_v29 = vpop.f32.mrb[138].mxu0 }
 0x21b   : > { %v2487_v36 = vadd.f32 %v2486_v38, %v4953_v25  ;;  %vm2641_vm11 = vcmp.lt.s32.totalorder %v2609_v39, 512  ;;  %v2612_v52 = vadd.s32 %v4734_v22, %v2578_v23  ;;  %v2808_v26 = vmul.f32 %v2735_v41, %v2735_v41  ;;  %v3594_v61 = vpop.f32.mrb[139].mxu1  ;;  %v2489_v59 = vpop.f32.mrb[139].mxu0 }
 0x21c   : > { %v2838_v58 = vadd.f32 %v2837_v42, %v2807_v17  ;;  %2543 = vst [vmem:[%s4033_s25 + $0xd0] sm:$0xff] %v2495_v62  ;;  %v2767_v35 = vadd.f32 %v2766_v27, %v2735_v41  ;;  %v2498_v50 = vadd.f32 %v3669_v29, %v2337_v18  ;;  %v3595_v48 = vadd.f32 %v3594_v61, %v3593_v43 }
 0x21d   : > { %2541 = vst [vmem:[%s4033_s25 + $0xc0] sm:$0xff] %v2487_v36  ;;  %v2736_v7 = vsel %vm2640_vm9, %v2487_v36, 0.0  ;;  %v2490_v25 = vadd.f32 %v2489_v59, %v4956_v13  ;;  %v2580_v44 = vadd.s32 240, %v4718_v56  ;;  %v2613_v34 = vadd.s32 %v4734_v22, %v2579_v47 }
 0x21e   : > { %v2768_v14 = vadd.f32 %v2767_v35, %v2736_v7  ;;  %v2809_v5 = vmul.f32 %v2736_v7, %v2736_v7  ;;  %v2839_v4 = vadd.f32 %v2838_v58, %v2808_v26  ;;  %2544 = vst [vmem:[%s4033_s25 + $0xd8] sm:$0xff] %v2498_v50  ;;  %v2738_v19 = vsel %vm2642_vm8, %v2495_v62, 0.0 }
 0x21f   : > { %2542 = vst [vmem:[%s4033_s25 + $0xc8] sm:$0xff] %v2490_v25  ;;  %v2737_v49 = vsel %vm2641_vm11, %v2490_v25, 0.0  ;;  %v2342_v57 = vadd.f32 %v3592_v31, %v4721_v1  ;;  %v2345_v16 = vadd.f32 %v3595_v48, %v4728_v12  ;;  %v2581_v51 = vadd.s32 248, %v4718_v56 }
 0x220   : > { %v2840_v63 = vadd.f32 %v2839_v4, %v2809_v5  ;;  %v2769_v13 = vadd.f32 %v2768_v14, %v2737_v49  ;;  %v2810_v55 = vmul.f32 %v2737_v49, %v2737_v49  ;;  %v2739_v33 = vsel %vm2643_vm10, %v2498_v50, 0.0  ;;  %v3596_v53 = vpop.f32.mrb[140].mxu1  ;;  %v3672_v15 = vpop.f32.mrb[140].mxu0  ;;  %v2784_v4 = vld [vmem:[%s5040_s5] sm:$0x1] }
 0x221   : > { %vm2644_vm12 = vcmp.lt.s32.totalorder %v2612_v52, 512  ;;  %v2811_v54 = vmul.f32 %v2738_v19, %v2738_v19  ;;  %v3597_v46 = vpop.f32.mrb[141].mxu1  ;;  %v2502_v28 = vpop.f32.mrb[141].mxu0  ;;  %v2614_v1 = vadd.s32 %v4734_v22, %v2580_v44  ;;  %vm2645_vm13 = vcmp.lt.s32.totalorder %v2613_v34, 512  ;;  %v2744_v44 = vld [vmem:[%s5039_s4] sm:$0x1] }
 0x222   : > { %v2770_v37 = vadd.f32 %v2769_v13, %v2738_v19  ;;  %v2841_v0 = vadd.f32 %v2840_v63, %v2810_v55  ;;  %v3598_v12 = vadd.f32 %v3597_v46, %v3596_v53  ;;  %v2503_v39 = vadd.f32 %v2502_v28, %v2342_v57  ;;  %v3599_v9 = vpop.f32.mrb[142].mxu1  ;;  %v3673_v11 = vpop.f32.mrb[142].mxu0 }
 0x223   : > { %v2812_v56 = vmul.f32 %v2739_v33, %v2739_v33  ;;  %v3600_v23 = vpop.f32.mrb[143].mxu1  ;;  %v2615_v2 = vadd.s32 %v4734_v22, %v2581_v51  ;;  %v2505_v60 = vpop.f32.mrb[143].mxu0  ;;  %vm2646_vm14 = vcmp.lt.s32.totalorder %v2614_v1, 512 }
 0x224   : > { %v2842_v30 = vadd.f32 %v2841_v0, %v2811_v54  ;;  %v2771_v24 = vadd.f32 %v2770_v37, %v2739_v33  ;;  %v2350_v6 = vadd.f32 %v3598_v12, %v4744_v40  ;;  %2545 = vst [vmem:[%s4033_s25 + $0xe0] sm:$0xff] %v2503_v39  ;;  %v2740_v18 = vsel %vm2644_vm12, %v2503_v39, 0.0 }
 0x225   : > { %v3601_v8 = vadd.f32 %v3600_v23, %v3599_v9  ;;  %v2506_v20 = vadd.f32 %v2505_v60, %v2345_v16  ;;  %v2813_v41 = vmul.f32 %v2740_v18, %v2740_v18  ;;  %vm2647_vm15 = vcmp.lt.s32.totalorder %v2615_v2, 512 }
 0x226   : > { %v2772_v32 = vadd.f32 %v2771_v24, %v2740_v18  ;;  %v2843_v10 = vadd.f32 %v2842_v30, %v2812_v56  ;;  %v2511_v45 = vadd.f32 %v3672_v15, %v2350_v6 }
 0x227   : > { %v2353_v47 = vadd.f32 %v3601_v8, %v4752_v21  ;;  %2546 = vst [vmem:[%s4033_s25 + $0xe8] sm:$0xff] %v2506_v20  ;;  %v2741_v22 = vsel %vm2645_vm13, %v2506_v20, 0.0 }
 0x228   : > { %v2844_v17 = vadd.f32 %v2843_v10, %v2813_v41  ;;  %v2773_v40 = vadd.f32 %v2772_v32, %v2741_v22  ;;  %v2814_v27 = vmul.f32 %v2741_v22, %v2741_v22  ;;  %2547 = vst [vmem:[%s4033_s25 + $0xf0] sm:$0xff] %v2511_v45  ;;  %v2742_v62 = vsel %vm2646_vm14, %v2511_v45, 0.0 }
 0x229   : > { %v2514_v42 = vadd.f32 %v3673_v11, %v2353_v47  ;;  %v2815_v38 = vmul.f32 %v2742_v62, %v2742_v62 }
 0x22a   : > { %v2774_v3 = vadd.f32 %v2773_v40, %v2742_v62  ;;  %v2845_v31 = vadd.f32 %v2844_v17, %v2814_v27 }
 0x22b   : > { %2548 = vst [vmem:[%s4033_s25 + $0xf8] sm:$0xff] %v2514_v42  ;;  %v2743_v36 = vsel %vm2647_vm15, %v2514_v42, 0.0 }
 0x22c   : > { %v2816_v43 = vmul.f32 %v2743_v36, %v2743_v36  ;;  %v2775_v29 = vadd.f32 %v2774_v3, %v2743_v36  ;;  %v2846_v52 = vadd.f32 %v2845_v31, %v2815_v38 }
 0x22e   : > { %v2776_v26 = vrot.slane %v2775_v29, 4  ;;  %v2847_v21 = vadd.f32 %v2846_v52, %v2816_v43 }
 0x230   : > { %v2777_v58 = vadd.f32 %v2776_v26, %v2775_v29  ;;  %v2848_v35 = vrot.slane %v2847_v21, 4 }
 0x232   : > { %v2778_v50 = vrot.slane %v2777_v58, 2  ;;  %v2849_v61 = vadd.f32 %v2848_v35, %v2847_v21 }
 0x234   : > { %v2779_v59 = vadd.f32 %v2778_v50, %v2777_v58  ;;  %v2850_v7 = vrot.slane %v2849_v61, 2 }
 0x236   : > { %v2780_v48 = vrot.slane %v2779_v59, 1  ;;  %v2851_v25 = vadd.f32 %v2850_v7, %v2849_v61 }
 0x238   : > { %v2781_v14 = vadd.f32 %v2780_v48, %v2779_v59  ;;  %v2852_v5 = vrot.slane %v2851_v25, 1 }
 0x23a   : > { %v2782_v34 = vadd.f32 %v2781_v14, %v2744_v44  ;;  %v2853_v19 = vadd.f32 %v2852_v5, %v2851_v25 }
 0x23c   : > { %2783 = vst [vmem:[%s5039_s4] sm:$0x1] %v2782_v34  ;;  %v2854_v49 = vadd.f32 %v2853_v19, %v2784_v4 }
 0x23e   : > { %2855 = vst [vmem:[%s5040_s5] sm:$0x1] %v2854_v49 }
 0x23f PF: > { %s16_s18 = sadd.s32 1, %s3986_s18  }
 0x240   : > { %p13_p5 = scmp.ge.s32.totalorder %s16_s18, 4  }
 0x242   :  { %15 = sbr.rel (!%p13_p5) target bundleno = 1 (0x1), region = 82 }

// kernel: gross_residual_forward.7
= control target key start
LH: loop header
LB: loop body
LE: loop exit
PB: predicated region body
PF: predicated region fallthrough
CT: control target
= control target key end

     0   :  { %s666_s21 = smov 0   ;;  %s1045_s0 = inlined_call_operand.vmem [shape: f32[512,128], index: 0, kind: input, shape index: {}]   ;;  %s1046_s1 = inlined_call_operand.vmem [shape: f32[1,128], index: 1, kind: input, shape index: {}]   ;;  %s1047_s2 = inlined_call_operand.vmem [shape: f32[1,128], index: 2, kind: input, shape index: {}]   ;;  %s1048_s3 = inlined_call_operand.vmem [shape: f32[1,128], index: 3, kind: input, shape index: {}]   ;;  %s1049_s4 = inlined_call_operand.vmem [shape: f32[1,128], index: 4, kind: input, shape index: {}]   ;;  %s1050_s5 = inlined_call_operand.vmem [shape: f32[512,128], index: 5, kind: input, shape index: {}]   ;;  %s1051_s6 = inlined_call_operand.vmem [shape: f32[512,128], index: 6, kind: output, shape index: {}]  }
   0x1 LB: > { %s599_s22 = sadd.s32 4294967295, %s629_s21   ;;  %p603_p0 = scmp.ge.s32.totalorder %s629_s21, 1  ;;  %s629_s21 = sphi %s666_s21, %s16_s21  }
   0x2   : > { %p224_p1 = scmp.lt.s32.totalorder %s629_s21, 3 }
   0x4   : > { %p225_p2 = pnand %p603_p0, %p224_p1 }
   0x5   : > { %s604_s23 = sshll.u32 (!%p225_p2), %s599_s22, 5  ;;  %v309_v0 = vld [vmem:[%s1046_s1] sm:$0x1] (!%p225_p2)  ;;  %v354_v4 = vlaneseq (!%p225_p2) }
   0x6   : > { %228 = sbr.rel (%p225_p2) target bundleno = 64 (0x40), region = 44  ;;  %v310_v1 = vld [vmem:[%s1047_s2] sm:$0x1] (!%p225_p2)  ;;  %p260_p3 = scmp.lt.s32.totalorder (!%p225_p2), %s604_s23, 63  ;;  %v345_v2 = vmul.f32 (!%p225_p2), 0.001953125, %v309_v0 }
   0x7   : > { %v346_v3 = vmul.f32 (!%p225_p2), 0.001953125, %v310_v1  ;;  %v355_v7 = vshrl.u32 (!%p225_p2), %v354_v4, 7  ;;  %v311_v20 = vld [vmem:[%s1048_s3] sm:$0x1] (!%p225_p2) }
   0x8   : > { %v347_v5 = vmul.f32 (!%p225_p2), %v345_v2, %v345_v2 }
   0x9   : > { %v356_v10 = vsub.s32 (!%p225_p2), 0, %v355_v7 }
   0xa   : > { %v348_v6 = vsub.f32 (!%p225_p2), %v346_v3, %v347_v5 }
   0xb   : > { %v691_v12 = vrot.slane (!%p225_p2), %v345_v2, %v356_v10  ;;  %v831_v2 = vld [vmem:[%s1049_s4] ss:$0 sm:$0xff] (!%p225_p2) }
   0xc   : > { %v349_v8 = vmax.f32 (!%p225_p2), %v348_v6, 0.0 }
   0xd   : > { %s1057_s23 = smov (!%p260_p3, %s604_s23), 63 }
   0xe   : > { %s680_s28 = sshll.u32 %s1057_s23, 3  ;;  %v350_v9 = vadd.f32 1e-05, %v349_v8 }
   0xf   : > { %s686_s7 = scalar_lea.vmem %s1045_s0, %s680_s28  ;;  %s801_s12 = scalar_lea.vmem %s1050_s5, %s680_s28 }
  0x10   : > { %621 = vrsqrt.f32 %v350_v9  ;;  %v689_v11 = vld [vmem:[%s686_s7] sm:$0xff]  ;;  %v694_v13 = vld [vmem:[%s686_s7 + $0x8] sm:$0xff]  ;;  %v697_v14 = vld [vmem:[%s686_s7 + $0x10] sm:$0xff]  ;;  %s865_s17 = scalar_lea.vmem %s1051_s6, %s680_s28 }
  0x11   : > { %v700_v15 = vld [vmem:[%s686_s7 + $0x18] sm:$0xff]  ;;  %v703_v16 = vld [vmem:[%s686_s7 + $0x20] sm:$0xff]  ;;  %v706_v17 = vld [vmem:[%s686_s7 + $0x28] sm:$0xff]  ;;  %v359_v24 = vsub.f32 %v689_v11, %v691_v12  ;;  %v360_v28 = vsub.f32 %v694_v13, %v691_v12  ;;  %v361_v29 = vsub.f32 %v697_v14, %v691_v12 }
  0x12   : > { %v709_v18 = vld [vmem:[%s686_s7 + $0x30] sm:$0xff]  ;;  %v712_v19 = vld [vmem:[%s686_s7 + $0x38] sm:$0xff]  ;;  %v718_v21 = vld [vmem:[%s686_s7 + $0x40] sm:$0xff]  ;;  %v362_v30 = vsub.f32 %v700_v15, %v691_v12  ;;  %v363_v31 = vsub.f32 %v703_v16, %v691_v12  ;;  %v364_v35 = vsub.f32 %v706_v17, %v691_v12 }
  0x13   : > { %v721_v22 = vld [vmem:[%s686_s7 + $0x48] sm:$0xff]  ;;  %v724_v23 = vld [vmem:[%s686_s7 + $0x50] sm:$0xff]  ;;  %v729_v25 = vld [vmem:[%s686_s7 + $0x58] sm:$0xff]  ;;  %v365_v36 = vsub.f32 %v709_v18, %v691_v12  ;;  %v366_v37 = vsub.f32 %v712_v19, %v691_v12  ;;  %v367_v38 = vsub.f32 %v718_v21, %v691_v12 }
  0x14   : > { %v732_v26 = vld [vmem:[%s686_s7 + $0x60] sm:$0xff]  ;;  %v735_v27 = vld [vmem:[%s686_s7 + $0x68] sm:$0xff]  ;;  %v746_v32 = vld [vmem:[%s686_s7 + $0x70] sm:$0xff]  ;;  %v368_v43 = vsub.f32 %v721_v22, %v691_v12  ;;  %v369_v44 = vsub.f32 %v724_v23, %v691_v12  ;;  %v370_v45 = vsub.f32 %v729_v25, %v691_v12 }
  0x15   : > { %v749_v33 = vld [vmem:[%s686_s7 + $0x78] sm:$0xff]  ;;  %v752_v34 = vld [vmem:[%s686_s7 + $0x80] sm:$0xff]  ;;  %v763_v39 = vld [vmem:[%s686_s7 + $0x88] sm:$0xff]  ;;  %v371_v46 = vsub.f32 %v732_v26, %v691_v12  ;;  %v372_v51 = vsub.f32 %v735_v27, %v691_v12  ;;  %v373_v52 = vsub.f32 %v746_v32, %v691_v12 }
  0x16   : > { %v766_v40 = vld [vmem:[%s686_s7 + $0x90] sm:$0xff]  ;;  %v769_v41 = vld [vmem:[%s686_s7 + $0x98] sm:$0xff]  ;;  %v780_v47 = vld [vmem:[%s686_s7 + $0xa0] sm:$0xff]  ;;  %v374_v53 = vsub.f32 %v749_v33, %v691_v12  ;;  %v375_v55 = vsub.f32 %v752_v34, %v691_v12  ;;  %v376_v56 = vsub.f32 %v763_v39, %v691_v12 }
  0x17   : > { %v783_v48 = vld [vmem:[%s686_s7 + $0xa8] sm:$0xff]  ;;  %v786_v49 = vld [vmem:[%s686_s7 + $0xb0] sm:$0xff]  ;;  %v795_v54 = vld [vmem:[%s686_s7 + $0xb8] sm:$0xff]  ;;  %v377_v57 = vsub.f32 %v766_v40, %v691_v12  ;;  %v378_v58 = vsub.f32 %v769_v41, %v691_v12  ;;  %v379_v62 = vsub.f32 %v780_v47, %v691_v12 }
  0x18   : > { %v812_v59 = vld [vmem:[%s686_s7 + $0xc0] sm:$0xff]  ;;  %v815_v60 = vld [vmem:[%s686_s7 + $0xc8] sm:$0xff]  ;;  %v380_v63 = vsub.f32 %v783_v48, %v691_v12  ;;  %v381_v0 = vsub.f32 %v786_v49, %v691_v12  ;;  %v826_v1 = vld [vmem:[%s686_s7 + $0xd0] sm:$0xff] }
  0x19   : > { %v313_v7 = vld [vmem:[%s801_s12] sm:$0xff]  ;;  %v314_v9 = vld [vmem:[%s801_s12 + $0x8] sm:$0xff]  ;;  %v315_v14 = vld [vmem:[%s801_s12 + $0x10] sm:$0xff] }
  0x1a   : > { %v622_v42 = vpop.eup %621  ;;  %v316_v15 = vld [vmem:[%s801_s12 + $0x18] sm:$0xff]  ;;  %v317_v16 = vld [vmem:[%s801_s12 + $0x20] sm:$0xff]  ;;  %v323_v21 = vld [vmem:[%s801_s12 + $0x50] sm:$0xff] }
  0x1b   : > { %v352_v50 = vmul.f32 %v622_v42, %v311_v20  ;;  %v320_v6 = vld [vmem:[%s801_s12 + $0x38] sm:$0xff]  ;;  %v331_v34 = vld [vmem:[%s801_s12 + $0x90] sm:$0xff] }
  0x1c   : > { %v324_v22 = vld [vmem:[%s801_s12 + $0x58] sm:$0xff]  ;;  %v335_v49 = vld [vmem:[%s801_s12 + $0xb0] sm:$0xff] }
  0x1d   : > { %v817_v61 = vrot.slane %v352_v50, %v356_v10  ;;  %v319_v50 = vld [vmem:[%s801_s12 + $0x30] sm:$0xff]  ;;  %v328_v32 = vld [vmem:[%s801_s12 + $0x78] sm:$0xff] }
  0x1e   : > { %v332_v39 = vld [vmem:[%s801_s12 + $0x98] sm:$0xff] }
  0x1f   : > { %v397_v8 = vmul.f32 %v817_v61, %v359_v24  ;;  %v398_v10 = vmul.f32 %v817_v61, %v360_v28  ;;  %v399_v11 = vmul.f32 %v817_v61, %v361_v29  ;;  %v400_v13 = vmul.f32 %v817_v61, %v362_v30  ;;  %v318_v30 = vld [vmem:[%s801_s12 + $0x28] sm:$0xff] }
  0x20   : > { %v401_v17 = vmul.f32 %v817_v61, %v363_v31  ;;  %v402_v18 = vmul.f32 %v817_v61, %v364_v35  ;;  %v403_v19 = vmul.f32 %v817_v61, %v365_v36  ;;  %v404_v20 = vmul.f32 %v817_v61, %v366_v37 }
  0x21   : > { %v435_v24 = vadd.f32 %v831_v2, %v397_v8  ;;  %v436_v28 = vadd.f32 %v831_v2, %v398_v10  ;;  %v437_v29 = vadd.f32 %v831_v2, %v399_v11  ;;  %v438_v42 = vadd.f32 %v831_v2, %v400_v13 }
  0x22   : > { %v439_v31 = vadd.f32 %v831_v2, %v401_v17  ;;  %v440_v35 = vadd.f32 %v831_v2, %v402_v18  ;;  %v441_v36 = vadd.f32 %v831_v2, %v403_v19  ;;  %v442_v37 = vadd.f32 %v831_v2, %v404_v20  ;;  %v321_v18 = vld [vmem:[%s801_s12 + $0x40] sm:$0xff] }
  0x23   : > { %v467_v8 = vadd.f32 %v435_v24, %v313_v7  ;;  %v468_v10 = vadd.f32 %v436_v28, %v314_v9  ;;  %v469_v11 = vadd.f32 %v437_v29, %v315_v14  ;;  %v470_v13 = vadd.f32 %v438_v42, %v316_v15  ;;  %v322_v9 = vld [vmem:[%s801_s12 + $0x48] sm:$0xff] }
  0x24   : > { %v471_v5 = vadd.f32 %v439_v31, %v317_v16  ;;  %v472_v4 = vadd.f32 %v440_v35, %v318_v30  ;;  %v473_v3 = vadd.f32 %v441_v36, %v319_v50  ;;  %v474_v17 = vadd.f32 %v442_v37, %v320_v6  ;;  %v329_v30 = vld [vmem:[%s801_s12 + $0x80] sm:$0xff]  ;;  %v330_v31 = vld [vmem:[%s801_s12 + $0x88] sm:$0xff] }
  0x25   : > { %499 = vst [vmem:[%s865_s17] sm:$0xff] %v467_v8  ;;  %500 = vst [vmem:[%s865_s17 + $0x8] sm:$0xff] %v468_v10  ;;  %v405_v7 = vmul.f32 %v817_v61, %v367_v38  ;;  %v406_v14 = vmul.f32 %v817_v61, %v368_v43  ;;  %v407_v6 = vmul.f32 %v817_v61, %v369_v44  ;;  %v325_v38 = vld [vmem:[%s801_s12 + $0x60] sm:$0xff]  ;;  %v334_v8 = vld [vmem:[%s801_s12 + $0xa8] sm:$0xff] }
  0x26   : > { %501 = vst [vmem:[%s865_s17 + $0x10] sm:$0xff] %v469_v11  ;;  %502 = vst [vmem:[%s865_s17 + $0x18] sm:$0xff] %v470_v13  ;;  %v408_v15 = vmul.f32 %v817_v61, %v370_v45  ;;  %v409_v23 = vmul.f32 %v817_v61, %v371_v46  ;;  %v410_v25 = vmul.f32 %v817_v61, %v372_v51  ;;  %v326_v51 = vld [vmem:[%s801_s12 + $0x68] sm:$0xff]  ;;  %v336_v10 = vld [vmem:[%s801_s12 + $0xb8] sm:$0xff] }
  0x27   : > { %503 = vst [vmem:[%s865_s17 + $0x20] sm:$0xff] %v471_v5  ;;  %504 = vst [vmem:[%s865_s17 + $0x28] sm:$0xff] %v472_v4  ;;  %v411_v43 = vmul.f32 %v817_v61, %v373_v52  ;;  %v412_v44 = vmul.f32 %v817_v61, %v374_v53  ;;  %v443_v45 = vadd.f32 %v831_v2, %v405_v7 }
  0x28   : > { %505 = vst [vmem:[%s865_s17 + $0x30] sm:$0xff] %v473_v3  ;;  %506 = vst [vmem:[%s865_s17 + $0x38] sm:$0xff] %v474_v17  ;;  %v444_v26 = vadd.f32 %v831_v2, %v406_v14  ;;  %v445_v46 = vadd.f32 %v831_v2, %v407_v6  ;;  %v446_v27 = vadd.f32 %v831_v2, %v408_v15  ;;  %v327_v3 = vld [vmem:[%s801_s12 + $0x70] sm:$0xff]  ;;  %v304_v17 = vld [vmem:[%s686_s7 + $0xd8] sm:$0xff] }
  0x29   : > { %v447_v52 = vadd.f32 %v831_v2, %v409_v23  ;;  %v448_v33 = vadd.f32 %v831_v2, %v410_v25  ;;  %v449_v53 = vadd.f32 %v831_v2, %v411_v43  ;;  %v450_v4 = vadd.f32 %v831_v2, %v412_v44  ;;  %v306_v15 = vld [vmem:[%s686_s7 + $0xe8] sm:$0xff] }
  0x2a   : > { %v475_v5 = vadd.f32 %v443_v45, %v321_v18  ;;  %v476_v16 = vadd.f32 %v444_v26, %v322_v9  ;;  %v477_v19 = vadd.f32 %v445_v46, %v323_v21  ;;  %v478_v20 = vadd.f32 %v446_v27, %v324_v22  ;;  %v305_v18 = vld [vmem:[%s686_s7 + $0xe0] sm:$0xff]  ;;  %v307_v21 = vld [vmem:[%s686_s7 + $0xf0] sm:$0xff]  ;;  %v308_v22 = vld [vmem:[%s686_s7 + $0xf8] sm:$0xff] }
  0x2b   : > { %v479_v24 = vadd.f32 %v447_v52, %v325_v38  ;;  %v480_v28 = vadd.f32 %v448_v33, %v326_v51  ;;  %v481_v29 = vadd.f32 %v449_v53, %v327_v3  ;;  %v482_v42 = vadd.f32 %v450_v4, %v328_v32  ;;  %v338_v32 = vld [vmem:[%s801_s12 + $0xc8] sm:$0xff]  ;;  %v339_v52 = vld [vmem:[%s801_s12 + $0xd0] sm:$0xff] }
  0x2c   : > { %507 = vst [vmem:[%s865_s17 + $0x40] sm:$0xff] %v475_v5  ;;  %508 = vst [vmem:[%s865_s17 + $0x48] sm:$0xff] %v476_v16  ;;  %v413_v50 = vmul.f32 %v817_v61, %v375_v55  ;;  %v414_v35 = vmul.f32 %v817_v61, %v376_v56  ;;  %v415_v36 = vmul.f32 %v817_v61, %v377_v57  ;;  %v333_v55 = vld [vmem:[%s801_s12 + $0xa0] sm:$0xff] }
  0x2d   : > { %509 = vst [vmem:[%s865_s17 + $0x50] sm:$0xff] %v477_v19  ;;  %510 = vst [vmem:[%s865_s17 + $0x58] sm:$0xff] %v478_v20  ;;  %v416_v37 = vmul.f32 %v817_v61, %v378_v58  ;;  %v417_v40 = vmul.f32 %v817_v61, %v379_v62  ;;  %v418_v41 = vmul.f32 %v817_v61, %v380_v63  ;;  %v340_v20 = vld [vmem:[%s801_s12 + $0xd8] sm:$0xff] }
  0x2e   : > { %511 = vst [vmem:[%s865_s17 + $0x60] sm:$0xff] %v479_v24  ;;  %512 = vst [vmem:[%s865_s17 + $0x68] sm:$0xff] %v480_v28  ;;  %v419_v56 = vmul.f32 %v817_v61, %v381_v0  ;;  %v1052_v57 = vsub.f32 %v795_v54, %v691_v12  ;;  %v451_v47 = vadd.f32 %v831_v2, %v413_v50  ;;  %v341_v24 = vld [vmem:[%s801_s12 + $0xe0] sm:$0xff] }
  0x2f   : > { %513 = vst [vmem:[%s865_s17 + $0x70] sm:$0xff] %v481_v29  ;;  %514 = vst [vmem:[%s865_s17 + $0x78] sm:$0xff] %v482_v42  ;;  %v452_v62 = vadd.f32 %v831_v2, %v414_v35  ;;  %v453_v48 = vadd.f32 %v831_v2, %v415_v36  ;;  %v454_v63 = vadd.f32 %v831_v2, %v416_v37  ;;  %v342_v36 = vld [vmem:[%s801_s12 + $0xe8] sm:$0xff]  ;;  %v343_v37 = vld [vmem:[%s801_s12 + $0xf0] sm:$0xff] }
  0x30   : > { %v420_v58 = vmul.f32 %v817_v61, %v1052_v57  ;;  %v455_v0 = vadd.f32 %v831_v2, %v417_v40  ;;  %v456_v54 = vadd.f32 %v831_v2, %v418_v41  ;;  %v457_v11 = vadd.f32 %v831_v2, %v419_v56 }
  0x31   : > { %v483_v7 = vadd.f32 %v451_v47, %v329_v30  ;;  %v484_v9 = vadd.f32 %v452_v62, %v330_v31  ;;  %v485_v14 = vadd.f32 %v453_v48, %v331_v34  ;;  %v486_v6 = vadd.f32 %v454_v63, %v332_v39  ;;  %v344_v34 = vld [vmem:[%s801_s12 + $0xf8] sm:$0xff] }
  0x32   : > { %v458_v13 = vadd.f32 %v831_v2, %v420_v58  ;;  %v487_v38 = vadd.f32 %v455_v0, %v333_v55  ;;  %v488_v23 = vadd.f32 %v456_v54, %v334_v8  ;;  %v489_v25 = vadd.f32 %v457_v11, %v335_v49 }
  0x33   : > { %515 = vst [vmem:[%s865_s17 + $0x80] sm:$0xff] %v483_v7  ;;  %516 = vst [vmem:[%s865_s17 + $0x88] sm:$0xff] %v484_v9  ;;  %v1053_v44 = vsub.f32 %v812_v59, %v691_v12  ;;  %v1054_v26 = vsub.f32 %v815_v60, %v691_v12  ;;  %v1055_v27 = vsub.f32 %v826_v1, %v691_v12  ;;  %v337_v59 = vld [vmem:[%s801_s12 + $0xc0] sm:$0xff] }
  0x34   : > { %v490_v43 = vadd.f32 %v458_v13, %v336_v10  ;;  %517 = vst [vmem:[%s865_s17 + $0x90] sm:$0xff] %v485_v14  ;;  %518 = vst [vmem:[%s865_s17 + $0x98] sm:$0xff] %v486_v6  ;;  %v386_v3 = vsub.f32 %v304_v17, %v691_v12  ;;  %v387_v60 = vsub.f32 %v305_v18, %v691_v12 }
  0x35   : > { %v421_v45 = vmul.f32 %v817_v61, %v1053_v44  ;;  %v422_v46 = vmul.f32 %v817_v61, %v1054_v26  ;;  %v423_v51 = vmul.f32 %v817_v61, %v1055_v27  ;;  %519 = vst [vmem:[%s865_s17 + $0xa0] sm:$0xff] %v487_v38  ;;  %520 = vst [vmem:[%s865_s17 + $0xa8] sm:$0xff] %v488_v23 }
  0x36   : > { %521 = vst [vmem:[%s865_s17 + $0xb0] sm:$0xff] %v489_v25  ;;  %522 = vst [vmem:[%s865_s17 + $0xb8] sm:$0xff] %v490_v43  ;;  %v388_v33 = vsub.f32 %v306_v15, %v691_v12  ;;  %v389_v53 = vsub.f32 %v307_v21, %v691_v12  ;;  %v390_v1 = vsub.f32 %v308_v22, %v691_v12 }
  0x37   : > { %v459_v4 = vadd.f32 %v831_v2, %v421_v45  ;;  %v460_v5 = vadd.f32 %v831_v2, %v422_v46  ;;  %v461_v16 = vadd.f32 %v831_v2, %v423_v51  ;;  %v424_v19 = vmul.f32 %v817_v61, %v386_v3 }
  0x38   : > { %v425_v28 = vmul.f32 %v817_v61, %v387_v60  ;;  %v426_v29 = vmul.f32 %v817_v61, %v388_v33  ;;  %v427_v12 = vmul.f32 %v817_v61, %v389_v53  ;;  %v428_v42 = vmul.f32 %v817_v61, %v390_v1 }
  0x39   : > { %v491_v30 = vadd.f32 %v459_v4, %v337_v59  ;;  %v492_v50 = vadd.f32 %v460_v5, %v338_v32  ;;  %v493_v31 = vadd.f32 %v461_v16, %v339_v52  ;;  %v462_v35 = vadd.f32 %v831_v2, %v424_v19 }
  0x3a   : > { %v463_v39 = vadd.f32 %v831_v2, %v425_v28  ;;  %v464_v55 = vadd.f32 %v831_v2, %v426_v29  ;;  %v465_v40 = vadd.f32 %v831_v2, %v427_v12  ;;  %v466_v61 = vadd.f32 %v831_v2, %v428_v42 }
  0x3b   : > { %523 = vst [vmem:[%s865_s17 + $0xc0] sm:$0xff] %v491_v30  ;;  %524 = vst [vmem:[%s865_s17 + $0xc8] sm:$0xff] %v492_v50  ;;  %v494_v41 = vadd.f32 %v462_v35, %v340_v20 }
  0x3c   : > { %525 = vst [vmem:[%s865_s17 + $0xd0] sm:$0xff] %v493_v31  ;;  %v495_v56 = vadd.f32 %v463_v39, %v341_v24  ;;  %v496_v57 = vadd.f32 %v464_v55, %v342_v36  ;;  %v497_v58 = vadd.f32 %v465_v40, %v343_v37  ;;  %v498_v47 = vadd.f32 %v466_v61, %v344_v34 }
  0x3d   : > { %526 = vst [vmem:[%s865_s17 + $0xd8] sm:$0xff] %v494_v41 }
  0x3e   : > { %527 = vst [vmem:[%s865_s17 + $0xe0] sm:$0xff] %v495_v56  ;;  %528 = vst [vmem:[%s865_s17 + $0xe8] sm:$0xff] %v496_v57 }
  0x3f   : > { %529 = vst [vmem:[%s865_s17 + $0xf0] sm:$0xff] %v497_v58  ;;  %530 = vst [vmem:[%s865_s17 + $0xf8] sm:$0xff] %v498_v47 }
  0x40 PF: > { %s16_s21 = sadd.s32 1, %s629_s21  }
  0x41   : > { %p13_p4 = scmp.ge.s32.totalorder %s16_s21, 4  }
  0x43   :  { %15 = sbr.rel (!%p13_p4) target bundleno = 1 (0x1), region = 77 }

</bundles_post_ra>
